<compile_context>
chip_gen: v5e
topology: v5e:2x2
jax: 0.10.0
libtpu: 0.0.40
codegen_flags: <defaults>
</compile_context>

<pallas_src>
import jax
import jax.numpy as jnp
from jax import lax
from jax.experimental import pallas as pl
from jax.experimental.pallas import tpu as pltpu

_PADL = 8                 # full-sublane left pad -> aligned interior store
_VPU_RANK1_MAX_K = 4      # 1x1 expand uses the VPU rank-1 path only for tiny K; K>=8 -> MXU


def _make_kernel(NB, H, W, Cin, hidden, oup, stride, expand, use_res):
    PADL = _PADL
    Wp = W + 2 * PADL             # W % 8 == 0  =>  Wp % 8 == 0
    Ho = (H - 1) // stride + 1
    Wo = (W - 1) // stride + 1

    def small_k_matmul(a, b):
        # Rank-1 accumulation on the VPU; only for tiny K where the MXU would be >95% padding.
        K = a.shape[1]
        out = a[:, 0:1] * b[0:1, :]
        for k in range(1, K):
            out = out + a[:, k:k + 1] * b[k:k + 1, :]
        return out

    def kernel(x_ref, w1_ref, s1_ref, b1_ref, wd_ref, s2_ref, b2_ref,
               w3_ref, s3_ref, b3_ref, o_ref, pad_scr):
        # ---- stage 1: 1x1 expansion conv + BN + ReLU6 (2D slab, no relayout) ----
        if expand:
            xm = x_ref[...].astype(jnp.float32)            # (NB*H*W, Cin)
            w1 = w1_ref[...]
            if Cin <= _VPU_RANK1_MAX_K:
                h = small_k_matmul(xm, w1)                 # VPU rank-1 path (tiny K only)
            else:
                h = jnp.dot(xm, w1, preferred_element_type=jnp.float32)   # keep MXU busy, VALU free
            h = jnp.clip(h * s1_ref[...] + b1_ref[...], 0.0, 6.0)
        else:
            h = x_ref[...].astype(jnp.float32)             # Cin == hidden here

        # ---- stage 2: 3x3 depthwise conv (pad=1) + BN + ReLU6 ----
        # Re-zero only the halo (all writes are 8-sublane-aligned blocks); the interior is
        # fully overwritten below.  Halo-per-step (not program_id==0) so it stays correct when
        # the batch-tile grid axis is sharded across TensorCores.
        pad_scr[:, 0:1, :, :] = jnp.zeros((NB, 1, Wp, hidden), jnp.float32)
        pad_scr[:, H + 1:H + 2, :, :] = jnp.zeros((NB, 1, Wp, hidden), jnp.float32)
        pad_scr[:, :, 0:PADL, :] = jnp.zeros((NB, H + 2, PADL, hidden), jnp.float32)
        pad_scr[:, :, PADL + W:Wp, :] = jnp.zeros((NB, H + 2, PADL, hidden), jnp.float32)

        # W % 8 == 0 and channels on lanes => this reshape is a relabeling (no relayout), and the
        # interior store starts on a sublane boundary (left pad = 8), so no shift relayout here.
        pad_scr[:, 1:H + 1, PADL:PADL + W, :] = h.reshape(NB, H, W, hidden)

        wd = wd_ref[...]                                   # (9, hidden), tap-major (kh*3 + kw)

        if stride == 1:
            # Hoisted kw column views read straight from the ref (no full scratch copy):
            # only c0 = 7 and 9 are sublane-misaligned (2 relayouts instead of 6); the kh taps
            # reuse each view via free outer-dim (H) slices.
            cols = [pad_scr[:, :, (PADL - 1 + kw):(PADL - 1 + kw) + W, :]
                    for kw in range(3)]                    # each (NB, H+2, W, hidden)
            acc = cols[0][:, 0:H] * wd[0:1, :]             # init from first tap (no zeros + add)
            for idx in range(1, 9):
                kh, kw = idx // 3, idx % 3
                acc = acc + cols[kw][:, kh:kh + H] * wd[idx:idx + 1, :]
        else:
            # stride 2: read only the strided taps.  Sublane (W) subsampling is a native strided
            # load (pl.ds stride=2) hoisted per kw; even/odd row (H) selection is a free
            # outer-dim reshape + index (H asserted even).  ~4x less VALU work than computing
            # the stride-1 result and subsampling it.
            cols = [pad_scr[:, :, pl.ds(PADL - 1 + kw, Wo, 2), :]
                    for kw in range(3)]                    # each (NB, H+2, Wo, hidden)

            def tap(kh, kw):
                v = cols[kw][:, kh:kh + 2 * Ho]            # (NB, 2*Ho, Wo, hidden)
                return v.reshape(NB, Ho, 2, Wo, hidden)[:, :, 0]

            acc = tap(0, 0) * wd[0:1, :]
            for idx in range(1, 9):
                kh, kw = idx // 3, idx % 3
                acc = acc + tap(kh, kw) * wd[idx:idx + 1, :]

        acc = jnp.clip(acc * s2_ref[...] + b2_ref[...], 0.0, 6.0)

        # ---- stage 3: 1x1 projection conv + BN (no activation) ----
        om = jnp.dot(acc.reshape(NB * Ho * Wo, hidden), w3_ref[...],
                     preferred_element_type=jnp.float32)
        om = om * s3_ref[...] + b3_ref[...]

        if use_res:
            # Re-read the input here instead of keeping a full f32 copy live across all stages
            # (Cin == oup and stride == 1).
            om = om + x_ref[...].astype(jnp.float32)

        # One contiguous output slab per batch tile.
        # TODO(synk): lane-dense (>=128-lane) output slab for small oup needs an in-kernel
        # minor-dim merging reshape; validate its relayout cost before enabling.
        o_ref[...] = om.astype(o_ref.dtype)

    return kernel


def _vmem_capacity_bytes():
    """Generation-aware VMEM capacity; conservative (v7x-sized) fallback if unavailable."""
    try:
        cap = int(getattr(pltpu.get_tpu_info(), "vmem_capacity_bytes", 0))
        if cap > 0:
            return cap
    except Exception:
        pass
    return 64 * 2 ** 20


def _pick_batch_tile(N, H, W, Cin, hidden, oup, stride, budget_bytes):
    """Largest divisor of N whose per-step f32 VMEM footprint stays under budget.

    Honest accounting: double-buffered in/out blocks, padded scratch, expanded activation,
    the 3 hoisted column views, accumulator + one tap temporary, and the projection result.
    NB is additionally capped so the grid has >= 2 steps whenever N >= 2 (v7x dual-TC sharding
    and pipeline overlap; costs one extra ~0.35us step on single-TC chips).
    """
    Ho = (H - 1) // stride + 1
    Wo = (W - 1) // stride + 1
    col_w = W if stride == 1 else Wo
    per_img = 4 * (
        2 * H * W * Cin                          # input block (double-buffered)
        + 2 * Ho * Wo * oup                      # output block (double-buffered)
        + (H + 2) * (W + 2 * _PADL) * hidden     # padded depthwise scratch
        + H * W * hidden                         # expanded activation h
        + 3 * (H + 2) * col_w * hidden           # hoisted kw column views
        + 2 * Ho * Wo * hidden                   # depthwise acc + tap temporary
        + Ho * Wo * oup                          # projection result
    )
    nb = int(max(1, min(N, budget_bytes // max(per_img, 1))))
    if N >= 2:
        nb = min(nb, N // 2)
    nb = max(1, nb)
    while N % nb:
        nb -= 1
    return nb


def inverted_residual_pallas(x_nhwc, params, *, stride, expand_ratio):
    N, H, W, Cin = x_nhwc.shape
    w1, s1, b1, wd, s2, b2, w3, s3, b3 = params
    hidden = wd.shape[1]
    oup = w3.shape[1]
    expand = expand_ratio != 1
    use_res = (stride == 1) and (Cin == oup)

    assert stride in (1, 2)
    assert W % 8 == 0, "W must be a multiple of 8 (sublane alignment)"  # TODO(synk): general W
    if stride == 2:
        assert H % 2 == 0 and W % 2 == 0, "stride-2 path assumes even spatial dims"
    if not expand:
        assert hidden == Cin

    Ho = (H - 1) // stride + 1
    Wo = (W - 1) // stride + 1

    vmem_cap = _vmem_capacity_bytes()
    budget = vmem_cap // 6                                   # ~21 MiB on v5e/v6e, ~10 MiB on v7x
    vmem_limit = int(min((3 * vmem_cap) // 4, 96 * 2 ** 20)) # 96 MiB on 128 MiB chips, 48 MiB on v7x

    NB = _pick_batch_tile(N, H, W, Cin, hidden, oup, stride, budget)
    num_tiles = N // NB

    # Free reshape (contiguous): batch flattened into the matmul M dimension.
    x2d = x_nhwc.reshape(N * H * W, Cin)

    kernel = _make_kernel(NB, H, W, Cin, hidden, oup, stride, expand, use_res)

    const2d = lambda t: (0, 0)      # grid-invariant blocks: fetched once, not per step
    grid_spec = pltpu.PrefetchScalarGridSpec(
        num_scalar_prefetch=0,
        grid=(num_tiles,),
        in_specs=[
            pl.BlockSpec((NB * H * W, Cin), lambda t: (t, 0)),
            pl.BlockSpec(w1.shape, const2d),
            pl.BlockSpec(s1.shape, const2d),
            pl.BlockSpec(b1.shape, const2d),
            pl.BlockSpec(wd.shape, const2d),
            pl.BlockSpec(s2.shape, const2d),
            pl.BlockSpec(b2.shape, const2d),
            pl.BlockSpec(w3.shape, const2d),
            pl.BlockSpec(s3.shape, const2d),
            pl.BlockSpec(b3.shape, const2d),
        ],
        out_specs=pl.BlockSpec((NB * Ho * Wo, oup), lambda t: (t, 0)),
        scratch_shapes=[pltpu.VMEM((NB, H + 2, W + 2 * _PADL, hidden), jnp.float32)],
    )

    out2d = pl.pallas_call(
        kernel,
        out_shape=jax.ShapeDtypeStruct((N * Ho * Wo, oup), x_nhwc.dtype),
        grid_spec=grid_spec,
        compiler_params=pltpu.CompilerParams(
            dimension_semantics=("parallel",),
            vmem_limit_bytes=vmem_limit,
        ),
    )(x2d, w1, s1, b1, wd, s2, b2, w3, s3, b3)

    return out2d.reshape(N, Ho, Wo, oup)


def inverted_residual_ref(x_nhwc, params, *, stride, expand_ratio):
    """Pure-JAX reference (lax convs) for correctness checking."""
    w1, s1, b1, wd, s2, b2, w3, s3, b3 = params
    hidden = wd.shape[1]
    oup = w3.shape[1]
    Cin = x_nhwc.shape[-1]
    use_res = (stride == 1) and (Cin == oup)
    dn = ("NHWC", "HWIO", "NHWC")

    y = x_nhwc
    if expand_ratio != 1:
        y = lax.conv_general_dilated(y, w1[None, None], (1, 1), "VALID",
                                     dimension_numbers=dn)
        y = jnp.clip(y * s1 + b1, 0.0, 6.0)
    wdk = wd.reshape(3, 3, hidden)[:, :, None, :]              # (3,3,1,hidden)
    y = lax.conv_general_dilated(y, wdk, (stride, stride), [(1, 1), (1, 1)],
                                 dimension_numbers=dn, feature_group_count=hidden)
    y = jnp.clip(y * s2 + b2, 0.0, 6.0)
    y = lax.conv_general_dilated(y, w3[None, None], (1, 1), "VALID",
                                 dimension_numbers=dn)
    y = y * s3 + b3
    if use_res:
        y = y + x_nhwc
    return y


def make_params(key, inp, oup, expand_ratio):
    """Deterministic synthetic weights; BN folded to (scale, shift) per channel."""
    hidden = int(inp * expand_ratio)
    eps = 1e-5
    ks = jax.random.split(key, 16)

    def bn(k0, k1, k2, k3, c):
        gamma = jax.random.uniform(k0, (1, c), jnp.float32, 0.5, 1.5)
        beta = 0.1 * jax.random.normal(k1, (1, c), jnp.float32)
        mean = 0.1 * jax.random.normal(k2, (1, c), jnp.float32)
        var = jax.random.uniform(k3, (1, c), jnp.float32, 0.5, 1.5)
        scale = gamma / jnp.sqrt(var + eps)
        shift = beta - mean * scale
        return scale, shift

    w1 = 0.1 * jax.random.normal(ks[0], (inp, hidden), jnp.float32)    # 1x1 expand (Cin, hidden)
    s1, b1 = bn(ks[1], ks[2], ks[3], ks[4], hidden)
    wd = 0.1 * jax.random.normal(ks[5], (9, hidden), jnp.float32)      # depthwise 3x3, tap-major
    s2, b2 = bn(ks[6], ks[7], ks[8], ks[9], hidden)
    w3 = 0.1 * jax.random.normal(ks[10], (hidden, oup), jnp.float32)   # 1x1 project (hidden, oup)
    s3, b3 = bn(ks[11], ks[12], ks[13], ks[14], oup)
    return (w1, s1, b1, wd, s2, b2, w3, s3, b3)


def _run_case(key, N, inp, H, W, oup, stride, expand_ratio):
    kx, kp = jax.random.split(key)
    x_nchw = jax.random.normal(kx, (N, inp, H, W), jnp.float32)        # PyTorch-style NCHW input
    params = make_params(kp, inp, oup, expand_ratio)
    x_nhwc = jnp.transpose(x_nchw, (0, 2, 3, 1))

    out_nhwc = inverted_residual_pallas(x_nhwc, params,
                                        stride=stride, expand_ratio=expand_ratio)
    out_nhwc = jax.block_until_ready(out_nhwc)
    ref_nhwc = inverted_residual_ref(x_nhwc, params,
                                     stride=stride, expand_ratio=expand_ratio)
    assert out_nhwc.shape == ref_nhwc.shape
    assert jnp.allclose(out_nhwc, ref_nhwc, rtol=1e-4, atol=1e-4), \
        f"mismatch vs JAX reference (stride={stride}, expand_ratio={expand_ratio})"
    return jnp.transpose(out_nhwc, (0, 3, 1, 2))                       # back to NCHW like the module


if __name__ == "__main__":
    key = jax.random.PRNGKey(0)
    k1, k2 = jax.random.split(key)

    # Primary: InvertedResidual(inp=4, oup=4, stride=1, expand_ratio=4) -> hidden=16, residual used.
    out_nchw = _run_case(k1, N=2, inp=4, H=16, W=16, oup=4, stride=1, expand_ratio=4)
    assert out_nchw.shape == (2, 4, 16, 16)

    # stride=2 block (no residual): validates the strided-tap depthwise branch.
    _ = _run_case(k2, N=2, inp=8, H=16, W=16, oup=16, stride=2, expand_ratio=4)

    print("KERNEL_OK")
</pallas_src>

<mosaic_0001>
module attributes {stable_mosaic.version = 11 : i64} {
  func.func @kernel(%arg0: i32, %arg1: memref<256x4xf32, #tpu.memory_space<vmem>>, %arg2: memref<4x16xf32, #tpu.memory_space<vmem>>, %arg3: memref<1x16xf32, #tpu.memory_space<vmem>>, %arg4: memref<1x16xf32, #tpu.memory_space<vmem>>, %arg5: memref<9x16xf32, #tpu.memory_space<vmem>>, %arg6: memref<1x16xf32, #tpu.memory_space<vmem>>, %arg7: memref<1x16xf32, #tpu.memory_space<vmem>>, %arg8: memref<16x4xf32, #tpu.memory_space<vmem>>, %arg9: memref<1x4xf32, #tpu.memory_space<vmem>>, %arg10: memref<1x4xf32, #tpu.memory_space<vmem>>, %arg11: memref<256x4xf32, #tpu.memory_space<vmem>>, %arg12: memref<1x18x32x16xf32, #tpu.memory_space<vmem>>) attributes {dimension_semantics = [#tpu.dimension_semantics<parallel>], iteration_bounds = array<i64: 2>, scalar_prefetch = 0 : i64, scratch_operands = 1 : i64, tpu.core_type = #tpu.core_type<tc>, window_params = [{transform_indices = @transform_0, window_bounds = array<i64: 256, 4>}, {pipeline_mode = #tpu.pipeline_mode<synchronous>, transform_indices = @transform_1, window_bounds = array<i64: 4, 16>}, {pipeline_mode = #tpu.pipeline_mode<synchronous>, transform_indices = @transform_2, window_bounds = array<i64: 1, 16>}, {pipeline_mode = #tpu.pipeline_mode<synchronous>, transform_indices = @transform_3, window_bounds = array<i64: 1, 16>}, {pipeline_mode = #tpu.pipeline_mode<synchronous>, transform_indices = @transform_4, window_bounds = array<i64: 9, 16>}, {pipeline_mode = #tpu.pipeline_mode<synchronous>, transform_indices = @transform_5, window_bounds = array<i64: 1, 16>}, {pipeline_mode = #tpu.pipeline_mode<synchronous>, transform_indices = @transform_6, window_bounds = array<i64: 1, 16>}, {pipeline_mode = #tpu.pipeline_mode<synchronous>, transform_indices = @transform_7, window_bounds = array<i64: 16, 4>}, {pipeline_mode = #tpu.pipeline_mode<synchronous>, transform_indices = @transform_8, window_bounds = array<i64: 1, 4>}, {pipeline_mode = #tpu.pipeline_mode<synchronous>, transform_indices = @transform_9, window_bounds = array<i64: 1, 4>}, {transform_indices = @transform_10, window_bounds = array<i64: 256, 4>}]} {
    %c0 = arith.constant 0 : index
    %c0_0 = arith.constant 0 : index
    %0 = vector.load %arg1[%c0, %c0_0] : memref<256x4xf32, #tpu.memory_space<vmem>>, vector<256x4xf32>
    %c0_1 = arith.constant 0 : index
    %c0_2 = arith.constant 0 : index
    %1 = vector.load %arg2[%c0_1, %c0_2] : memref<4x16xf32, #tpu.memory_space<vmem>>, vector<4x16xf32>
    %2 = vector.extract_strided_slice %0 {offsets = [0, 0], sizes = [256, 1], strides = [1, 1]} : vector<256x4xf32> to vector<256x1xf32>
    %3 = vector.extract_strided_slice %1 {offsets = [0, 0], sizes = [1, 16], strides = [1, 1]} : vector<4x16xf32> to vector<1x16xf32>
    %4 = vector.broadcast %2 : vector<256x1xf32> to vector<256x16xf32>
    %5 = vector.broadcast %3 : vector<1x16xf32> to vector<256x16xf32>
    %6 = arith.mulf %4, %5 : vector<256x16xf32>
    %7 = vector.extract_strided_slice %0 {offsets = [0, 1], sizes = [256, 1], strides = [1, 1]} : vector<256x4xf32> to vector<256x1xf32>
    %8 = vector.extract_strided_slice %1 {offsets = [1, 0], sizes = [1, 16], strides = [1, 1]} : vector<4x16xf32> to vector<1x16xf32>
    %9 = vector.broadcast %7 : vector<256x1xf32> to vector<256x16xf32>
    %10 = vector.broadcast %8 : vector<1x16xf32> to vector<256x16xf32>
    %11 = arith.mulf %9, %10 : vector<256x16xf32>
    %12 = arith.addf %6, %11 : vector<256x16xf32>
    %13 = vector.extract_strided_slice %0 {offsets = [0, 2], sizes = [256, 1], strides = [1, 1]} : vector<256x4xf32> to vector<256x1xf32>
    %14 = vector.extract_strided_slice %1 {offsets = [2, 0], sizes = [1, 16], strides = [1, 1]} : vector<4x16xf32> to vector<1x16xf32>
    %15 = vector.broadcast %13 : vector<256x1xf32> to vector<256x16xf32>
    %16 = vector.broadcast %14 : vector<1x16xf32> to vector<256x16xf32>
    %17 = arith.mulf %15, %16 : vector<256x16xf32>
    %18 = arith.addf %12, %17 : vector<256x16xf32>
    %19 = vector.extract_strided_slice %0 {offsets = [0, 3], sizes = [256, 1], strides = [1, 1]} : vector<256x4xf32> to vector<256x1xf32>
    %20 = vector.extract_strided_slice %1 {offsets = [3, 0], sizes = [1, 16], strides = [1, 1]} : vector<4x16xf32> to vector<1x16xf32>
    %21 = vector.broadcast %19 : vector<256x1xf32> to vector<256x16xf32>
    %22 = vector.broadcast %20 : vector<1x16xf32> to vector<256x16xf32>
    %23 = arith.mulf %21, %22 : vector<256x16xf32>
    %24 = arith.addf %18, %23 : vector<256x16xf32>
    %c0_3 = arith.constant 0 : index
    %c0_4 = arith.constant 0 : index
    %25 = vector.load %arg3[%c0_3, %c0_4] : memref<1x16xf32, #tpu.memory_space<vmem>>, vector<1x16xf32>
    %26 = vector.broadcast %25 : vector<1x16xf32> to vector<256x16xf32>
    %27 = arith.mulf %24, %26 : vector<256x16xf32>
    %c0_5 = arith.constant 0 : index
    %c0_6 = arith.constant 0 : index
    %28 = vector.load %arg4[%c0_5, %c0_6] : memref<1x16xf32, #tpu.memory_space<vmem>>, vector<1x16xf32>
    %29 = vector.broadcast %28 : vector<1x16xf32> to vector<256x16xf32>
    %30 = arith.addf %27, %29 : vector<256x16xf32>
    %cst = arith.constant 0.000000e+00 : f32
    %cst_7 = arith.constant 6.000000e+00 : f32
    %31 = vector.broadcast %cst : f32 to vector<256x16xf32>
    %32 = arith.maximumf %31, %30 : vector<256x16xf32>
    %33 = vector.broadcast %cst_7 : f32 to vector<256x16xf32>
    %34 = arith.minimumf %33, %32 : vector<256x16xf32>
    %cst_8 = arith.constant 0.000000e+00 : f32
    %35 = vector.broadcast %cst_8 : f32 to vector<1x1x32x16xf32>
    %c0_9 = arith.constant 0 : index
    %c0_10 = arith.constant 0 : index
    %c0_11 = arith.constant 0 : index
    %c0_12 = arith.constant 0 : index
    %36 = vector.load %arg12[%c0_9, %c0_10, %c0_11, %c0_12] : memref<1x18x32x16xf32, #tpu.memory_space<vmem>>, vector<1x1x32x16xf32>
    tpu.vector_store %arg12[%c0_9, %c0_10, %c0_11, %c0_12], %35 {strides = array<i32>} : memref<1x18x32x16xf32, #tpu.memory_space<vmem>>, vector<1x1x32x16xf32>,
    %cst_13 = arith.constant 0.000000e+00 : f32
    %37 = vector.broadcast %cst_13 : f32 to vector<1x1x32x16xf32>
    %c0_14 = arith.constant 0 : index
    %c17 = arith.constant 17 : index
    %c0_15 = arith.constant 0 : index
    %c0_16 = arith.constant 0 : index
    %38 = vector.load %arg12[%c0_14, %c17, %c0_15, %c0_16] : memref<1x18x32x16xf32, #tpu.memory_space<vmem>>, vector<1x1x32x16xf32>
    tpu.vector_store %arg12[%c0_14, %c17, %c0_15, %c0_16], %37 {strides = array<i32>} : memref<1x18x32x16xf32, #tpu.memory_space<vmem>>, vector<1x1x32x16xf32>,
    %cst_17 = arith.constant 0.000000e+00 : f32
    %39 = vector.broadcast %cst_17 : f32 to vector<1x18x8x16xf32>
    %c0_18 = arith.constant 0 : index
    %c0_19 = arith.constant 0 : index
    %c0_20 = arith.constant 0 : index
    %c0_21 = arith.constant 0 : index
    %40 = vector.load %arg12[%c0_18, %c0_19, %c0_20, %c0_21] : memref<1x18x32x16xf32, #tpu.memory_space<vmem>>, vector<1x18x8x16xf32>
    tpu.vector_store %arg12[%c0_18, %c0_19, %c0_20, %c0_21], %39 {strides = array<i32>} : memref<1x18x32x16xf32, #tpu.memory_space<vmem>>, vector<1x18x8x16xf32>,
    %cst_22 = arith.constant 0.000000e+00 : f32
    %41 = vector.broadcast %cst_22 : f32 to vector<1x18x8x16xf32>
    %c0_23 = arith.constant 0 : index
    %c0_24 = arith.constant 0 : index
    %c24 = arith.constant 24 : index
    %c0_25 = arith.constant 0 : index
    %42 = vector.load %arg12[%c0_23, %c0_24, %c24, %c0_25] : memref<1x18x32x16xf32, #tpu.memory_space<vmem>>, vector<1x18x8x16xf32>
    tpu.vector_store %arg12[%c0_23, %c0_24, %c24, %c0_25], %41 {strides = array<i32>} : memref<1x18x32x16xf32, #tpu.memory_space<vmem>>, vector<1x18x8x16xf32>,
    %43 = vector.shape_cast %34 : vector<256x16xf32> to vector<1x16x16x16xf32>
    %c0_26 = arith.constant 0 : index
    %c1 = arith.constant 1 : index
    %c8 = arith.constant 8 : index
    %c0_27 = arith.constant 0 : index
    %44 = vector.load %arg12[%c0_26, %c1, %c8, %c0_27] : memref<1x18x32x16xf32, #tpu.memory_space<vmem>>, vector<1x16x16x16xf32>
    tpu.vector_store %arg12[%c0_26, %c1, %c8, %c0_27], %43 {strides = array<i32>} : memref<1x18x32x16xf32, #tpu.memory_space<vmem>>, vector<1x16x16x16xf32>,
    %c0_28 = arith.constant 0 : index
    %c0_29 = arith.constant 0 : index
    %45 = vector.load %arg5[%c0_28, %c0_29] : memref<9x16xf32, #tpu.memory_space<vmem>>, vector<9x16xf32>
    %c0_30 = arith.constant 0 : index
    %c0_31 = arith.constant 0 : index
    %c7 = arith.constant 7 : index
    %c0_32 = arith.constant 0 : index
    %46 = vector.load %arg12[%c0_30, %c0_31, %c7, %c0_32] : memref<1x18x32x16xf32, #tpu.memory_space<vmem>>, vector<1x18x16x16xf32>
    %c0_33 = arith.constant 0 : index
    %c0_34 = arith.constant 0 : index
    %c8_35 = arith.constant 8 : index
    %c0_36 = arith.constant 0 : index
    %47 = vector.load %arg12[%c0_33, %c0_34, %c8_35, %c0_36] : memref<1x18x32x16xf32, #tpu.memory_space<vmem>>, vector<1x18x16x16xf32>
    %c0_37 = arith.constant 0 : index
    %c0_38 = arith.constant 0 : index
    %c9 = arith.constant 9 : index
    %c0_39 = arith.constant 0 : index
    %48 = vector.load %arg12[%c0_37, %c0_38, %c9, %c0_39] : memref<1x18x32x16xf32, #tpu.memory_space<vmem>>, vector<1x18x16x16xf32>
    %49 = vector.extract_strided_slice %46 {offsets = [0, 0, 0, 0], sizes = [1, 16, 16, 16], strides = [1, 1, 1, 1]} : vector<1x18x16x16xf32> to vector<1x16x16x16xf32>
    %50 = vector.extract_strided_slice %45 {offsets = [0, 0], sizes = [1, 16], strides = [1, 1]} : vector<9x16xf32> to vector<1x16xf32>
    %51 = vector.shape_cast %50 : vector<1x16xf32> to vector<1x1x1x16xf32>
    %52 = vector.broadcast %51 : vector<1x1x1x16xf32> to vector<1x16x16x16xf32>
    %53 = arith.mulf %49, %52 : vector<1x16x16x16xf32>
    %54 = vector.extract_strided_slice %47 {offsets = [0, 0, 0, 0], sizes = [1, 16, 16, 16], strides = [1, 1, 1, 1]} : vector<1x18x16x16xf32> to vector<1x16x16x16xf32>
    %55 = vector.extract_strided_slice %45 {offsets = [1, 0], sizes = [1, 16], strides = [1, 1]} : vector<9x16xf32> to vector<1x16xf32>
    %56 = vector.shape_cast %55 : vector<1x16xf32> to vector<1x1x1x16xf32>
    %57 = vector.broadcast %56 : vector<1x1x1x16xf32> to vector<1x16x16x16xf32>
    %58 = arith.mulf %54, %57 : vector<1x16x16x16xf32>
    %59 = arith.addf %53, %58 : vector<1x16x16x16xf32>
    %60 = vector.extract_strided_slice %48 {offsets = [0, 0, 0, 0], sizes = [1, 16, 16, 16], strides = [1, 1, 1, 1]} : vector<1x18x16x16xf32> to vector<1x16x16x16xf32>
    %61 = vector.extract_strided_slice %45 {offsets = [2, 0], sizes = [1, 16], strides = [1, 1]} : vector<9x16xf32> to vector<1x16xf32>
    %62 = vector.shape_cast %61 : vector<1x16xf32> to vector<1x1x1x16xf32>
    %63 = vector.broadcast %62 : vector<1x1x1x16xf32> to vector<1x16x16x16xf32>
    %64 = arith.mulf %60, %63 : vector<1x16x16x16xf32>
    %65 = arith.addf %59, %64 : vector<1x16x16x16xf32>
    %66 = vector.extract_strided_slice %46 {offsets = [0, 1, 0, 0], sizes = [1, 16, 16, 16], strides = [1, 1, 1, 1]} : vector<1x18x16x16xf32> to vector<1x16x16x16xf32>
    %67 = vector.extract_strided_slice %45 {offsets = [3, 0], sizes = [1, 16], strides = [1, 1]} : vector<9x16xf32> to vector<1x16xf32>
    %68 = vector.shape_cast %67 : vector<1x16xf32> to vector<1x1x1x16xf32>
    %69 = vector.broadcast %68 : vector<1x1x1x16xf32> to vector<1x16x16x16xf32>
    %70 = arith.mulf %66, %69 : vector<1x16x16x16xf32>
    %71 = arith.addf %65, %70 : vector<1x16x16x16xf32>
    %72 = vector.extract_strided_slice %47 {offsets = [0, 1, 0, 0], sizes = [1, 16, 16, 16], strides = [1, 1, 1, 1]} : vector<1x18x16x16xf32> to vector<1x16x16x16xf32>
    %73 = vector.extract_strided_slice %45 {offsets = [4, 0], sizes = [1, 16], strides = [1, 1]} : vector<9x16xf32> to vector<1x16xf32>
    %74 = vector.shape_cast %73 : vector<1x16xf32> to vector<1x1x1x16xf32>
    %75 = vector.broadcast %74 : vector<1x1x1x16xf32> to vector<1x16x16x16xf32>
    %76 = arith.mulf %72, %75 : vector<1x16x16x16xf32>
    %77 = arith.addf %71, %76 : vector<1x16x16x16xf32>
    %78 = vector.extract_strided_slice %48 {offsets = [0, 1, 0, 0], sizes = [1, 16, 16, 16], strides = [1, 1, 1, 1]} : vector<1x18x16x16xf32> to vector<1x16x16x16xf32>
    %79 = vector.extract_strided_slice %45 {offsets = [5, 0], sizes = [1, 16], strides = [1, 1]} : vector<9x16xf32> to vector<1x16xf32>
    %80 = vector.shape_cast %79 : vector<1x16xf32> to vector<1x1x1x16xf32>
    %81 = vector.broadcast %80 : vector<1x1x1x16xf32> to vector<1x16x16x16xf32>
    %82 = arith.mulf %78, %81 : vector<1x16x16x16xf32>
    %83 = arith.addf %77, %82 : vector<1x16x16x16xf32>
    %84 = vector.extract_strided_slice %46 {offsets = [0, 2, 0, 0], sizes = [1, 16, 16, 16], strides = [1, 1, 1, 1]} : vector<1x18x16x16xf32> to vector<1x16x16x16xf32>
    %85 = vector.extract_strided_slice %45 {offsets = [6, 0], sizes = [1, 16], strides = [1, 1]} : vector<9x16xf32> to vector<1x16xf32>
    %86 = vector.shape_cast %85 : vector<1x16xf32> to vector<1x1x1x16xf32>
    %87 = vector.broadcast %86 : vector<1x1x1x16xf32> to vector<1x16x16x16xf32>
    %88 = arith.mulf %84, %87 : vector<1x16x16x16xf32>
    %89 = arith.addf %83, %88 : vector<1x16x16x16xf32>
    %90 = vector.extract_strided_slice %47 {offsets = [0, 2, 0, 0], sizes = [1, 16, 16, 16], strides = [1, 1, 1, 1]} : vector<1x18x16x16xf32> to vector<1x16x16x16xf32>
    %91 = vector.extract_strided_slice %45 {offsets = [7, 0], sizes = [1, 16], strides = [1, 1]} : vector<9x16xf32> to vector<1x16xf32>
    %92 = vector.shape_cast %91 : vector<1x16xf32> to vector<1x1x1x16xf32>
    %93 = vector.broadcast %92 : vector<1x1x1x16xf32> to vector<1x16x16x16xf32>
    %94 = arith.mulf %90, %93 : vector<1x16x16x16xf32>
    %95 = arith.addf %89, %94 : vector<1x16x16x16xf32>
    %96 = vector.extract_strided_slice %48 {offsets = [0, 2, 0, 0], sizes = [1, 16, 16, 16], strides = [1, 1, 1, 1]} : vector<1x18x16x16xf32> to vector<1x16x16x16xf32>
    %97 = vector.extract_strided_slice %45 {offsets = [8, 0], sizes = [1, 16], strides = [1, 1]} : vector<9x16xf32> to vector<1x16xf32>
    %98 = vector.shape_cast %97 : vector<1x16xf32> to vector<1x1x1x16xf32>
    %99 = vector.broadcast %98 : vector<1x1x1x16xf32> to vector<1x16x16x16xf32>
    %100 = arith.mulf %96, %99 : vector<1x16x16x16xf32>
    %101 = arith.addf %95, %100 : vector<1x16x16x16xf32>
    %c0_40 = arith.constant 0 : index
    %c0_41 = arith.constant 0 : index
    %102 = vector.load %arg6[%c0_40, %c0_41] : memref<1x16xf32, #tpu.memory_space<vmem>>, vector<1x16xf32>
    %103 = vector.shape_cast %102 : vector<1x16xf32> to vector<1x1x1x16xf32>
    %104 = vector.broadcast %103 : vector<1x1x1x16xf32> to vector<1x16x16x16xf32>
    %105 = arith.mulf %101, %104 : vector<1x16x16x16xf32>
    %c0_42 = arith.constant 0 : index
    %c0_43 = arith.constant 0 : index
    %106 = vector.load %arg7[%c0_42, %c0_43] : memref<1x16xf32, #tpu.memory_space<vmem>>, vector<1x16xf32>
    %107 = vector.shape_cast %106 : vector<1x16xf32> to vector<1x1x1x16xf32>
    %108 = vector.broadcast %107 : vector<1x1x1x16xf32> to vector<1x16x16x16xf32>
    %109 = arith.addf %105, %108 : vector<1x16x16x16xf32>
    %cst_44 = arith.constant 0.000000e+00 : f32
    %cst_45 = arith.constant 6.000000e+00 : f32
    %110 = vector.broadcast %cst_44 : f32 to vector<1x16x16x16xf32>
    %111 = arith.maximumf %110, %109 : vector<1x16x16x16xf32>
    %112 = vector.broadcast %cst_45 : f32 to vector<1x16x16x16xf32>
    %113 = arith.minimumf %112, %111 : vector<1x16x16x16xf32>
    %114 = vector.shape_cast %113 : vector<1x16x16x16xf32> to vector<256x16xf32>
    %c0_46 = arith.constant 0 : index
    %c0_47 = arith.constant 0 : index
    %115 = vector.load %arg8[%c0_46, %c0_47] : memref<16x4xf32, #tpu.memory_space<vmem>>, vector<16x4xf32>
    %cst_48 = arith.constant dense<0.000000e+00> : vector<256x4xf32>
    %116 = tpu.matmul %114, %115, %cst_48 {dimension_numbers = #tpu.dot_dimension_numbers<[1], [0], [0], [1], [0, 0, 1, 1], [], []>} : vector<256x16xf32>, vector<16x4xf32>, vector<256x4xf32> -> vector<256x4xf32>
    %c0_49 = arith.constant 0 : index
    %c0_50 = arith.constant 0 : index
    %117 = vector.load %arg9[%c0_49, %c0_50] : memref<1x4xf32, #tpu.memory_space<vmem>>, vector<1x4xf32>
    %118 = vector.broadcast %117 : vector<1x4xf32> to vector<256x4xf32>
    %119 = arith.mulf %116, %118 : vector<256x4xf32>
    %c0_51 = arith.constant 0 : index
    %c0_52 = arith.constant 0 : index
    %120 = vector.load %arg10[%c0_51, %c0_52] : memref<1x4xf32, #tpu.memory_space<vmem>>, vector<1x4xf32>
    %121 = vector.broadcast %120 : vector<1x4xf32> to vector<256x4xf32>
    %122 = arith.addf %119, %121 : vector<256x4xf32>
    %c0_53 = arith.constant 0 : index
    %c0_54 = arith.constant 0 : index
    %123 = vector.load %arg1[%c0_53, %c0_54] : memref<256x4xf32, #tpu.memory_space<vmem>>, vector<256x4xf32>
    %124 = arith.addf %122, %123 : vector<256x4xf32>
    %c0_55 = arith.constant 0 : index
    %c0_56 = arith.constant 0 : index
    %125 = vector.load %arg11[%c0_55, %c0_56] : memref<256x4xf32, #tpu.memory_space<vmem>>, vector<256x4xf32>
    tpu.vector_store %arg11[%c0_55, %c0_56], %124 {strides = array<i32>} : memref<256x4xf32, #tpu.memory_space<vmem>>, vector<256x4xf32>,
    return
  }
  func.func @transform_0(%arg0: i32) -> (i32, i32) {
    %c0_i32 = arith.constant 0 : i32
    %c0_i32_0 = arith.constant 0 : i32
    return %arg0, %c0_i32 : i32, i32
  }
  func.func @transform_1(%arg0: i32) -> (i32, i32) {
    %c0_i32 = arith.constant 0 : i32
    %c0_i32_0 = arith.constant 0 : i32
    %c0_i32_1 = arith.constant 0 : i32
    return %c0_i32, %c0_i32_0 : i32, i32
  }
  func.func @transform_2(%arg0: i32) -> (i32, i32) {
    %c0_i32 = arith.constant 0 : i32
    %c0_i32_0 = arith.constant 0 : i32
    %c0_i32_1 = arith.constant 0 : i32
    return %c0_i32, %c0_i32_0 : i32, i32
  }
  func.func @transform_3(%arg0: i32) -> (i32, i32) {
    %c0_i32 = arith.constant 0 : i32
    %c0_i32_0 = arith.constant 0 : i32
    %c0_i32_1 = arith.constant 0 : i32
    return %c0_i32, %c0_i32_0 : i32, i32
  }
  func.func @transform_4(%arg0: i32) -> (i32, i32) {
    %c0_i32 = arith.constant 0 : i32
    %c0_i32_0 = arith.constant 0 : i32
    %c0_i32_1 = arith.constant 0 : i32
    return %c0_i32, %c0_i32_0 : i32, i32
  }
  func.func @transform_5(%arg0: i32) -> (i32, i32) {
    %c0_i32 = arith.constant 0 : i32
    %c0_i32_0 = arith.constant 0 : i32
    %c0_i32_1 = arith.constant 0 : i32
    return %c0_i32, %c0_i32_0 : i32, i32
  }
  func.func @transform_6(%arg0: i32) -> (i32, i32) {
    %c0_i32 = arith.constant 0 : i32
    %c0_i32_0 = arith.constant 0 : i32
    %c0_i32_1 = arith.constant 0 : i32
    return %c0_i32, %c0_i32_0 : i32, i32
  }
  func.func @transform_7(%arg0: i32) -> (i32, i32) {
    %c0_i32 = arith.constant 0 : i32
    %c0_i32_0 = arith.constant 0 : i32
    %c0_i32_1 = arith.constant 0 : i32
    return %c0_i32, %c0_i32_0 : i32, i32
  }
  func.func @transform_8(%arg0: i32) -> (i32, i32) {
    %c0_i32 = arith.constant 0 : i32
    %c0_i32_0 = arith.constant 0 : i32
    %c0_i32_1 = arith.constant 0 : i32
    return %c0_i32, %c0_i32_0 : i32, i32
  }
  func.func @transform_9(%arg0: i32) -> (i32, i32) {
    %c0_i32 = arith.constant 0 : i32
    %c0_i32_0 = arith.constant 0 : i32
    %c0_i32_1 = arith.constant 0 : i32
    return %c0_i32, %c0_i32_0 : i32, i32
  }
  func.func @transform_10(%arg0: i32) -> (i32, i32) {
    %c0_i32 = arith.constant 0 : i32
    %c0_i32_0 = arith.constant 0 : i32
    return %arg0, %c0_i32 : i32, i32
  }
}

</mosaic_0001>

<bundles_post_ra>
// kernel: tpu_custom_call.1
= control target key start
LH: loop header
LB: loop body
LE: loop exit
PB: predicated region body
PF: predicated region fallthrough
CT: control target
= control target key end

     0   :  { %s2822_s13 = smov 0   ;;  %s4777_s0 = inlined_call_operand.vmem [shape: f32[512,4], index: 0, kind: input, shape index: {}]   ;;  %s4778_s1 = inlined_call_operand.vmem [shape: f32[4,16], index: 1, kind: input, shape index: {}]   ;;  %s4779_s2 = inlined_call_operand.vmem [shape: f32[1,16], index: 2, kind: input, shape index: {}]   ;;  %s4780_s3 = inlined_call_operand.vmem [shape: f32[1,16], index: 3, kind: input, shape index: {}]   ;;  %s4781_s4 = inlined_call_operand.vmem [shape: f32[9,16], index: 4, kind: input, shape index: {}]   ;;  %s4782_s5 = inlined_call_operand.vmem [shape: f32[1,16], index: 5, kind: input, shape index: {}]   ;;  %s4783_s6 = inlined_call_operand.vmem [shape: f32[1,16], index: 6, kind: input, shape index: {}]   ;;  %s4784_s7 = inlined_call_operand.vmem [shape: f32[16,4], index: 7, kind: input, shape index: {}]   ;;  %s4785_s8 = inlined_call_operand.vmem [shape: f32[1,4], index: 8, kind: input, shape index: {}]   ;;  %s4786_s9 = inlined_call_operand.vmem [shape: f32[1,4], index: 9, kind: input, shape index: {}]   ;;  %s4787_s10 = inlined_call_operand.vmem [shape: f32[512,4], index: 10, kind: output, shape index: {}]  }
   0x1 LB: > { %s2618_s14 = sadd.s32 4294967295, %s2760_s13   ;;  %p2622_p0 = scmp.ge.s32.totalorder %s2760_s13, 1  ;;  %s2760_s13 = sphi %s2822_s13, %s20_s13  }
   0x2   : > { %p313_p1 = scmp.lt.s32.totalorder %s2760_s13, 3 }
   0x4   : > { %p314_p2 = pnand %p2622_p0, %p313_p1 }
   0x6   : > { %317 = sbr.rel (%p314_p2) target bundleno = 749 (0x2ed), region = 60 }
   0xb   : > { %s2623_s15 = sshll.u32 %s2618_s14, 5  ;;  %v2762_v0 = vmov 0   ;;  %v2763_v33 = vmov 1   ;;  %v3046_v58 = vld [vmem:[%s4778_s1] sm:$0xf]  ;;  %v4799_v61 = vmov 2  }
   0xc   : > { %2682 = vset.pattern.permute.xlu2 %v2762_v0  ;;  %2681 = vset.pattern.permute.xlu1 %v2762_v0  ;;  %p352_p3 = scmp.lt.s32.totalorder %s2623_s15, 63  ;;  %v3049_v59 = vperm.slane %v3046_v58, 0  ;;  %v3058_v63 = vperm.slane %v3046_v58, 1  ;;  %vm1304_vm0 = vcmask 130048   ;;  %vm2529_vm1 = vcmask 31744  }
   0xd   : > { %2680 = vset.pattern.permute.xlu0 %v2762_v0 }
   0xe   : > { %s4934_s15 = smov (!%p352_p3, %s2623_s15), 63 }
   0xf   : > { %s2624_s16 = sshll.u32 %s4934_s15, 3 }
  0x10   : > { %s2838_s19 = scalar_lea.vmem %s4777_s0, %s2624_s16  ;;  %s4604_s22 = scalar_lea.vmem %s4787_s10, %s2624_s16 }
  0x11   : > { %v2841_v1 = vld [vmem:[%s2838_s19 + $0x20] sm:$0xff]  ;;  %v2844_v2 = vld [vmem:[%s2838_s19 + $0x10] sm:$0xff]  ;;  %v2853_v4 = vld [vmem:[%s2838_s19 + $0x28] sm:$0xff] }
  0x12   : > { %4812 = vst [vmem:[#allocation3_spill] sm:$0xff] %v2841_v1  ;;  %v2847_v3 = vld [vmem:[%s2838_s19] sm:$0xff]  ;;  %418 = vperm.xlu2 %2682, %v2841_v1   ;;  %408 = vperm.xlu1 %2681, %v2844_v2   ;;  %v2856_v5 = vld [vmem:[%s2838_s19 + $0x18] sm:$0xff]  ;;  %v2859_v6 = vld [vmem:[%s2838_s19 + $0x8] sm:$0xff] }
  0x13   : > { %398 = vperm.xlu0 %2680, %v2847_v3   ;;  %4813 = vst [vmem:[#allocation4_spill] sm:$0xff] %v2853_v4  ;;  %v2865_v7 = vld [vmem:[%s2838_s19 + $0x40] sm:$0xff]  ;;  %v2868_v8 = vld [vmem:[%s2838_s19 + $0x38] sm:$0xff]  ;;  %v2871_v9 = vld [vmem:[%s2838_s19 + $0x30] sm:$0xff] }
  0x14   : > { %4814 = vst [vmem:[#allocation5_spill] sm:$0xff] %v2856_v5  ;;  %v2877_v10 = vld [vmem:[%s2838_s19 + $0x58] sm:$0xff]  ;;  %v2880_v11 = vld [vmem:[%s2838_s19 + $0x50] sm:$0xff]  ;;  %v2883_v12 = vld [vmem:[%s2838_s19 + $0x48] sm:$0xff] }
  0x15   : > { %4815 = vst [vmem:[#allocation6_spill] sm:$0xff] %v2859_v6  ;;  %v2889_v13 = vld [vmem:[%s2838_s19 + $0x70] sm:$0xff]  ;;  %v2892_v14 = vld [vmem:[%s2838_s19 + $0x68] sm:$0xff]  ;;  %v2895_v15 = vld [vmem:[%s2838_s19 + $0x60] sm:$0xff] }
  0x16   : > { %4816 = vst [vmem:[#allocation7_spill] sm:$0xff] %v2877_v10  ;;  %v2901_v16 = vld [vmem:[%s2838_s19 + $0x88] sm:$0xff]  ;;  %v2904_v17 = vld [vmem:[%s2838_s19 + $0x80] sm:$0xff]  ;;  %v2907_v18 = vld [vmem:[%s2838_s19 + $0x78] sm:$0xff] }
  0x17   : > { %4817 = vst [vmem:[#allocation8_spill] sm:$0xff] %v2880_v11  ;;  %v2913_v19 = vld [vmem:[%s2838_s19 + $0xa0] sm:$0xff]  ;;  %v2916_v20 = vld [vmem:[%s2838_s19 + $0x98] sm:$0xff]  ;;  %v2919_v21 = vld [vmem:[%s2838_s19 + $0x90] sm:$0xff] }
  0x18   : > { %4818 = vst [vmem:[#allocation9_spill] sm:$0xff] %v2883_v12  ;;  %v2925_v22 = vld [vmem:[%s2838_s19 + $0xb8] sm:$0xff]  ;;  %v2928_v23 = vld [vmem:[%s2838_s19 + $0xb0] sm:$0xff]  ;;  %v2931_v24 = vld [vmem:[%s2838_s19 + $0xa8] sm:$0xff] }
  0x19   : > { %4819 = vst [vmem:[#allocation10_spill] sm:$0xff] %v2895_v15  ;;  %v2937_v25 = vld [vmem:[%s2838_s19 + $0xd0] sm:$0xff]  ;;  %v2940_v26 = vld [vmem:[%s2838_s19 + $0xc8] sm:$0xff]  ;;  %v2943_v27 = vld [vmem:[%s2838_s19 + $0xc0] sm:$0xff] }
  0x1a   : > { %423 = vperm.xlu2 %2682, %v2853_v4   ;;  %413 = vperm.xlu1 %2681, %v2856_v5   ;;  %4820 = vst [vmem:[#allocation11_spill] sm:$0xff] %v2913_v19  ;;  %v2949_v28 = vld [vmem:[%s2838_s19 + $0xe8] sm:$0xff]  ;;  %v2952_v29 = vld [vmem:[%s2838_s19 + $0xe0] sm:$0xff]  ;;  %v2955_v30 = vld [vmem:[%s2838_s19 + $0xd8] sm:$0xff] }
  0x1b   : > { %403 = vperm.xlu0 %2680, %v2859_v6   ;;  %4821 = vst [vmem:[#allocation12_spill] sm:$0xff] %v2916_v20  ;;  %v2961_v31 = vld [vmem:[%s2838_s19 + $0xf8] sm:$0xff]  ;;  %v2964_v32 = vld [vmem:[%s2838_s19 + $0xf0] sm:$0xff] }
  0x1c   : > { %4822 = vst [vmem:[#allocation13_spill] sm:$0xff] %v2931_v24 }
  0x1d   : > { %4823 = vst [vmem:[#allocation14_spill] sm:$0xff] %v2949_v28 }
  0x1e   : > { %4824 = vst [vmem:[#allocation15_spill] sm:$0xff] %v2961_v31 }
  0x1f   : > { %4825 = vst [vmem:[#allocation16_spill] sm:$0xff] %v2964_v32 }
  0x22   : > { %438 = vperm.xlu2 %2682, %v2865_v7   ;;  %433 = vperm.xlu1 %2681, %v2868_v8  }
  0x23   : > { %428 = vperm.xlu0 %2680, %v2871_v9  }
  0x2a   : > { %453 = vperm.xlu2 %2682, %v2877_v10   ;;  %448 = vperm.xlu1 %2681, %v2880_v11  }
  0x2b   : > { %443 = vperm.xlu0 %2680, %v2883_v12  }
  0x32   : > { %468 = vperm.xlu2 %2682, %v2889_v13   ;;  %463 = vperm.xlu1 %2681, %v2892_v14  }
  0x33   : > { %458 = vperm.xlu0 %2680, %v2895_v15  }
  0x3a   : > { %483 = vperm.xlu2 %2682, %v2901_v16   ;;  %478 = vperm.xlu1 %2681, %v2904_v17  }
  0x3b   : > { %473 = vperm.xlu0 %2680, %v2907_v18  }
  0x42   : > { %498 = vperm.xlu2 %2682, %v2913_v19   ;;  %493 = vperm.xlu1 %2681, %v2916_v20  }
  0x43   : > { %488 = vperm.xlu0 %2680, %v2919_v21  }
  0x4a   : > { %513 = vperm.xlu2 %2682, %v2925_v22   ;;  %508 = vperm.xlu1 %2681, %v2928_v23  }
  0x4b   : > { %503 = vperm.xlu0 %2680, %v2931_v24  }
  0x52   : > { %528 = vperm.xlu2 %2682, %v2937_v25   ;;  %523 = vperm.xlu1 %2681, %v2940_v26  }
  0x53   : > { %518 = vperm.xlu0 %2680, %v2943_v27  }
  0x5a   : > { %543 = vperm.xlu2 %2682, %v2949_v28   ;;  %538 = vperm.xlu1 %2681, %v2952_v29  }
  0x5b   : > { %533 = vperm.xlu0 %2680, %v2955_v30  }
  0x62   : > { %2683 = vset.pattern.permute.xlu2 %v2763_v33  ;;  %553 = vperm.xlu1 %2681, %v2961_v31  }
  0x63   : > { %548 = vperm.xlu0 %2680, %v2964_v32   ;;  %590 = vperm.xlu2 %2683, %v2847_v3  }
  0x6a   : > { %2685 = vset.pattern.permute.xlu1 %v2763_v33 }
  0x6b   : > { %2684 = vset.pattern.permute.xlu0 %v2763_v33  ;;  %598 = vperm.xlu1 %2685, %v2844_v2  }
  0x6c   : > { %602 = vperm.xlu2 %2683, %v2856_v5   ;;  %594 = vperm.xlu0 %2684, %v2859_v6   ;;  %v2972_v34 = vpop.permute.xlu2 %418 }
  0x73   : > { %606 = vperm.xlu1 %2685, %v2841_v1  }
  0x74   : > { %610 = vperm.xlu2 %2683, %v2853_v4   ;;  %614 = vperm.xlu0 %2684, %v2871_v9   ;;  %v2977_v35 = vpop.permute.xlu2 %423 }
  0x7b   : > { %618 = vperm.xlu1 %2685, %v2868_v8  }
  0x7c   : > { %622 = vperm.xlu2 %2683, %v2865_v7   ;;  %626 = vperm.xlu0 %2684, %v2883_v12   ;;  %v2982_v36 = vpop.permute.xlu2 %438 }
  0x83   : > { %630 = vperm.xlu1 %2685, %v2880_v11  }
  0x84   : > { %634 = vperm.xlu2 %2683, %v2877_v10   ;;  %638 = vperm.xlu0 %2684, %v2895_v15   ;;  %v2987_v37 = vpop.permute.xlu2 %453  ;;  %v2989_v38 = vpop.permute.xlu1 %408 }
  0x85   : > { %v399_v39 = vpop.permute.xlu0 %398 }
  0x86   : > { %v557_v60 = vmul.f32 %v3049_v59, %v399_v39 }
  0x8b   : > { %642 = vperm.xlu1 %2685, %v2892_v14  }
  0x8c   : > { %646 = vperm.xlu2 %2683, %v2889_v13   ;;  %650 = vperm.xlu0 %2684, %v2907_v18   ;;  %v2994_v40 = vpop.permute.xlu2 %468  ;;  %v414_v41 = vpop.permute.xlu1 %413 }
  0x8d   : > { %v2996_v42 = vpop.permute.xlu0 %403 }
  0x93   : > { %654 = vperm.xlu1 %2685, %v2904_v17  }
  0x94   : > { %658 = vperm.xlu2 %2683, %v2901_v16   ;;  %662 = vperm.xlu0 %2684, %v2919_v21   ;;  %v3001_v43 = vpop.permute.xlu2 %483  ;;  %v3003_v44 = vpop.permute.xlu1 %433 }
  0x95   : > { %v3005_v45 = vpop.permute.xlu0 %428 }
  0x9b   : > { %666 = vperm.xlu1 %2685, %v2916_v20  }
  0x9c   : > { %670 = vperm.xlu2 %2683, %v2913_v19   ;;  %674 = vperm.xlu0 %2684, %v2931_v24   ;;  %v3010_v46 = vpop.permute.xlu2 %498  ;;  %v3012_v47 = vpop.permute.xlu1 %448 }
  0x9d   : > { %v3014_v48 = vpop.permute.xlu0 %443 }
  0xa3   : > { %678 = vperm.xlu1 %2685, %v2928_v23  }
  0xa4   : > { %682 = vperm.xlu2 %2683, %v2925_v22   ;;  %686 = vperm.xlu0 %2684, %v2943_v27   ;;  %v3019_v49 = vpop.permute.xlu2 %513  ;;  %v3021_v50 = vpop.permute.xlu1 %463 }
  0xa5   : > { %v3023_v51 = vpop.permute.xlu0 %458 }
  0xab   : > { %690 = vperm.xlu1 %2685, %v2940_v26  }
  0xac   : > { %694 = vperm.xlu2 %2683, %v2937_v25   ;;  %698 = vperm.xlu0 %2684, %v2955_v30   ;;  %v3028_v52 = vpop.permute.xlu2 %528  ;;  %v3030_v53 = vpop.permute.xlu1 %478 }
  0xad   : > { %v3032_v54 = vpop.permute.xlu0 %473 }
  0xb3   : > { %702 = vperm.xlu1 %2685, %v2952_v29  }
  0xb4   : > { %706 = vperm.xlu2 %2683, %v2949_v28   ;;  %710 = vperm.xlu0 %2684, %v2964_v32   ;;  %v3037_v55 = vpop.permute.xlu2 %543  ;;  %v3039_v56 = vpop.permute.xlu1 %493 }
  0xb5   : > { %v3041_v57 = vpop.permute.xlu0 %488 }
  0xbb   : > { %714 = vperm.xlu1 %2685, %v2961_v31   ;;  %v560_v31 = vmul.f32 %v3049_v59, %v414_v41 }
  0xbc   : > { %2686 = vset.pattern.permute.xlu2 %v4799_v61  ;;  %2687 = vset.pattern.permute.xlu0 %v4799_v61  ;;  %v3055_v62 = vpop.permute.xlu1 %508 }
  0xbd   : > { %783 = vperm.xlu2 %2686, %v2847_v3   ;;  %787 = vperm.xlu0 %2687, %v2859_v6   ;;  %v3062_v0 = vpop.permute.xlu0 %503  ;;  %v591_v33 = vpop.permute.xlu2 %590 }
  0xbe   : > { %v718_v32 = vmul.f32 %v3058_v63, %v591_v33 }
  0xc0   : > { %v3065_v39 = vadd.f32 %v718_v32, %v557_v60 }
  0xc3   : > { %2688 = vset.pattern.permute.xlu1 %v4799_v61 }
  0xc4   : > { %791 = vperm.xlu1 %2688, %v2844_v2   ;;  %v3069_v28 = vpop.permute.xlu1 %523 }
  0xc5   : > { %795 = vperm.xlu2 %2686, %v2856_v5   ;;  %807 = vperm.xlu0 %2687, %v2871_v9   ;;  %v3073_v19 = vpop.permute.xlu0 %518  ;;  %v562_v5 = vmul.f32 %v3049_v59, %v2977_v35 }
  0xc6   : > { %v603_v6 = vpop.permute.xlu2 %602 }
  0xc7   : > { %v721_v20 = vmul.f32 %v3058_v63, %v603_v6 }
  0xc9   : > { %v3077_v33 = vadd.f32 %v721_v20, %v560_v31 }
  0xcc   : > { %799 = vperm.xlu1 %2688, %v2841_v1   ;;  %v3080_v32 = vpop.permute.xlu1 %538 }
  0xcd   : > { %803 = vperm.xlu2 %2686, %v2853_v4   ;;  %819 = vperm.xlu0 %2687, %v2883_v12   ;;  %v3084_v60 = vpop.permute.xlu0 %533  ;;  %v565_v4 = vmul.f32 %v3049_v59, %v2982_v36  ;;  %v568_v36 = vmul.f32 %v3049_v59, %v2987_v37 }
  0xce   : > { %v611_v61 = vpop.permute.xlu2 %610 }
  0xcf   : > { %v723_v41 = vmul.f32 %v3058_v63, %v611_v61  ;;  %v559_v61 = vmul.f32 %v3049_v59, %v2989_v38  ;;  %v561_v38 = vmul.f32 %v3049_v59, %v2972_v34 }
  0xd1   : > { %v3089_v24 = vadd.f32 %v723_v41, %v562_v5 }
  0xd4   : > { %811 = vperm.xlu1 %2688, %v2868_v8   ;;  %v3092_v6 = vpop.permute.xlu1 %553 }
  0xd5   : > { %815 = vperm.xlu2 %2686, %v2865_v7   ;;  %831 = vperm.xlu0 %2687, %v2895_v15   ;;  %v3096_v20 = vpop.permute.xlu0 %548 }
  0xd6   : > { %v623_v31 = vpop.permute.xlu2 %622 }
  0xd7   : > { %v726_v35 = vmul.f32 %v3058_v63, %v623_v31 }
  0xd9   : > { %v3101_v1 = vadd.f32 %v726_v35, %v565_v4  ;;  %v558_v4 = vmul.f32 %v3049_v59, %v2996_v42 }
  0xdb   : > { %4826 = vst [vmem:[#allocation17_spill] sm:$0xff] %v3101_v1 }
  0xdc   : > { %823 = vperm.xlu1 %2688, %v2880_v11  }
  0xdd   : > { %827 = vperm.xlu2 %2686, %v2877_v10   ;;  %843 = vperm.xlu0 %2687, %v2907_v18   ;;  %v599_v5 = vpop.permute.xlu1 %598 }
  0xde   : > { %v720_v41 = vmul.f32 %v3058_v63, %v599_v5  ;;  %v635_v15 = vpop.permute.xlu2 %634  ;;  %v595_v12 = vpop.permute.xlu0 %594  ;;  %v571_v5 = vmul.f32 %v3049_v59, %v2994_v40  ;;  %v564_v40 = vmul.f32 %v3049_v59, %v3003_v44  ;;  %v2765_v44 = vmov 3  }
  0xdf   : > { %v729_v31 = vmul.f32 %v3058_v63, %v635_v15  ;;  %v719_v35 = vmul.f32 %v3058_v63, %v595_v12 }
  0xe0   : > { %v3115_v10 = vadd.f32 %v720_v41, %v559_v61  ;;  %v563_v61 = vmul.f32 %v3049_v59, %v3005_v45 }
  0xe1   : > { %v3117_v11 = vadd.f32 %v729_v31, %v568_v36  ;;  %v3119_v1 = vadd.f32 %v719_v35, %v558_v4 }
  0xe4   : > { %835 = vperm.xlu1 %2688, %v2892_v14  }
  0xe5   : > { %839 = vperm.xlu2 %2686, %v2889_v13   ;;  %871 = vperm.xlu0 %2687, %v2928_v23   ;;  %v607_v37 = vpop.permute.xlu1 %606 }
  0xe6   : > { %v722_v15 = vmul.f32 %v3058_v63, %v607_v37  ;;  %v647_v42 = vpop.permute.xlu2 %646  ;;  %v615_v12 = vpop.permute.xlu0 %614 }
  0xe7   : > { %v732_v41 = vmul.f32 %v3058_v63, %v647_v42  ;;  %v724_v36 = vmul.f32 %v3058_v63, %v615_v12 }
  0xe8   : > { %v3133_v4 = vadd.f32 %v722_v15, %v561_v38  ;;  %v574_v38 = vmul.f32 %v3049_v59, %v3001_v43  ;;  %v566_v15 = vmul.f32 %v3049_v59, %v3014_v48  ;;  %v567_v48 = vmul.f32 %v3049_v59, %v3012_v47 }
  0xe9   : > { %v3135_v31 = vadd.f32 %v732_v41, %v571_v5  ;;  %v3137_v35 = vadd.f32 %v724_v36, %v563_v61 }
  0xec   : > { %847 = vperm.xlu1 %2688, %v2904_v17  }
  0xed   : > { %851 = vperm.xlu2 %2686, %v2901_v16   ;;  %855 = vperm.xlu0 %2687, %v2919_v21   ;;  %v619_v34 = vpop.permute.xlu1 %618 }
  0xee   : > { %v725_v45 = vmul.f32 %v3058_v63, %v619_v34  ;;  %v659_v37 = vpop.permute.xlu2 %658  ;;  %v627_v42 = vpop.permute.xlu0 %626 }
  0xef   : > { %v735_v12 = vmul.f32 %v3058_v63, %v659_v37  ;;  %v727_v5 = vmul.f32 %v3058_v63, %v627_v42  ;;  %v577_v37 = vmul.f32 %v3049_v59, %v3010_v46  ;;  %v569_v42 = vmul.f32 %v3049_v59, %v3023_v51 }
  0xf0   : > { %v3151_v61 = vadd.f32 %v725_v45, %v564_v40  ;;  %v570_v46 = vmul.f32 %v3049_v59, %v3021_v50 }
  0xf1   : > { %v3153_v41 = vadd.f32 %v735_v12, %v574_v38  ;;  %v3155_v36 = vadd.f32 %v727_v5, %v566_v15 }
  0xf4   : > { %875 = vperm.xlu1 %2688, %v2925_v22  }
  0xf5   : > { %2689 = vset.pattern.permute.xlu2 %v2765_v44  ;;  %891 = vperm.xlu0 %2687, %v2955_v30   ;;  %v631_v43 = vpop.permute.xlu1 %630 }
  0xf6   : > { %v728_v34 = vmul.f32 %v3058_v63, %v631_v43  ;;  %1032 = vperm.xlu2 %2689, %v2889_v13   ;;  %v671_v40 = vpop.permute.xlu2 %670  ;;  %v639_v45 = vpop.permute.xlu0 %638 }
  0xf7   : > { %v738_v38 = vmul.f32 %v3058_v63, %v671_v40  ;;  %v730_v15 = vmul.f32 %v3058_v63, %v639_v45 }
  0xf8   : > { %v3170_v12 = vadd.f32 %v728_v34, %v567_v48  ;;  %v580_v48 = vmul.f32 %v3049_v59, %v3019_v49  ;;  %v572_v34 = vmul.f32 %v3049_v59, %v3032_v54  ;;  %v573_v49 = vmul.f32 %v3049_v59, %v3030_v53 }
  0xf9   : > { %v3172_v5 = vadd.f32 %v738_v38, %v577_v37  ;;  %v3174_v47 = vadd.f32 %v730_v15, %v569_v42 }
  0xfc   : > { %879 = vperm.xlu1 %2688, %v2943_v27  }
  0xfd   : > { %895 = vperm.xlu0 %2687, %v2952_v29   ;;  %v643_v13 = vpop.permute.xlu1 %642 }
  0xfe   : > { %v731_v51 = vmul.f32 %v3058_v63, %v643_v13  ;;  %1036 = vperm.xlu2 %2689, %v2907_v18   ;;  %v683_v43 = vpop.permute.xlu2 %682  ;;  %v651_v40 = vpop.permute.xlu0 %650 }
  0xff   : > { %v741_v45 = vmul.f32 %v3058_v63, %v683_v43  ;;  %v733_v37 = vmul.f32 %v3058_v63, %v651_v40 }
 0x100   : > { %v3188_v42 = vadd.f32 %v731_v51, %v570_v46  ;;  %v583_v46 = vmul.f32 %v3049_v59, %v3028_v52  ;;  %v575_v51 = vmul.f32 %v3049_v59, %v3041_v57 }
 0x101   : > { %v3190_v38 = vadd.f32 %v741_v45, %v580_v48  ;;  %v3192_v50 = vadd.f32 %v733_v37, %v572_v34  ;;  %v576_v34 = vmul.f32 %v3049_v59, %v3039_v56  ;;  %v586_v37 = vmul.f32 %v3049_v59, %v3037_v55 }
 0x102   : > { %v579_v55 = vmul.f32 %v3049_v59, %v3055_v62 }
 0x104   : > { %2690 = vset.pattern.permute.xlu1 %v2765_v44 }
 0x105   : > { %2696 = vset.pattern.permute.xlu0 %v2765_v44  ;;  %1068 = vperm.xlu1 %2690, %v2925_v22   ;;  %v655_v18 = vpop.permute.xlu1 %654 }
 0x106   : > { %v734_v54 = vmul.f32 %v3058_v63, %v655_v18  ;;  %1040 = vperm.xlu2 %2689, %v2904_v17   ;;  %v695_v15 = vpop.permute.xlu2 %694  ;;  %1064 = vperm.xlu0 %2696, %v2928_v23   ;;  %v663_v13 = vpop.permute.xlu0 %662  ;;  %v4827_v17 = vmov 2   ;;  %v578_v18 = vmul.f32 %v3049_v59, %v3062_v0 }
 0x107   : > { %v744_v22 = vmul.f32 %v3058_v63, %v695_v15  ;;  %v736_v43 = vmul.f32 %v3058_v63, %v663_v13 }
 0x108   : > { %v3208_v40 = vadd.f32 %v734_v54, %v573_v49 }
 0x109   : > { %v3210_v53 = vadd.f32 %v744_v22, %v583_v46  ;;  %v3212_v48 = vadd.f32 %v736_v43, %v575_v51  ;;  %v581_v51 = vmul.f32 %v3049_v59, %v3073_v19 }
 0x10d   : > { %2691 = vset.pattern.permute.xlu1 %v4827_v17  ;;  %v667_v23 = vpop.permute.xlu1 %666 }
 0x10e   : > { %v737_v52 = vmul.f32 %v3058_v63, %v667_v23  ;;  %1000 = vperm.xlu2 %2689, %v2871_v9   ;;  %v707_v57 = vpop.permute.xlu2 %706  ;;  %1072 = vperm.xlu0 %2696, %v2943_v27   ;;  %v675_v45 = vpop.permute.xlu0 %674  ;;  %v3234_v27 = vperm.slane %v3046_v58, 2 }
 0x10f   : > { %v747_v49 = vmul.f32 %v3058_v63, %v707_v57  ;;  %v739_v54 = vmul.f32 %v3058_v63, %v675_v45  ;;  %883 = vperm.xlu1 %2691, %v2940_v26   ;;  %v584_v45 = vmul.f32 %v3049_v59, %v3084_v60  ;;  %v585_v60 = vmul.f32 %v3049_v59, %v3080_v32 }
 0x110   : > { %v3227_v56 = vadd.f32 %v737_v52, %v576_v34 }
 0x111   : > { %v3229_v15 = vadd.f32 %v747_v49, %v586_v37  ;;  %v3231_v9 = vadd.f32 %v739_v54, %v578_v18 }
 0x113   : > { %4828 = vst [vmem:[#allocation18_spill] sm:$0xff] %v3231_v9 }
 0x115   : > { %v679_v13 = vpop.permute.xlu1 %678 }
 0x116   : > { %v740_v0 = vmul.f32 %v3058_v63, %v679_v13  ;;  %1004 = vperm.xlu2 %2689, %v2868_v8   ;;  %976 = vperm.xlu0 %2696, %v2847_v3   ;;  %v687_v46 = vpop.permute.xlu0 %686  ;;  %v582_v3 = vmul.f32 %v3049_v59, %v3069_v28  ;;  %v4829_v13 = vld [vmem:[#allocation13_spill] sm:$0xff] }
 0x117   : > { %v742_v22 = vmul.f32 %v3058_v63, %v687_v46  ;;  %887 = vperm.xlu1 %2691, %v2937_v25   ;;  %v784_v43 = vpop.permute.xlu2 %783 }
 0x118   : > { %v3245_v23 = vadd.f32 %v740_v0, %v579_v55  ;;  %v911_v34 = vmul.f32 %v3234_v27, %v784_v43  ;;  %v587_v0 = vmul.f32 %v3049_v59, %v3096_v20  ;;  %v588_v43 = vmul.f32 %v3049_v59, %v3092_v6 }
 0x119   : > { %v3248_v62 = vadd.f32 %v742_v22, %v581_v51 }
 0x11a   : > { %v3251_v52 = vadd.f32 %v911_v34, %v3065_v39  ;;  %v4832_v34 = vld [vmem:[#allocation12_spill] sm:$0xff] }
 0x11d   : > { %v691_v8 = vpop.permute.xlu1 %690 }
 0x11e   : > { %v743_v19 = vmul.f32 %v3058_v63, %v691_v8  ;;  %1076 = vperm.xlu2 %2689, %v2940_v26   ;;  %984 = vperm.xlu0 %2696, %v2844_v2   ;;  %v699_v57 = vpop.permute.xlu0 %698 }
 0x11f   : > { %v745_v37 = vmul.f32 %v3058_v63, %v699_v57  ;;  %2692 = vset.pattern.permute.xlu1 %v2765_v44  ;;  %v796_v39 = vpop.permute.xlu2 %795  ;;  %v4833_v57 = vld [vmem:[#allocation17_spill] sm:$0xff] }
 0x120   : > { %v3262_v18 = vadd.f32 %v743_v19, %v582_v3  ;;  %v914_v49 = vmul.f32 %v3234_v27, %v796_v39  ;;  %1044 = vperm.xlu1 %2692, %v2901_v16  }
 0x121   : > { %v3266_v28 = vadd.f32 %v745_v37, %v584_v45  ;;  %v4834_v37 = vld [vmem:[#allocation15_spill] sm:$0xff] }
 0x122   : > { %v3269_v26 = vadd.f32 %v914_v49, %v3077_v33  ;;  %v4835_v49 = vld [vmem:[#allocation6_spill] sm:$0xff] }
 0x125   : > { %v703_v2 = vpop.permute.xlu1 %702 }
 0x126   : > { %v746_v54 = vmul.f32 %v3058_v63, %v703_v2  ;;  %1048 = vperm.xlu2 %2689, %v2919_v21   ;;  %1060 = vperm.xlu0 %2696, %v4829_v13   ;;  %v711_v55 = vpop.permute.xlu0 %710  ;;  %v4836_v2 = vld [vmem:[#allocation9_spill] sm:$0xff] }
 0x127   : > { %v748_v16 = vmul.f32 %v3058_v63, %v711_v55  ;;  %v804_v46 = vpop.permute.xlu2 %803  ;;  %v2766_v55 = vmov 0.0  }
 0x128   : > { %v3279_v51 = vadd.f32 %v746_v54, %v585_v60  ;;  %v916_v33 = vmul.f32 %v3234_v27, %v804_v46  ;;  %1008 = vperm.xlu1 %2692, %v2865_v7   ;;  %1326 = vst.msk [vmem:[#allocation2 + $0x180] sm:$0xff] %vm1304_vm0, %v2766_v55 }
 0x129   : > { %v3283_v32 = vadd.f32 %v748_v16, %v587_v0  ;;  %1327 = vst.msk [vmem:[#allocation2 + $0x1a0] sm:$0xff] %vm1304_vm0, %v2766_v55 }
 0x12a   : > { %v3286_v22 = vadd.f32 %v916_v33, %v3089_v24  ;;  %1328 = vst.msk [vmem:[#allocation2 + $0x1c0] sm:$0xff] %vm1304_vm0, %v2766_v55 }
 0x12b   : > { %4830 = vst [vmem:[#allocation13_spill] sm:$0xff] %v3283_v32 }
 0x12c   : > { %4831 = vst [vmem:[#allocation19_spill] sm:$0xff] %v3286_v22 }
 0x12d   : > { %v715_v21 = vpop.permute.xlu1 %714  ;;  %1305 = vst.msk [vmem:[#allocation2] sm:$0xff] %vm1304_vm0, %v2766_v55 }
 0x12e   : > { %v749_v20 = vmul.f32 %v3058_v63, %v715_v21  ;;  %2693 = vset.pattern.permute.xlu2 %v4827_v17  ;;  %1028 = vperm.xlu0 %2696, %v2892_v14   ;;  %1306 = vst.msk [vmem:[#allocation2 + $0x8] sm:$0xff] %vm1304_vm0, %v2766_v55 }
 0x12f   : > { %859 = vperm.xlu2 %2693, %v4832_v34   ;;  %v816_v8 = vpop.permute.xlu2 %815  ;;  %v788_v3 = vpop.permute.xlu0 %787  ;;  %1307 = vst.msk [vmem:[#allocation2 + $0x10] sm:$0xff] %vm1304_vm0, %v2766_v55 }
 0x130   : > { %v3294_v7 = vadd.f32 %v749_v20, %v588_v43  ;;  %v919_v19 = vmul.f32 %v3234_v27, %v816_v8  ;;  %v912_v24 = vmul.f32 %v3234_v27, %v788_v3  ;;  %1080 = vperm.xlu1 %2692, %v2937_v25   ;;  %1308 = vst.msk [vmem:[#allocation2 + $0x18] sm:$0xff] %vm1304_vm0, %v2766_v55  ;;  %v4837_v20 = vld [vmem:[#allocation8_spill] sm:$0xff] }
 0x131   : > { %1310 = vst.msk [vmem:[#allocation2 + $0x220] sm:$0xff] %vm1304_vm0, %v2766_v55 }
 0x132   : > { %v3300_v59 = vadd.f32 %v919_v19, %v4833_v57  ;;  %v3303_v63 = vadd.f32 %v912_v24, %v3119_v1  ;;  %1311 = vst.msk [vmem:[#allocation2 + $0x228] sm:$0xff] %vm1304_vm0, %v2766_v55  ;;  %v3375_v24 = vperm.slane %v3046_v58, 3 }
 0x133   : > { %1312 = vst.msk [vmem:[#allocation2 + $0x230] sm:$0xff] %vm1304_vm0, %v2766_v55 }
 0x134   : > { %1313 = vst.msk [vmem:[#allocation2 + $0x238] sm:$0xff] %vm1304_vm0, %v2766_v55 }
 0x135   : > { %1315 = vst.msk [vmem:[#allocation2 + $0x20] sm:$0xff] %vm1304_vm0, %v2766_v55 }
 0x136   : > { %2703 = vset.pattern.permute.xlu0 %v4827_v17  ;;  %v792_v14 = vpop.permute.xlu1 %791  ;;  %1316 = vst.msk [vmem:[#allocation2 + $0x40] sm:$0xff] %vm1304_vm0, %v2766_v55 }
 0x137   : > { %v913_v6 = vmul.f32 %v3234_v27, %v792_v14  ;;  %2694 = vset.pattern.permute.xlu2 %v2765_v44  ;;  %v828_v45 = vpop.permute.xlu2 %827  ;;  %907 = vperm.xlu0 %2703, %v4834_v37   ;;  %v3309_v39 = vpop.permute.xlu0 %807  ;;  %1317 = vst.msk [vmem:[#allocation2 + $0x60] sm:$0xff] %vm1304_vm0, %v2766_v55  ;;  %v4840_v14 = vld [vmem:[#allocation7_spill] sm:$0xff] }
 0x138   : > { %v922_v25 = vmul.f32 %v3234_v27, %v828_v45  ;;  %980 = vperm.xlu1 %2692, %v4835_v49   ;;  %1012 = vperm.xlu2 %2694, %v4836_v2   ;;  %1318 = vst.msk [vmem:[#allocation2 + $0x80] sm:$0xff] %vm1304_vm0, %v2766_v55  ;;  %v4841_v2 = vld [vmem:[#allocation11_spill] sm:$0xff] }
 0x139   : > { %v3315_v1 = vadd.f32 %v913_v6, %v3115_v10  ;;  %1319 = vst.msk [vmem:[#allocation2 + $0xa0] sm:$0xff] %vm1304_vm0, %v2766_v55 }
 0x13a   : > { %v3318_v60 = vadd.f32 %v922_v25, %v3117_v11  ;;  %1320 = vst.msk [vmem:[#allocation2 + $0xc0] sm:$0xff] %vm1304_vm0, %v2766_v55  ;;  %v3395_v25 = vld [vmem:[%s4779_s2] ss:$0 sm:$0xff] }
 0x13b   : > { %1321 = vst.msk [vmem:[#allocation2 + $0xe0] sm:$0xff] %vm1304_vm0, %v2766_v55 }
 0x13c   : > { %1322 = vst.msk [vmem:[#allocation2 + $0x100] sm:$0xff] %vm1304_vm0, %v2766_v55 }
 0x13d   : > { %1323 = vst.msk [vmem:[#allocation2 + $0x120] sm:$0xff] %vm1304_vm0, %v2766_v55 }
 0x13e   : > { %v800_v54 = vpop.permute.xlu1 %799  ;;  %1324 = vst.msk [vmem:[#allocation2 + $0x140] sm:$0xff] %vm1304_vm0, %v2766_v55 }
 0x13f   : > { %v915_v0 = vmul.f32 %v3234_v27, %v800_v54  ;;  %v840_v16 = vpop.permute.xlu2 %839  ;;  %v820_v46 = vpop.permute.xlu0 %819  ;;  %2705 = vset.pattern.permute.xlu0 %v2765_v44  ;;  %1325 = vst.msk [vmem:[#allocation2 + $0x160] sm:$0xff] %vm1304_vm0, %v2766_v55 }
 0x140   : > { %v920_v10 = vmul.f32 %v3234_v27, %v820_v46  ;;  %1052 = vperm.xlu1 %2692, %v4832_v34   ;;  %1084 = vperm.xlu2 %2694, %v2955_v30   ;;  %v4838_v34 = vld [vmem:[#allocation5_spill] sm:$0xff]  ;;  %v925_v19 = vmul.f32 %v3234_v27, %v840_v16  ;;  %1329 = vst.msk [vmem:[#allocation2 + $0x1e0] sm:$0xff] %vm1304_vm0, %v2766_v55 }
 0x141   : > { %v3332_v11 = vadd.f32 %v915_v0, %v3133_v4  ;;  %1330 = vst.msk [vmem:[#allocation2 + $0x200] sm:$0xff] %vm1304_vm0, %v2766_v55 }
 0x142   : > { %v3337_v33 = vadd.f32 %v920_v10, %v3155_v36  ;;  %v957_v58 = vadd.f32 %v925_v19, %v3135_v31  ;;  %v3406_v31 = vld [vmem:[%s4780_s3] ss:$0 sm:$0xff]  ;;  %1333 = vst.msk [vmem:[#allocation2 + $0x38] sm:$0xff] %vm1304_vm0, %v2766_v55 }
 0x143   : > { %1334 = vst.msk [vmem:[#allocation2 + $0x58] sm:$0xff] %vm1304_vm0, %v2766_v55 }
 0x144   : > { %1335 = vst.msk [vmem:[#allocation2 + $0x78] sm:$0xff] %vm1304_vm0, %v2766_v55 }
 0x145   : > { %1336 = vst.msk [vmem:[#allocation2 + $0x98] sm:$0xff] %vm1304_vm0, %v2766_v55 }
 0x146   : > { %v3347_v30 = vpop.permute.xlu1 %811  ;;  %1337 = vst.msk [vmem:[#allocation2 + $0xb8] sm:$0xff] %vm1304_vm0, %v2766_v55 }
 0x147   : > { %v852_v4 = vpop.permute.xlu2 %851  ;;  %v832_v36 = vpop.permute.xlu0 %831  ;;  %1338 = vst.msk [vmem:[#allocation2 + $0xd8] sm:$0xff] %vm1304_vm0, %v2766_v55 }
 0x148   : > { %v928_v21 = vmul.f32 %v3234_v27, %v852_v4  ;;  %v923_v43 = vmul.f32 %v3234_v27, %v832_v36  ;;  %1016 = vperm.xlu1 %2692, %v4837_v20   ;;  %988 = vperm.xlu2 %2694, %v4838_v34   ;;  %1339 = vst.msk [vmem:[#allocation2 + $0xf8] sm:$0xff] %vm1304_vm0, %v2766_v55 }
 0x149   : > { %1340 = vst.msk [vmem:[#allocation2 + $0x118] sm:$0xff] %vm1304_vm0, %v2766_v55 }
 0x14a   : > { %v3362_v8 = vadd.f32 %v928_v21, %v3153_v41  ;;  %v3365_v3 = vadd.f32 %v923_v43, %v3174_v47  ;;  %1341 = vst.msk [vmem:[#allocation2 + $0x138] sm:$0xff] %vm1304_vm0, %v2766_v55 }
 0x14b   : > { %1342 = vst.msk [vmem:[#allocation2 + $0x158] sm:$0xff] %vm1304_vm0, %v2766_v55 }
 0x14c   : > { %4839 = vst [vmem:[#allocation12_spill] sm:$0xff] %v3365_v3 }
 0x14d   : > { %1343 = vst.msk [vmem:[#allocation2 + $0x178] sm:$0xff] %vm1304_vm0, %v2766_v55 }
 0x14e   : > { %v824_v41 = vpop.permute.xlu1 %823  ;;  %1344 = vst.msk [vmem:[#allocation2 + $0x198] sm:$0xff] %vm1304_vm0, %v2766_v55 }
 0x14f   : > { %v921_v47 = vmul.f32 %v3234_v27, %v824_v41  ;;  %v844_v57 = vpop.permute.xlu0 %843  ;;  %1345 = vst.msk [vmem:[#allocation2 + $0x1b8] sm:$0xff] %vm1304_vm0, %v2766_v55 }
 0x150   : > { %1020 = vperm.xlu1 %2692, %v4840_v14   ;;  %2695 = vset.pattern.permute.xlu2 %v4827_v17  ;;  %v1033_v6 = vpop.permute.xlu2 %1032  ;;  %v926_v54 = vmul.f32 %v3234_v27, %v844_v57  ;;  %1346 = vst.msk [vmem:[#allocation2 + $0x1d8] sm:$0xff] %vm1304_vm0, %v2766_v55 }
 0x151   : > { %v3390_v45 = vadd.f32 %v921_v47, %v3170_v12  ;;  %v1118_v49 = vmul.f32 %v3375_v24, %v1033_v6  ;;  %863 = vperm.xlu2 %2695, %v4841_v2   ;;  %1347 = vst.msk [vmem:[#allocation2 + $0x1f8] sm:$0xff] %vm1304_vm0, %v2766_v55 }
 0x152   : > { %v958_v21 = vadd.f32 %v926_v54, %v3192_v50  ;;  %v4842_v54 = vld [vmem:[#allocation14_spill] sm:$0xff]  ;;  %1348 = vst.msk [vmem:[#allocation2 + $0x218] sm:$0xff] %vm1304_vm0, %v2766_v55 }
 0x153   : > { %v1150_v12 = vadd.f32 %v1118_v49, %v957_v58  ;;  %1314 = vst.msk [vmem:[#allocation2] sm:$0xff] %vm1304_vm0, %v2766_v55 }
 0x154   : > { %1331 = vst.msk [vmem:[#allocation2 + $0x220] sm:$0xff] %vm1304_vm0, %v2766_v55 }
 0x155   : > { %v1186_v0 = vmul.f32 %v3395_v25, %v1150_v12  ;;  %1332 = vst.msk [vmem:[#allocation2 + $0x18] sm:$0xff] %vm1304_vm0, %v2766_v55 }
 0x156   : > { %v836_v16 = vpop.permute.xlu1 %835  ;;  %1349 = vst.msk [vmem:[#allocation2 + $0x238] sm:$0xff] %vm1304_vm0, %v2766_v55 }
 0x157   : > { %v1222_v46 = vadd.f32 %v3406_v31, %v1186_v0  ;;  %v924_v10 = vmul.f32 %v3234_v27, %v836_v16  ;;  %v3420_v4 = vpop.permute.xlu0 %871 }
 0x158   : > { %1056 = vperm.xlu1 %2692, %v4841_v2   ;;  %v1037_v36 = vpop.permute.xlu2 %1036 }
 0x159   : > { %v1254_v43 = vmax.f32 %v1222_v46, 0.0  ;;  %v3429_v20 = vadd.f32 %v924_v10, %v3188_v42  ;;  %v1119_v34 = vmul.f32 %v3375_v24, %v1037_v36  ;;  %2697 = vset.pattern.permute.xlu2 %v2765_v44 }
 0x15a   : > { %1088 = vperm.xlu2 %2697, %v2952_v29  }
 0x15b   : > { %v1286_v19 = vmin.f32 %v1254_v43, 6.0  ;;  %v1151_v41 = vadd.f32 %v1119_v34, %v958_v21 }
 0x15d   : > { %1365 = vst.msk [vmem:[#allocation2 + $0x108] sm:$0xff] %vm1304_vm0, %v1286_v19  ;;  %v1187_v42 = vmul.f32 %v3395_v25, %v1151_v41  ;;  %v918_v19 = vmul.f32 %v3234_v27, %v3347_v30  ;;  %v4844_v30 = vld [vmem:[#allocation10_spill] sm:$0xff] }
 0x15e   : > { %v848_v50 = vpop.permute.xlu1 %847 }
 0x15f   : > { %v1223_v29 = vadd.f32 %v3406_v31, %v1187_v42  ;;  %v927_v47 = vmul.f32 %v3234_v27, %v848_v50  ;;  %v3448_v57 = vpop.permute.xlu0 %855 }
 0x160   : > { %2698 = vset.pattern.permute.xlu1 %v4827_v17  ;;  %v1041_v14 = vpop.permute.xlu2 %1040 }
 0x161   : > { %v1255_v6 = vmax.f32 %v1223_v29, 0.0  ;;  %v959_v58 = vadd.f32 %v927_v47, %v3208_v40  ;;  %v1120_v49 = vmul.f32 %v3375_v24, %v1041_v14  ;;  %867 = vperm.xlu1 %2698, %v4829_v13   ;;  %v917_v40 = vmul.f32 %v3234_v27, %v3309_v39 }
 0x162   : > { %2699 = vset.pattern.permute.xlu2 %v4827_v17 }
 0x163   : > { %v1287_v2 = vmin.f32 %v1255_v6, 6.0  ;;  %v1152_v12 = vadd.f32 %v1120_v49, %v959_v58  ;;  %899 = vperm.xlu2 %2699, %v4842_v54   ;;  %v949_v39 = vadd.f32 %v917_v40, %v3137_v35  ;;  %v4843_v35 = vld [vmem:[#allocation3_spill] sm:$0xff]  ;;  %v950_v6 = vadd.f32 %v918_v19, %v3151_v61  ;;  %v4845_v40 = vld [vmem:[#allocation4_spill] sm:$0xff] }
 0x165   : > { %1366 = vst.msk [vmem:[#allocation2 + $0x110] sm:$0xff] %vm1304_vm0, %v1287_v2  ;;  %v1188_v13 = vmul.f32 %v3395_v25, %v1152_v12 }
 0x166   : > { %v876_v0 = vpop.permute.xlu1 %875 }
 0x167   : > { %v1224_v16 = vadd.f32 %v3406_v31, %v1188_v13  ;;  %v3475_v46 = vpop.permute.xlu0 %891  ;;  %v933_v13 = vmul.f32 %v3234_v27, %v3420_v4 }
 0x168   : > { %v1001_v10 = vpop.permute.xlu2 %1000 }
 0x169   : > { %v1256_v36 = vmax.f32 %v1224_v16, 0.0  ;;  %v1110_v21 = vmul.f32 %v3375_v24, %v1001_v10  ;;  %2700 = vset.pattern.permute.xlu1 %v2765_v44 }
 0x16a   : > { %1092 = vperm.xlu1 %2700, %v4842_v54   ;;  %v934_v54 = vmul.f32 %v3234_v27, %v876_v0  ;;  %v965_v0 = vadd.f32 %v933_v13, %v3245_v23 }
 0x16b   : > { %v1288_v43 = vmin.f32 %v1256_v36, 6.0  ;;  %v1142_v34 = vadd.f32 %v1110_v21, %v949_v39  ;;  %2701 = vset.pattern.permute.xlu2 %v2765_v44 }
 0x16c   : > { %992 = vperm.xlu2 %2701, %v4843_v35  }
 0x16d   : > { %1367 = vst.msk [vmem:[#allocation2 + $0x128] sm:$0xff] %vm1304_vm0, %v1288_v43  ;;  %v1178_v41 = vmul.f32 %v3395_v25, %v1142_v34 }
 0x16e   : > { %v880_v42 = vpop.permute.xlu1 %879 }
 0x16f   : > { %v1214_v50 = vadd.f32 %v3406_v31, %v1178_v41  ;;  %v896_v29 = vpop.permute.xlu0 %895  ;;  %v4846_v41 = vld [vmem:[#allocation16_spill] sm:$0xff] }
 0x170   : > { %v939_v47 = vmul.f32 %v3234_v27, %v896_v29  ;;  %v1005_v14 = vpop.permute.xlu2 %1004  ;;  %v935_v29 = vmul.f32 %v3234_v27, %v880_v42 }
 0x171   : > { %v1246_v58 = vmax.f32 %v1214_v50, 0.0  ;;  %v1111_v55 = vmul.f32 %v3375_v24, %v1005_v14  ;;  %v929_v50 = vmul.f32 %v3234_v27, %v3448_v57 }
 0x172   : > { %v3502_v49 = vadd.f32 %v939_v47, %v3279_v51  ;;  %1024 = vperm.xlu1 %2700, %v4844_v30   ;;  %v966_v51 = vadd.f32 %v934_v54, %v3190_v38  ;;  %v3521_v38 = vld [vmem:[%s4781_s4] sm:$0xff]  ;;  %v967_v13 = vadd.f32 %v935_v29, %v3248_v62  ;;  %v1473_v62 = vld [vmem:[#allocation2 + $0x109] sm:$0xff] }
 0x173   : > { %v1278_v2 = vmin.f32 %v1246_v58, 6.0  ;;  %v1143_v12 = vadd.f32 %v1111_v55, %v950_v6  ;;  %v3532_v14 = vperm.slane %v3521_v38, 0  ;;  %v3535_v6 = vperm.slane %v3521_v38, 1  ;;  %v1401_v58 = vld [vmem:[#allocation2 + $0x107] sm:$0xff] }
 0x174   : > { %996 = vperm.xlu2 %2701, %v4845_v40   ;;  %v1437_v55 = vld [vmem:[#allocation2 + $0x108] sm:$0xff]  ;;  %v961_v30 = vadd.f32 %v929_v50, %v3212_v48  ;;  %v3540_v54 = vperm.slane %v3521_v38, 2 }
 0x175   : > { %1357 = vst.msk [vmem:[#allocation2 + $0x88] sm:$0xff] %vm1304_vm0, %v1278_v2  ;;  %v1179_v61 = vmul.f32 %v3395_v25, %v1143_v12  ;;  %v1402_v40 = vld [vmem:[#allocation2 + $0x10f] sm:$0xff]  ;;  %v1510_v48 = vmul.f32 %v3532_v14, %v1401_v58 }
 0x177   : > { %v1215_v16 = vadd.f32 %v3406_v31, %v1179_v61  ;;  %v1069_v10 = vpop.permute.xlu1 %1068 }
 0x178   : > { %v1127_v39 = vmul.f32 %v3375_v24, %v1069_v10  ;;  %v1077_v36 = vpop.permute.xlu2 %1076  ;;  %v1065_v21 = vpop.permute.xlu0 %1064 }
 0x179   : > { %v1247_v43 = vmax.f32 %v1215_v16, 0.0  ;;  %v1126_v34 = vmul.f32 %v3375_v24, %v1065_v21 }
 0x17a   : > { %v1159_v35 = vadd.f32 %v1127_v39, %v966_v51  ;;  %2702 = vset.pattern.permute.xlu1 %v4827_v17  ;;  %v1438_v39 = vld [vmem:[#allocation2 + $0x110] sm:$0xff] }
 0x17b   : > { %v1279_v4 = vmin.f32 %v1247_v43, 6.0  ;;  %v1158_v19 = vadd.f32 %v1126_v34, %v965_v0  ;;  %903 = vperm.xlu1 %2702, %v4846_v41   ;;  %v1543_v43 = vmul.f32 %v3535_v6, %v1437_v55  ;;  %v1608_v55 = vmul.f32 %v3540_v54, %v1473_v62 }
 0x17c   : > { %v1195_v23 = vmul.f32 %v3395_v25, %v1159_v35  ;;  %1096 = vperm.xlu2 %2701, %v4846_v41   ;;  %v1129_v41 = vmul.f32 %v3375_v24, %v1077_v36  ;;  %v3564_v36 = vperm.slane %v3521_v38, 4 }
 0x17d   : > { %1358 = vst.msk [vmem:[#allocation2 + $0x90] sm:$0xff] %vm1304_vm0, %v1279_v4  ;;  %v1194_v17 = vmul.f32 %v3395_v25, %v1158_v19  ;;  %v1511_v19 = vmul.f32 %v3532_v14, %v1402_v40  ;;  %v1474_v40 = vld [vmem:[#allocation2 + $0x111] sm:$0xff] }
 0x17e   : > { %v1231_v47 = vadd.f32 %v3406_v31, %v1195_v23  ;;  %v1544_v23 = vmul.f32 %v3535_v6, %v1438_v39  ;;  %v1609_v62 = vmul.f32 %v3540_v54, %v1474_v40 }
 0x17f   : > { %v1230_v57 = vadd.f32 %v3406_v31, %v1194_v17 }
 0x180   : > { %v1263_v2 = vmax.f32 %v1231_v47, 0.0  ;;  %v1049_v42 = vpop.permute.xlu2 %1048  ;;  %v1073_v12 = vpop.permute.xlu0 %1072  ;;  %v1385_v47 = vld [vmem:[#allocation2 + $0x7] sm:$0xff] }
 0x181   : > { %v1262_v61 = vmax.f32 %v1230_v57, 0.0  ;;  %v1122_v16 = vmul.f32 %v3375_v24, %v1049_v42  ;;  %v1128_v10 = vmul.f32 %v3375_v24, %v1073_v12  ;;  %v884_v51 = vpop.permute.xlu1 %883  ;;  %v3561_v57 = vld [vmem:[#allocation2 + $0x127] sm:$0xff]  ;;  %v1575_v12 = vadd.f32 %v1543_v43, %v1510_v48 }
 0x182   : > { %v1295_v21 = vmin.f32 %v1263_v2, 6.0  ;;  %v936_v0 = vmul.f32 %v3234_v27, %v884_v51  ;;  %v1576_v51 = vadd.f32 %v1544_v23, %v1511_v19  ;;  %v3582_v43 = vperm.slane %v3521_v38, 7 }
 0x183   : > { %v1294_v34 = vmin.f32 %v1262_v61, 6.0  ;;  %v1154_v35 = vadd.f32 %v1122_v16, %v961_v30  ;;  %v1160_v4 = vadd.f32 %v1128_v10, %v967_v13  ;;  %2704 = vset.pattern.permute.xlu1 %v2765_v44  ;;  %v3559_v44 = vperm.slane %v3521_v38, 3 }
 0x184   : > { %1374 = vst.msk [vmem:[#allocation2 + $0x190] sm:$0xff] %vm1304_vm0, %v1295_v21  ;;  %v968_v50 = vadd.f32 %v936_v0, %v3262_v18  ;;  %1100 = vperm.xlu1 %2704, %v4834_v37   ;;  %v3567_v18 = vperm.slane %v3521_v38, 6  ;;  %v1421_v37 = vld [vmem:[#allocation2 + $0x8] sm:$0xff]  ;;  %v938_v30 = vmul.f32 %v3234_v27, %v3475_v46  ;;  %v1494_v16 = vmul.f32 %v3532_v14, %v1385_v47 }
 0x185   : > { %1373 = vst.msk [vmem:[#allocation2 + $0x188] sm:$0xff] %vm1304_vm0, %v1294_v34  ;;  %v1190_v29 = vmul.f32 %v3395_v25, %v1154_v35  ;;  %v1196_v17 = vmul.f32 %v3395_v25, %v1160_v4  ;;  %v1673_v10 = vmul.f32 %v3559_v44, %v3561_v57  ;;  %v1527_v35 = vmul.f32 %v3535_v6, %v1421_v37  ;;  %v1457_v47 = vld [vmem:[#allocation2 + $0x9] sm:$0xff] }
 0x186   : > { %v1161_v58 = vadd.f32 %v1129_v41, %v968_v50  ;;  %v1640_v4 = vadd.f32 %v1608_v55, %v1575_v12  ;;  %v1393_v41 = vld [vmem:[#allocation2 + $0x87] sm:$0xff]  ;;  %v1394_v32 = vld [vmem:[#allocation2 + $0x8f] sm:$0xff] }
 0x187   : > { %v1226_v2 = vadd.f32 %v3406_v31, %v1190_v29  ;;  %v1232_v42 = vadd.f32 %v3406_v31, %v1196_v17  ;;  %v1429_v50 = vld [vmem:[#allocation2 + $0x88] sm:$0xff]  ;;  %v3587_v17 = vperm.slane %v3521_v38, 5  ;;  %v1559_v38 = vadd.f32 %v1527_v35, %v1494_v16 }
 0x188   : > { %v1197_v13 = vmul.f32 %v3395_v25, %v1161_v58  ;;  %v977_v61 = vpop.permute.xlu0 %976  ;;  %v1439_v58 = vld [vmem:[#allocation2 + $0x128] sm:$0xff]  ;;  %v1705_v40 = vadd.f32 %v1673_v10, %v1640_v4 }
 0x189   : > { %v1258_v39 = vmax.f32 %v1226_v2, 0.0  ;;  %v1264_v21 = vmax.f32 %v1232_v42, 0.0  ;;  %v1104_v0 = vmul.f32 %v3375_v24, %v977_v61  ;;  %v888_v46 = vpop.permute.xlu1 %887  ;;  %v860_v34 = vpop.permute.xlu2 %859  ;;  %v1465_v37 = vld [vmem:[#allocation2 + $0x89] sm:$0xff]  ;;  %v3590_v2 = vadd.f32 %v938_v30, %v3266_v28 }
 0x18a   : > { %v1233_v48 = vadd.f32 %v3406_v31, %v1197_v13  ;;  %v3592_v61 = vadd.f32 %v1609_v62, %v1576_v51  ;;  %v1430_v28 = vld [vmem:[#allocation2 + $0x90] sm:$0xff]  ;;  %v1592_v51 = vmul.f32 %v3540_v54, %v1457_v47  ;;  %v3604_v62 = vmul.f32 %v3535_v6, %v1439_v58 }
 0x18b   : > { %v1290_v29 = vmin.f32 %v1258_v39, 6.0  ;;  %v1296_v19 = vmin.f32 %v1264_v21, 6.0  ;;  %v1136_v23 = vadd.f32 %v1104_v0, %v3251_v52  ;;  %v1446_v12 = vld [vmem:[#allocation2 + $0x190] sm:$0xff]  ;;  %v1502_v21 = vmul.f32 %v3532_v14, %v1393_v41 }
 0x18c   : > { %v1265_v42 = vmax.f32 %v1233_v48, 0.0  ;;  %v1409_v13 = vld [vmem:[#allocation2 + $0x187] sm:$0xff]  ;;  %v1410_v39 = vld [vmem:[#allocation2 + $0x18f] sm:$0xff]  ;;  %v1535_v0 = vmul.f32 %v3535_v6, %v1429_v50  ;;  %v1738_v16 = vmul.f32 %v3564_v36, %v1439_v58  ;;  %v1600_v35 = vmul.f32 %v3540_v54, %v1465_v37 }
 0x18d   : > { %v1445_v55 = vld [vmem:[#allocation2 + $0x188] sm:$0xff]  ;;  %1369 = vst.msk [vmem:[#allocation2 + $0x148] sm:$0xff] %vm1304_vm0, %v1290_v29  ;;  %v1172_v52 = vmul.f32 %v3395_v25, %v1136_v23  ;;  %v1518_v48 = vmul.f32 %v3532_v14, %v1409_v13  ;;  %v1519_v50 = vmul.f32 %v3532_v14, %v1410_v39  ;;  %v1552_v29 = vmul.f32 %v3535_v6, %v1446_v12 }
 0x18e   : > { %1375 = vst.msk [vmem:[#allocation2 + $0x1a8] sm:$0xff] %vm1304_vm0, %v1296_v19  ;;  %v1297_v30 = vmin.f32 %v1265_v42, 6.0  ;;  %v1551_v10 = vmul.f32 %v3535_v6, %v1445_v55  ;;  %v1503_v19 = vmul.f32 %v3532_v14, %v1394_v32  ;;  %v1536_v23 = vmul.f32 %v3535_v6, %v1430_v28  ;;  %v1481_v55 = vld [vmem:[#allocation2 + $0x189] sm:$0xff] }
 0x18f   : > { %v1208_v4 = vadd.f32 %v3406_v31, %v1172_v52  ;;  %v937_v42 = vmul.f32 %v3234_v27, %v888_v46  ;;  %v3615_v58 = vadd.f32 %v1738_v16, %v1705_v40  ;;  %v930_v37 = vmul.f32 %v3234_v27, %v860_v34 }
 0x190   : > { %1376 = vst.msk [vmem:[#allocation2 + $0x1b0] sm:$0xff] %vm1304_vm0, %v1297_v30  ;;  %v985_v41 = vpop.permute.xlu0 %984  ;;  %v1583_v3 = vadd.f32 %v1551_v10, %v1518_v48  ;;  %v3618_v39 = vadd.f32 %v1592_v51, %v1559_v38  ;;  %v1567_v12 = vadd.f32 %v1535_v0, %v1502_v21  ;;  %v1616_v40 = vmul.f32 %v3540_v54, %v1481_v55 }
 0x191   : > { %v1240_v47 = vmax.f32 %v1208_v4, 0.0  ;;  %v1106_v13 = vmul.f32 %v3375_v24, %v985_v41  ;;  %v1482_v4 = vld [vmem:[#allocation2 + $0x191] sm:$0xff]  ;;  %v1584_v16 = vadd.f32 %v1552_v29, %v1519_v50  ;;  %v1568_v34 = vadd.f32 %v1536_v23, %v1503_v19 }
 0x192   : > { %v1045_v52 = vpop.permute.xlu1 %1044  ;;  %v1013_v30 = vpop.permute.xlu2 %1012  ;;  %v1466_v41 = vld [vmem:[#allocation2 + $0x91] sm:$0xff]  ;;  %v3624_v22 = vadd.f32 %v1600_v35, %v1567_v12  ;;  %v3628_v38 = vadd.f32 %v937_v42, %v3210_v53  ;;  %v1617_v50 = vmul.f32 %v3540_v54, %v1482_v4  ;;  %v3639_v53 = vadd.f32 %v930_v37, %v3227_v56 }
 0x193   : > { %v1272_v9 = vmin.f32 %v1240_v47, 6.0  ;;  %v1138_v32 = vadd.f32 %v1106_v13, %v3315_v1  ;;  %v1121_v28 = vmul.f32 %v3375_v24, %v1045_v52  ;;  %v1113_v46 = vmul.f32 %v3375_v24, %v1013_v30 }
 0x194   : > { %v3633_v10 = vld [vmem:[#allocation2 + $0x147] sm:$0xff]  ;;  %v1648_v47 = vadd.f32 %v1616_v40, %v1583_v3  ;;  %v1649_v55 = vadd.f32 %v1617_v50, %v1584_v16 }
 0x195   : > { %1351 = vst.msk [vmem:[#allocation2 + $0x28] sm:$0xff] %vm1304_vm0, %v1272_v9  ;;  %v1174_v21 = vmul.f32 %v3395_v25, %v1138_v32  ;;  %v1153_v1 = vadd.f32 %v1121_v28, %v3362_v8  ;;  %v1145_v0 = vadd.f32 %v1113_v46, %v3337_v33  ;;  %v1411_v48 = vld [vmem:[#allocation2 + $0x1a7] sm:$0xff]  ;;  %v1601_v9 = vmul.f32 %v3540_v54, %v1466_v41 }
 0x196   : > { %v1447_v51 = vld [vmem:[#allocation2 + $0x1a8] sm:$0xff]  ;;  %v1681_v35 = vmul.f32 %v3559_v44, %v1411_v48  ;;  %v1514_v52 = vmul.f32 %v3532_v14, %v3633_v10 }
 0x197   : > { %v1210_v29 = vadd.f32 %v3406_v31, %v1174_v21  ;;  %v1189_v8 = vmul.f32 %v3395_v25, %v1153_v1  ;;  %v1181_v33 = vmul.f32 %v3395_v25, %v1145_v0  ;;  %v1483_v19 = vld [vmem:[#allocation2 + $0x1a9] sm:$0xff]  ;;  %v3648_v30 = vadd.f32 %v1601_v9, %v1568_v34  ;;  %v1484_v50 = vld [vmem:[#allocation2 + $0x1b1] sm:$0xff] }
 0x198   : > { %v1412_v23 = vld [vmem:[#allocation2 + $0x1af] sm:$0xff]  ;;  %v1061_v3 = vpop.permute.xlu0 %1060  ;;  %v1713_v13 = vadd.f32 %v1681_v35, %v1648_v47  ;;  %v3653_v32 = vmul.f32 %v3535_v6, %v1447_v51  ;;  %v1746_v41 = vmul.f32 %v3564_v36, %v1447_v51  ;;  %v1811_v40 = vmul.f32 %v3587_v17, %v1483_v19 }
 0x199   : > { %v3644_v42 = vld [vmem:[#allocation2 + $0x148] sm:$0xff]  ;;  %v1242_v56 = vmax.f32 %v1210_v29, 0.0  ;;  %v1225_v37 = vadd.f32 %v3406_v31, %v1189_v8  ;;  %v1217_v12 = vadd.f32 %v3406_v31, %v1181_v33  ;;  %v1448_v28 = vld [vmem:[#allocation2 + $0x1b0] sm:$0xff]  ;;  %v1682_v16 = vmul.f32 %v3559_v44, %v1412_v23 }
 0x19a   : > { %4847 = vst [vmem:[#allocation17_spill] sm:$0xff] %v3653_v32  ;;  %v1009_v46 = vpop.permute.xlu1 %1008  ;;  %v1085_v4 = vpop.permute.xlu2 %1084  ;;  %v1547_v34 = vmul.f32 %v3535_v6, %v3644_v42  ;;  %v1778_v35 = vadd.f32 %v1746_v41, %v1713_v13  ;;  %v1747_v29 = vmul.f32 %v3564_v36, %v1448_v28  ;;  %v3674_v13 = vmul.f32 %v3535_v6, %v1448_v28 }
 0x19b   : > { %v1274_v21 = vmin.f32 %v1242_v56, 6.0  ;;  %v1257_v1 = vmax.f32 %v1225_v37, 0.0  ;;  %v1249_v0 = vmax.f32 %v1217_v12, 0.0  ;;  %v1112_v48 = vmul.f32 %v3375_v24, %v1009_v46 }
 0x19c   : > { %v1131_v47 = vmul.f32 %v3375_v24, %v1085_v4  ;;  %v1714_v9 = vadd.f32 %v1682_v16, %v1649_v55  ;;  %v1387_v23 = vld [vmem:[#allocation2 + $0x27] sm:$0xff]  ;;  %v3667_v56 = vmul.f32 %v3559_v44, %v3633_v10  ;;  %v3671_v12 = vmul.f32 %v3540_v54, %v1483_v19  ;;  %4850 = vst [vmem:[#allocation9_spill] sm:$0xff] %v3674_v13 }
 0x19d   : > { %1353 = vst.msk [vmem:[#allocation2 + $0x48] sm:$0xff] %vm1304_vm0, %v1274_v21  ;;  %v1289_v51 = vmin.f32 %v1257_v1, 6.0  ;;  %v1281_v8 = vmin.f32 %v1249_v0, 6.0  ;;  %v1144_v33 = vadd.f32 %v1112_v48, %v3300_v59  ;;  %v1423_v46 = vld [vmem:[#allocation2 + $0x28] sm:$0xff]  ;;  %v3678_v4 = vmul.f32 %v3375_v24, %v1061_v3 }
 0x19e   : > { %4848 = vst [vmem:[#allocation15_spill] sm:$0xff] %v3667_v56  ;;  %v1163_v37 = vadd.f32 %v1131_v47, %v3590_v2  ;;  %v1779_v55 = vadd.f32 %v1747_v29, %v1714_v9  ;;  %v3682_v41 = vmul.f32 %v3540_v54, %v1484_v50  ;;  %v3684_v16 = vadd.f32 %v1547_v34, %v1514_v52 }
 0x19f   : > { %4849 = vst [vmem:[#allocation6_spill] sm:$0xff] %v3671_v12  ;;  %v1180_v59 = vmul.f32 %v3395_v25, %v1144_v33  ;;  %v3688_v28 = vadd.f32 %v1811_v40, %v1778_v35  ;;  %v1812_v21 = vmul.f32 %v3587_v17, %v1484_v50  ;;  %v1657_v1 = vmul.f32 %v3559_v44, %v1387_v23 }
 0x1a0   : > { %1368 = vst.msk [vmem:[#allocation2 + $0x130] sm:$0xff] %vm1304_vm0, %v1289_v51  ;;  %v1199_v2 = vmul.f32 %v3395_v25, %v1163_v37  ;;  %v1029_v19 = vpop.permute.xlu0 %1028  ;;  %v3695_v48 = vmul.f32 %v3532_v14, %v1387_v23  ;;  %v3698_v52 = vmul.f32 %v3535_v6, %v1423_v46  ;;  %v1722_v35 = vmul.f32 %v3564_v36, %v1423_v46  ;;  %v2183_v37 = vld [vmem:[%s4784_s7 + $0x8] sm:$0xff] }
 0x1a1   : > { %4851 = vst [vmem:[#allocation8_spill] sm:$0xff] %v3682_v41  ;;  %v1216_v3 = vadd.f32 %v3406_v31, %v1180_v59  ;;  %v1117_v0 = vmul.f32 %v3375_v24, %v1029_v19  ;;  %v3701_v40 = vadd.f32 %v1812_v21, %v1779_v55  ;;  %v3706_v50 = vmul.f32 %v3564_v36, %v3644_v42 }
 0x1a2   : > { %1360 = vst.msk [vmem:[#allocation2 + $0xb0] sm:$0xff] %vm1304_vm0, %v1281_v8  ;;  %v1235_v34 = vadd.f32 %v3406_v31, %v1199_v2  ;;  %v1081_v47 = vpop.permute.xlu1 %1080  ;;  %v989_v9 = vpop.permute.xlu2 %988  ;;  %v1689_v46 = vadd.f32 %v1657_v1, %v3618_v39  ;;  %v1868_v2 = vmul.f32 %v3567_v18, %v3633_v10  ;;  %v1512_v19 = vmul.f32 %v3532_v14, %v3561_v57  ;;  %v2182_v39 = vld [vmem:[%s4784_s7] sm:$0xff] }
 0x1a3   : > { %4852 = vst [vmem:[#allocation5_spill] sm:$0xff] %v3698_v52  ;;  %v1248_v29 = vmax.f32 %v1216_v3, 0.0  ;;  %v1149_v51 = vadd.f32 %v1117_v0, %v3429_v20  ;;  %v1130_v8 = vmul.f32 %v3375_v24, %v1081_v47  ;;  %v1107_v33 = vmul.f32 %v3375_v24, %v989_v9  ;;  %2663 = vmatpush.msra.mxu3 %v2183_v37 }
 0x1a4   : > { %4853 = vst [vmem:[#allocation7_spill] sm:$0xff] %v3706_v50  ;;  %v1267_v23 = vmax.f32 %v1235_v34, 0.0  ;;  %v1389_v55 = vld [vmem:[#allocation2 + $0x47] sm:$0xff]  ;;  %2294 = vmatpush.msra.mxu0 %v2183_v37  ;;  %2662 = vmatpush.msra.mxu2 %v2183_v37  ;;  %v3729_v57 = vmul.f32 %v3582_v43, %v3644_v42 }
 0x1a5   : > { %v1425_v59 = vld [vmem:[#allocation2 + $0x48] sm:$0xff]  ;;  %v1280_v20 = vmin.f32 %v1248_v29, 6.0  ;;  %v1185_v21 = vmul.f32 %v3395_v25, %v1149_v51  ;;  %v1162_v3 = vadd.f32 %v1130_v8, %v3628_v38  ;;  %v1139_v0 = vadd.f32 %v1107_v33, %v3269_v26  ;;  %2661 = vmatpush.msra.mxu1 %v2183_v37  ;;  %2666 = vmatpush.msra.mxu3 %v2182_v39  ;;  %v1422_v51 = vld [vmem:[#allocation2 + $0x10] sm:$0xff] }
 0x1a6   : > { %v1299_v34 = vmin.f32 %v1267_v23, 6.0  ;;  %v1498_v10 = vmul.f32 %v3532_v14, %v1389_v55  ;;  %v1531_v1 = vmul.f32 %v3535_v6, %v1425_v59  ;;  %2295 = vmatpush.msra.mxu0 %v2182_v39  ;;  %v1386_v29 = vld [vmem:[#allocation2 + $0xf] sm:$0xff]  ;;  %v3739_v42 = vmul.f32 %v3559_v44, %v1389_v55  ;;  %2665 = vmatpush.msra.mxu2 %v2182_v39 }
 0x1a7   : > { %1359 = vst.msk [vmem:[#allocation2 + $0xa8] sm:$0xff] %vm1304_vm0, %v1280_v20  ;;  %v1221_v26 = vadd.f32 %v3406_v31, %v1185_v21  ;;  %v1198_v38 = vmul.f32 %v3395_v25, %v1162_v3  ;;  %v1175_v47 = vmul.f32 %v3395_v25, %v1139_v0  ;;  %v1475_v9 = vld [vmem:[#allocation2 + $0x129] sm:$0xff]  ;;  %v3741_v33 = vadd.f32 %v1722_v35, %v1689_v46  ;;  %v1458_v46 = vld [vmem:[#allocation2 + $0x11] sm:$0xff] }
 0x1a8   : > { %1378 = vst.msk [vmem:[#allocation2 + $0x1d0] sm:$0xff] %vm1304_vm0, %v1299_v34  ;;  %v3736_v8 = vadd.f32 %v1531_v1, %v1498_v10  ;;  %v3744_v23 = vadd.f32 %v3604_v62, %v1512_v19  ;;  %v3749_v0 = vmul.f32 %v3564_v36, %v1425_v59  ;;  %2664 = vmatpush.msra.mxu1 %v2182_v39  ;;  %v3761_v32 = vld [vmem:[#allocation2 + $0x12f] sm:$0xff] }
 0x1a9   : > { %4854 = vst [vmem:[#allocation11_spill] sm:$0xff] %v3739_v42  ;;  %v1253_v37 = vmax.f32 %v1221_v26, 0.0  ;;  %v1234_v20 = vadd.f32 %v3406_v31, %v1198_v38  ;;  %v1211_v21 = vadd.f32 %v3406_v31, %v1175_v47  ;;  %v908_v3 = vpop.permute.xlu0 %907  ;;  %v1803_v35 = vmul.f32 %v3587_v17, %v1475_v9  ;;  %v1440_v50 = vld [vmem:[#allocation2 + $0x130] sm:$0xff] }
 0x1aa   : > { %4855 = vst [vmem:[#allocation14_spill] sm:$0xff] %v3744_v23  ;;  %v942_v34 = vmul.f32 %v3234_v27, %v908_v3  ;;  %v981_v10 = vpop.permute.xlu1 %980  ;;  %v1495_v62 = vmul.f32 %v3532_v14, %v1386_v29  ;;  %v1528_v19 = vmul.f32 %v3535_v6, %v1422_v51  ;;  %v3758_v39 = vmul.f32 %v3567_v18, %v1389_v55 }
 0x1ab   : > { %4856 = vst [vmem:[#allocation3_spill] sm:$0xff] %v3749_v0  ;;  %v1285_v1 = vmin.f32 %v1253_v37, 6.0  ;;  %v1266_v26 = vmax.f32 %v1234_v20, 0.0  ;;  %v1243_v38 = vmax.f32 %v1211_v21, 0.0  ;;  %v1105_v47 = vmul.f32 %v3375_v24, %v981_v10  ;;  %v864_v41 = vpop.permute.xlu2 %863  ;;  %v1476_v21 = vld [vmem:[#allocation2 + $0x131] sm:$0xff] }
 0x1ac   : > { %v931_v13 = vmul.f32 %v3234_v27, %v864_v41  ;;  %v1835_v3 = vadd.f32 %v1803_v35, %v3615_v58  ;;  %v1560_v12 = vadd.f32 %v1528_v19, %v1495_v62  ;;  %4857 = vst [vmem:[#allocation10_spill] sm:$0xff] %v3761_v32  ;;  %v1593_v20 = vmul.f32 %v3540_v54, %v1458_v46 }
 0x1ad   : > { %1364 = vst.msk [vmem:[#allocation2 + $0xf0] sm:$0xff] %vm1304_vm0, %v1285_v1  ;;  %v1298_v29 = vmin.f32 %v1266_v26, 6.0  ;;  %v1275_v51 = vmin.f32 %v1243_v38, 6.0  ;;  %v1137_v37 = vadd.f32 %v1105_v47, %v3303_v63  ;;  %v3767_v41 = vadd.f32 %v942_v34, %v3294_v7 }
 0x1ae   : > { %v3770_v55 = vmul.f32 %v3582_v43, %v1425_v59  ;;  %v3773_v58 = vmul.f32 %v3540_v54, %v1475_v9  ;;  %v1900_v10 = vadd.f32 %v1868_v2, %v1835_v3  ;;  %v3778_v62 = vadd.f32 %v931_v13, %v3172_v5  ;;  %v3789_v59 = vld [vmem:[%s4781_s4 + $0x8] ss:$0 sm:$0xff]  ;;  %v1467_v3 = vld [vmem:[#allocation2 + $0xa9] sm:$0xff] }
 0x1af   : > { %4858 = vst [vmem:[#allocation4_spill] sm:$0xff] %v3767_v41  ;;  %v1173_v35 = vmul.f32 %v3395_v25, %v1137_v37  ;;  %v1450_v63 = vld [vmem:[#allocation2 + $0x1d0] sm:$0xff]  ;;  %v3781_v19 = vmul.f32 %v3535_v6, %v1440_v50  ;;  %v1674_v7 = vmul.f32 %v3559_v44, %v3761_v32  ;;  %v3794_v5 = vadd.f32 %v1593_v20, %v1560_v12  ;;  %v3800_v34 = vld [vmem:[#allocation2 + $0xa7] sm:$0xff] }
 0x1b0   : > { %4859 = vst [vmem:[#allocation16_spill] sm:$0xff] %v3773_v58  ;;  %v1486_v46 = vld [vmem:[#allocation2 + $0x1d1] sm:$0xff]  ;;  %v3792_v2 = vmul.f32 %v3535_v6, %v1450_v63  ;;  %v3797_v13 = vmul.f32 %v3540_v54, %v1476_v21  ;;  %v1739_v9 = vmul.f32 %v3564_v36, %v1440_v50  ;;  %v3807_v38 = vmul.f32 %v3564_v36, %v1450_v63  ;;  %v1431_v12 = vld [vmem:[#allocation2 + $0xa8] sm:$0xff] }
 0x1b1   : > { %1377 = vst.msk [vmem:[#allocation2 + $0x1c8] sm:$0xff] %vm1304_vm0, %v1298_v29  ;;  %v1209_v1 = vadd.f32 %v3406_v31, %v1173_v35  ;;  %v3804_v26 = vmul.f32 %v3540_v54, %v1486_v46  ;;  %v3810_v47 = vmul.f32 %v3587_v17, %v1486_v46  ;;  %v3816_v50 = vmul.f32 %v3789_v59, %v1486_v46  ;;  %v1432_v35 = vld [vmem:[#allocation2 + $0xb0] sm:$0xff] }
 0x1b2   : > { %4860 = vst [vmem:[#allocation20_spill] sm:$0xff] %v3781_v19  ;;  %v1053_v29 = vpop.permute.xlu1 %1052  ;;  %v3819_v37 = vadd.f32 %v3729_v57, %v1900_v10  ;;  %v1706_v20 = vadd.f32 %v1674_v7, %v3592_v61  ;;  %v1665_v19 = vmul.f32 %v3559_v44, %v3800_v34  ;;  %v3826_v32 = vld [vmem:[#allocation2 + $0xb1] sm:$0xff]  ;;  %v3829_v46 = vmul.f32 %v3535_v6, %v1431_v12 }
 0x1b3   : > { %1354 = vst.msk [vmem:[#allocation2 + $0x50] sm:$0xff] %vm1304_vm0, %v1275_v51  ;;  %v3813_v51 = vmul.f32 %v3582_v43, %v1450_v63  ;;  %v3832_v57 = vmul.f32 %v3540_v54, %v1467_v3  ;;  %v3835_v61 = vmul.f32 %v3564_v36, %v1431_v12  ;;  %v3848_v12 = vmul.f32 %v3587_v17, %v1467_v3 }
 0x1b4   : > { %4861 = vst [vmem:[#allocation21_spill] sm:$0xff] %v3797_v13  ;;  %v1241_v13 = vmax.f32 %v1209_v1, 0.0  ;;  %v1089_v63 = vpop.permute.xlu2 %1088  ;;  %v1771_v41 = vadd.f32 %v1739_v9, %v1706_v20  ;;  %v1396_v1 = vld [vmem:[#allocation2 + $0xaf] sm:$0xff] }
 0x1b5   : > { %4862 = vst [vmem:[#allocation22_spill] sm:$0xff] %v3800_v34  ;;  %v3864_v3 = vmul.f32 %v3559_v44, %v1396_v1 }
 0x1b6   : > { %4863 = vst [vmem:[#allocation23_spill] sm:$0xff] %v3807_v38  ;;  %v1123_v38 = vmul.f32 %v3375_v24, %v1053_v29  ;;  %v1273_v10 = vmin.f32 %v1241_v13, 6.0  ;;  %v3840_v29 = vmul.f32 %v3535_v6, %v1432_v35 }
 0x1b7   : > { %4864 = vst [vmem:[#allocation24_spill] sm:$0xff] %v3810_v47  ;;  %v1804_v47 = vmul.f32 %v3587_v17, %v1476_v21  ;;  %v1132_v21 = vmul.f32 %v3375_v24, %v1089_v63 }
 0x1b8   : > { %4865 = vst [vmem:[#allocation25_spill] sm:$0xff] %v3829_v46  ;;  %v1155_v7 = vadd.f32 %v1123_v38, %v3639_v53  ;;  %v1413_v34 = vld [vmem:[#allocation2 + $0x1c7] sm:$0xff]  ;;  %v3845_v46 = vadd.f32 %v1665_v19, %v3624_v22  ;;  %v3852_v53 = vmul.f32 %v3540_v54, %v3826_v32 }
 0x1b9   : > { %4866 = vst [vmem:[#allocation26_spill] sm:$0xff] %v3832_v57  ;;  %v1449_v9 = vld [vmem:[#allocation2 + $0x1c8] sm:$0xff]  ;;  %v3842_v56 = vadd.f32 %v1804_v47, %v1771_v41  ;;  %v1164_v38 = vadd.f32 %v1132_v21, %v3502_v49  ;;  %v1522_v63 = vmul.f32 %v3532_v14, %v1413_v34  ;;  %v3861_v19 = vmul.f32 %v3559_v44, %v1413_v34 }
 0x1ba   : > { %4867 = vst [vmem:[#allocation27_spill] sm:$0xff] %v3840_v29  ;;  %v1485_v20 = vld [vmem:[#allocation2 + $0x1c9] sm:$0xff]  ;;  %v1191_v13 = vmul.f32 %v3395_v25, %v1155_v7  ;;  %v1555_v41 = vmul.f32 %v3535_v6, %v1449_v9  ;;  %v1876_v21 = vmul.f32 %v3567_v18, %v1413_v34  ;;  %v1017_v29 = vpop.permute.xlu1 %1016  ;;  %v3873_v57 = vmul.f32 %v3564_v36, %v1449_v9 }
 0x1bb   : > { %4868 = vst [vmem:[#allocation28_spill] sm:$0xff] %v3852_v53  ;;  %v1414_v47 = vld [vmem:[#allocation2 + $0x1cf] sm:$0xff]  ;;  %v1620_v22 = vmul.f32 %v3540_v54, %v1485_v20  ;;  %v3867_v53 = vmul.f32 %v3564_v36, %v1432_v35  ;;  %v1200_v49 = vmul.f32 %v3395_v25, %v1164_v38  ;;  %v3876_v58 = vmul.f32 %v3587_v17, %v1485_v20 }
 0x1bc   : > { %1352 = vst.msk [vmem:[#allocation2 + $0x30] sm:$0xff] %vm1304_vm0, %v1273_v10  ;;  %v1227_v10 = vadd.f32 %v3406_v31, %v1191_v13  ;;  %v1587_v7 = vadd.f32 %v1555_v41, %v1522_v63  ;;  %v1941_v1 = vmul.f32 %v3582_v43, %v1449_v9  ;;  %v1461_v35 = vld [vmem:[#allocation2 + $0x49] sm:$0xff]  ;;  %v1114_v38 = vmul.f32 %v3375_v24, %v1017_v29 }
 0x1bd   : > { %4869 = vst [vmem:[#allocation29_spill] sm:$0xff] %v3861_v19  ;;  %v1523_v19 = vmul.f32 %v3532_v14, %v1414_v47  ;;  %v1236_v13 = vadd.f32 %v3406_v31, %v1200_v49  ;;  %v1908_v34 = vadd.f32 %v1876_v21, %v3688_v28  ;;  %v2006_v41 = vmul.f32 %v3789_v59, %v1485_v20  ;;  %v900_v52 = vpop.permute.xlu2 %899  ;;  %v3894_v28 = vld [vmem:[%s4782_s5] ss:$0 sm:$0xff] }
 0x1be   : > { %4870 = vst [vmem:[#allocation30_spill] sm:$0xff] %v3873_v57  ;;  %v1259_v23 = vmax.f32 %v1227_v10, 0.0  ;;  %v3882_v63 = vadd.f32 %v1620_v22, %v1587_v7  ;;  %v1146_v42 = vadd.f32 %v1114_v38, %v3390_v45  ;;  %v1596_v10 = vmul.f32 %v3540_v54, %v1461_v35 }
 0x1bf   : > { %4871 = vst [vmem:[#allocation31_spill] sm:$0xff] %v3876_v58  ;;  %v1588_v57 = vadd.f32 %v3792_v2, %v1523_v19  ;;  %v1877_v58 = vmul.f32 %v3567_v18, %v1414_v47  ;;  %v1268_v9 = vmax.f32 %v1236_v13, 0.0  ;;  %v940_v49 = vmul.f32 %v3234_v27, %v900_v52 }
 0x1c0   : > { %4872 = vst [vmem:[#allocation32_spill] sm:$0xff] %v3882_v63  ;;  %v1291_v0 = vmin.f32 %v1259_v23, 6.0  ;;  %v1973_v29 = vadd.f32 %v1941_v1, %v1908_v34  ;;  %v1182_v22 = vmul.f32 %v3395_v25, %v1146_v42  ;;  %v3903_v19 = vmul.f32 %v3559_v44, %v1414_v47  ;;  %v3918_v42 = vld [vmem:[#allocation2 + $0x4f] sm:$0xff] }
 0x1c1   : > { %v3897_v20 = vadd.f32 %v3804_v26, %v1588_v57  ;;  %v1909_v2 = vadd.f32 %v1877_v58, %v3701_v40  ;;  %v1300_v45 = vmin.f32 %v1268_v9, 6.0  ;;  %v3906_v52 = vmul.f32 %v3587_v17, %v1461_v35  ;;  %v3911_v26 = vld [vmem:[%s4783_s6] ss:$0 sm:$0xff]  ;;  %v3920_v58 = vld [vmem:[#allocation2 + $0x50] sm:$0xff] }
 0x1c2   : > { %1370 = vst.msk [vmem:[#allocation2 + $0x150] sm:$0xff] %vm1304_vm0, %v1291_v0  ;;  %v2038_v21 = vadd.f32 %v2006_v41, %v1973_v29  ;;  %v1218_v57 = vadd.f32 %v3406_v31, %v1182_v22  ;;  %v3925_v47 = vadd.f32 %v940_v49, %v3229_v15  ;;  %v3928_v1 = vadd.f32 %v1596_v10, %v3736_v8  ;;  %v1021_v38 = vpop.permute.xlu1 %1020 }
 0x1c3   : > { %4873 = vst [vmem:[#allocation33_spill] sm:$0xff] %v3897_v20  ;;  %v1459_v23 = vld [vmem:[#allocation2 + $0x29] sm:$0xff]  ;;  %v1974_v40 = vadd.f32 %v3813_v51, %v1909_v2  ;;  %v1982_v51 = vmul.f32 %v3789_v59, %v1461_v35  ;;  %v1460_v29 = vld [vmem:[#allocation2 + $0x31] sm:$0xff]  ;;  %v1115_v8 = vmul.f32 %v3375_v24, %v1021_v38  ;;  %v1499_v35 = vmul.f32 %v3532_v14, %v3918_v42 }
 0x1c4   : > { %4874 = vst [vmem:[#allocation34_spill] sm:$0xff] %v3903_v19  ;;  %v1388_v7 = vld [vmem:[#allocation2 + $0x2f] sm:$0xff]  ;;  %v3915_v0 = vmul.f32 %v3540_v54, %v1459_v23  ;;  %v1787_v25 = vmul.f32 %v3587_v17, %v1459_v23  ;;  %v2074_v34 = vmul.f32 %v3894_v28, %v2038_v21  ;;  %v1250_v15 = vmax.f32 %v1218_v57, 0.0 }
 0x1c5   : > { %1379 = vst.msk [vmem:[#allocation2 + $0x1e8] sm:$0xff] %vm1304_vm0, %v1300_v45  ;;  %v1424_v13 = vld [vmem:[#allocation2 + $0x30] sm:$0xff]  ;;  %v2039_v41 = vadd.f32 %v3816_v50, %v1974_v40  ;;  %v3937_v31 = vmul.f32 %v3532_v14, %v1388_v7  ;;  %v1532_v10 = vmul.f32 %v3535_v6, %v3920_v58  ;;  %v1147_v22 = vadd.f32 %v1115_v8, %v3318_v60  ;;  %v3963_v60 = vld [vmem:[%s4779_s2] ss:$0 sm:$0xff] }
 0x1c6   : > { %v1819_v9 = vadd.f32 %v1787_v25, %v3741_v33  ;;  %v3934_v2 = vld [vmem:[#allocation2 + $0x51] sm:$0xff]  ;;  %v2110_v49 = vadd.f32 %v3911_v26, %v2074_v34  ;;  %v3948_v23 = vmul.f32 %v3535_v6, %v1424_v13  ;;  %v1282_v45 = vmin.f32 %v1250_v15, 6.0  ;;  %v993_v25 = vpop.permute.xlu2 %992 }
 0x1c7   : > { %v2075_v50 = vmul.f32 %v3894_v28, %v2039_v41  ;;  %v3952_v21 = vmul.f32 %v3540_v54, %v1460_v29  ;;  %v1597_v40 = vmul.f32 %v3540_v54, %v3934_v2  ;;  %v1108_v15 = vmul.f32 %v3375_v24, %v993_v25 }
 0x1c8   : > { %v1884_v33 = vadd.f32 %v3758_v39, %v1819_v9  ;;  %v2142_v57 = vmax.f32 %v2110_v49, 0.0  ;;  %v1658_v39 = vmul.f32 %v3559_v44, %v1388_v7  ;;  %1361 = vst.msk [vmem:[#allocation2 + $0xc8] sm:$0xff] %vm1304_vm0, %v1282_v45  ;;  %v1183_v9 = vmul.f32 %v3963_v60, %v1147_v22 }
 0x1c9   : > { %v2111_v38 = vadd.f32 %v3911_v26, %v2075_v50  ;;  %v1477_v41 = vld [vmem:[#allocation2 + $0x149] sm:$0xff]  ;;  %v1564_v49 = vadd.f32 %v1532_v10, %v1499_v35  ;;  %v3971_v7 = vmul.f32 %v3559_v44, %v3918_v42  ;;  %v1140_v22 = vadd.f32 %v1108_v15, %v3332_v11 }
 0x1ca   : > { %v1949_v34 = vadd.f32 %v3770_v55, %v1884_v33  ;;  %v1612_v8 = vmul.f32 %v3540_v54, %v1477_v41  ;;  %v2174_v50 = vmin.f32 %v2142_v57, 6.0  ;;  %v1998_v55 = vmul.f32 %v3789_v59, %v1477_v41  ;;  %v3976_v33 = vld [vmem:[%s4780_s3] ss:$0 sm:$0xff]  ;;  %v1057_v35 = vpop.permute.xlu1 %1056 }
 0x1cb   : > { %v1219_v45 = vadd.f32 %v3976_v33, %v1183_v9  ;;  %v2143_v10 = vmax.f32 %v2111_v38, 0.0  ;;  %v1690_v63 = vadd.f32 %v1658_v39, %v3794_v5  ;;  %v1176_v9 = vmul.f32 %v3963_v60, %v1140_v22 }
 0x1cc   : > { %v2014_v20 = vadd.f32 %v1982_v51, %v1949_v34  ;;  %v3981_v25 = vadd.f32 %v1612_v8, %v3684_v16  ;;  %v3984_v51 = vmul.f32 %v3587_v17, %v1477_v41  ;;  %2651 = vmatmul.msk.f32.vlgmr.msra.gmra.mxu3 %vm1304_vm0, %v2174_v50  ;;  %v2030_v34 = vadd.f32 %v1998_v55, %v3819_v37 }
 0x1cd   : > { %v1251_v19 = vmax.f32 %v1219_v45, 0.0  ;;  %v1124_v11 = vmul.f32 %v3375_v24, %v1057_v35  ;;  %v1723_v16 = vmul.f32 %v3564_v36, %v1424_v13  ;;  %v3995_v8 = vadd.f32 %v1597_v40, %v1564_v49  ;;  %v1406_v35 = vld [vmem:[#allocation2 + $0x14f] sm:$0xff] }
 0x1ce   : > { %v2050_v57 = vmul.f32 %v3894_v28, %v2014_v20  ;;  %v2066_v15 = vmul.f32 %v3894_v28, %v2030_v34  ;;  %v1788_v38 = vmul.f32 %v3587_v17, %v1460_v29  ;;  %v1212_v37 = vadd.f32 %v3976_v33, %v1176_v9  ;;  %v997_v50 = vpop.permute.xlu2 %996 }
 0x1cf   : > { %v1283_v20 = vmin.f32 %v1251_v19, 6.0  ;;  %v1156_v5 = vadd.f32 %v1124_v11, %v3778_v62  ;;  %v1755_v39 = vadd.f32 %v1723_v16, %v1690_v63  ;;  %v2175_v55 = vmin.f32 %v2143_v10, 6.0  ;;  %v4875_v11 = vld [vmem:[#allocation19_spill] sm:$0xff] }
 0x1d0   : > { %v2086_v41 = vadd.f32 %v3911_v26, %v2050_v57  ;;  %v2102_v22 = vadd.f32 %v3911_v26, %v2066_v15  ;;  %v1853_v13 = vmul.f32 %v3567_v18, %v3918_v42  ;;  %v1244_v40 = vmax.f32 %v1212_v37, 0.0  ;;  %v1442_v57 = vld [vmem:[#allocation2 + $0x150] sm:$0xff] }
 0x1d1   : > { %1362 = vst.msk [vmem:[#allocation2 + $0xd0] sm:$0xff] %vm1304_vm0, %v1283_v20  ;;  %v1192_v49 = vmul.f32 %v3963_v60, %v1156_v5  ;;  %v1109_v19 = vmul.f32 %v3375_v24, %v997_v50  ;;  %v1820_v29 = vadd.f32 %v1788_v38, %v1755_v39  ;;  %v4008_v10 = vmul.f32 %v3564_v36, %v3920_v58  ;;  %v1478_v15 = vld [vmem:[#allocation2 + $0x151] sm:$0xff] }
 0x1d2   : > { %v2118_v45 = vmax.f32 %v2086_v41, 0.0  ;;  %v2134_v63 = vmax.f32 %v2102_v22, 0.0  ;;  %v1918_v34 = vmul.f32 %v3582_v43, %v3920_v58  ;;  %v1276_v42 = vmin.f32 %v1244_v40, 6.0 }
 0x1d3   : > { %v1228_v9 = vadd.f32 %v3976_v33, %v1192_v49  ;;  %v1141_v16 = vadd.f32 %v1109_v19, %v4875_v11  ;;  %v1885_v41 = vadd.f32 %v1853_v13, %v1820_v29  ;;  %v4018_v20 = vmul.f32 %v3587_v17, %v3934_v2  ;;  %v868_v50 = vpop.permute.xlu1 %867 }
 0x1d4   : > { %v2150_v62 = vmin.f32 %v2118_v45, 6.0  ;;  %2652 = vmatmul.msk.f32.gmra.mxu3 %vm1304_vm0, %v2175_v55  ;;  %v2166_v38 = vmin.f32 %v2134_v63, 6.0  ;;  %v1515_v37 = vmul.f32 %v3532_v14, %v1406_v35  ;;  %v1548_v58 = vmul.f32 %v3535_v6, %v1442_v57  ;;  %1355 = vst.msk [vmem:[#allocation2 + $0x68] sm:$0xff] %vm1304_vm0, %v1276_v42  ;;  %v1433_v42 = vld [vmem:[#allocation2 + $0xc8] sm:$0xff] }
 0x1d5   : > { %v1260_v5 = vmax.f32 %v1228_v9, 0.0  ;;  %v1177_v39 = vmul.f32 %v3963_v60, %v1141_v16  ;;  %v1950_v45 = vadd.f32 %v1918_v34, %v1885_v41  ;;  %v1983_v55 = vmul.f32 %v3789_v59, %v3934_v2  ;;  %v1397_v34 = vld [vmem:[#allocation2 + $0xc7] sm:$0xff]  ;;  %v4876_v9 = vld [vmem:[#allocation18_spill] sm:$0xff] }
 0x1d6   : > { %2627 = vmatmul.msk.f32.vlgmr.msra.gmra.mxu0 %vm1304_vm0, %v2150_v62  ;;  %v932_v22 = vmul.f32 %v3234_v27, %v868_v50  ;;  %2643 = vmatmul.msk.f32.vlgmr.msra.gmra.mxu2 %vm1304_vm0, %v2166_v38  ;;  %v1580_v13 = vadd.f32 %v1548_v58, %v1515_v37  ;;  %v1613_v40 = vmul.f32 %v3540_v54, %v1478_v15 }
 0x1d7   : > { %v4030_v49 = vmul.f32 %v3559_v44, %v1406_v35  ;;  %v1292_v19 = vmin.f32 %v1260_v5, 6.0  ;;  %v1213_v29 = vadd.f32 %v3976_v33, %v1177_v39  ;;  %v2015_v62 = vadd.f32 %v1983_v55, %v1950_v45  ;;  %v1097_v39 = vpop.permute.xlu2 %1096 }
 0x1d8   : > { %v1869_v63 = vmul.f32 %v3567_v18, %v1406_v35  ;;  %v964_v2 = vadd.f32 %v932_v22, %v4876_v9  ;;  %v4035_v11 = vadd.f32 %v1613_v40, %v1580_v13  ;;  %v4038_v16 = vmul.f32 %v3564_v36, %v1442_v57  ;;  %v1469_v38 = vld [vmem:[#allocation2 + $0xc9] sm:$0xff] }
 0x1d9   : > { %v4041_v41 = vmul.f32 %v3587_v17, %v1478_v15  ;;  %1371 = vst.msk [vmem:[#allocation2 + $0x168] sm:$0xff] %vm1304_vm0, %v1292_v19  ;;  %v1245_v37 = vmax.f32 %v1213_v29, 0.0  ;;  %v2051_v58 = vmul.f32 %v3894_v28, %v2015_v62  ;;  %v1934_v5 = vmul.f32 %v3582_v43, %v1442_v57 }
 0x1da   : > { %4877 = vst [vmem:[#allocation19_spill] sm:$0xff] %v4035_v11  ;;  %v1901_v35 = vadd.f32 %v1869_v63, %v3842_v56  ;;  %v1157_v50 = vadd.f32 %v3678_v4, %v964_v2  ;;  %v1506_v45 = vmul.f32 %v3532_v14, %v1397_v34  ;;  %v1539_v55 = vmul.f32 %v3535_v6, %v1433_v42  ;;  %v4893_v11 = vld [vmem:[#allocation7_spill] sm:$0xff] }
 0x1db   : > { %v1604_v22 = vmul.f32 %v3540_v54, %v1469_v38  ;;  %v1277_v13 = vmin.f32 %v1245_v37, 6.0  ;;  %v2087_v40 = vadd.f32 %v3911_v26, %v2051_v58  ;;  %v1999_v29 = vmul.f32 %v3789_v59, %v1478_v15  ;;  %v1398_v58 = vld [vmem:[#allocation2 + $0xcf] sm:$0xff] }
 0x1dc   : > { %v1966_v19 = vadd.f32 %v1934_v5, %v1901_v35  ;;  %v1193_v62 = vmul.f32 %v3963_v60, %v1157_v50  ;;  %v4055_v56 = vmul.f32 %v3375_v24, %v1097_v39  ;;  %v1571_v57 = vadd.f32 %v1539_v55, %v1506_v45  ;;  %v1434_v15 = vld [vmem:[#allocation2 + $0xd0] sm:$0xff]  ;;  %v1093_v5 = vpop.permute.xlu1 %1092 }
 0x1dd   : > { %v1762_v4 = vadd.f32 %v3835_v61, %v3845_v46  ;;  %1356 = vst.msk [vmem:[#allocation2 + $0x70] sm:$0xff] %vm1304_vm0, %v1277_v13  ;;  %v2119_v63 = vmax.f32 %v2087_v40, 0.0  ;;  %v4061_v2 = vmul.f32 %v3559_v44, %v1397_v34  ;;  %v1860_v37 = vmul.f32 %v3567_v18, %v1397_v34  ;;  %v1470_v61 = vld [vmem:[#allocation2 + $0xd1] sm:$0xff] }
 0x1de   : > { %v2031_v9 = vadd.f32 %v1999_v29, %v1966_v19  ;;  %v1229_v35 = vadd.f32 %v3976_v33, %v1193_v62  ;;  %v4065_v39 = vadd.f32 %v1604_v22, %v1571_v57  ;;  %v1925_v46 = vmul.f32 %v3582_v43, %v1433_v42 }
 0x1df   : > { %v1827_v50 = vadd.f32 %v3848_v12, %v1762_v4  ;;  %v2151_v45 = vmin.f32 %v2119_v63, 6.0  ;;  %v1133_v13 = vmul.f32 %v3375_v24, %v1093_v5  ;;  %v1990_v40 = vmul.f32 %v3789_v59, %v1469_v38 }
 0x1e0   : > { %4878 = vst [vmem:[#allocation18_spill] sm:$0xff] %v4065_v39  ;;  %v2067_v55 = vmul.f32 %v3894_v28, %v2031_v9  ;;  %v1261_v34 = vmax.f32 %v1229_v35, 0.0  ;;  %v1507_v29 = vmul.f32 %v3532_v14, %v1398_v58  ;;  %v1540_v62 = vmul.f32 %v3535_v6, %v1434_v15 }
 0x1e1   : > { %v1892_v19 = vadd.f32 %v1860_v37, %v1827_v50  ;;  %2628 = vmatmul.msk.f32.gmra.mxu0 %vm1304_vm0, %v2151_v45  ;;  %v1165_v22 = vadd.f32 %v1133_v13, %v3925_v47  ;;  %v4078_v57 = vmul.f32 %v3564_v36, %v1433_v42  ;;  %v1605_v4 = vmul.f32 %v3540_v54, %v1470_v61  ;;  %v1391_v47 = vld [vmem:[#allocation2 + $0x67] sm:$0xff] }
 0x1e2   : > { %v2103_v12 = vadd.f32 %v3911_v26, %v2067_v55  ;;  %v1293_v63 = vmin.f32 %v1261_v34, 6.0  ;;  %v1572_v5 = vadd.f32 %v1540_v62, %v1507_v29  ;;  %v1698_v37 = vadd.f32 %v3864_v3, %v3648_v30  ;;  %v1427_v3 = vld [vmem:[#allocation2 + $0x68] sm:$0xff] }
 0x1e3   : > { %v1957_v9 = vadd.f32 %v1925_v46, %v1892_v19  ;;  %v1201_v50 = vmul.f32 %v3963_v60, %v1165_v22  ;;  %v4085_v45 = vmul.f32 %v3587_v17, %v1469_v38  ;;  %v4088_v55 = vmul.f32 %v3559_v44, %v1398_v58 }
 0x1e4   : > { %v2135_v35 = vmax.f32 %v2103_v12, 0.0  ;;  %1372 = vst.msk [vmem:[#allocation2 + $0x170] sm:$0xff] %vm1304_vm0, %v1293_v63  ;;  %v4091_v13 = vadd.f32 %v1605_v4, %v1572_v5  ;;  %v1763_v46 = vadd.f32 %v3867_v53, %v1698_v37  ;;  %v1796_v30 = vmul.f32 %v3587_v17, %v3826_v32  ;;  %v1463_v62 = vld [vmem:[#allocation2 + $0x69] sm:$0xff] }
 0x1e5   : > { %4879 = vst [vmem:[#allocation35_spill] sm:$0xff] %v4085_v45  ;;  %v2022_v42 = vadd.f32 %v1990_v40, %v1957_v9  ;;  %v1237_v19 = vadd.f32 %v3976_v33, %v1201_v50  ;;  %v4098_v38 = vmul.f32 %v3564_v36, %v1434_v15  ;;  %v1861_v29 = vmul.f32 %v3567_v18, %v1398_v58  ;;  %v1025_v40 = vpop.permute.xlu1 %1024  ;;  %v4884_v5 = vld [vmem:[#allocation5_spill] sm:$0xff] }
 0x1e6   : > { %4880 = vst [vmem:[#allocation36_spill] sm:$0xff] %v4088_v55  ;;  %v2167_v34 = vmin.f32 %v2135_v35, 6.0  ;;  %v4103_v22 = vmul.f32 %v3587_v17, %v1470_v61  ;;  %v1828_v53 = vadd.f32 %v1796_v30, %v1763_v46  ;;  %v1500_v4 = vmul.f32 %v3532_v14, %v1391_v47  ;;  %v4885_v30 = vld [vmem:[#allocation12_spill] sm:$0xff]  ;;  %v1428_v55 = vld [vmem:[#allocation2 + $0x70] sm:$0xff] }
 0x1e7   : > { %4881 = vst [vmem:[#allocation37_spill] sm:$0xff] %v4091_v13  ;;  %v2058_v12 = vmul.f32 %v3894_v28, %v2022_v42  ;;  %v1269_v32 = vmax.f32 %v1237_v19, 0.0  ;;  %v1116_v63 = vmul.f32 %v3375_v24, %v1025_v40  ;;  %v1533_v9 = vmul.f32 %v3535_v6, %v1427_v3 }
 0x1e8   : > { %4882 = vst [vmem:[#allocation38_spill] sm:$0xff] %v4098_v38  ;;  %2644 = vmatmul.msk.f32.gmra.mxu2 %vm1304_vm0, %v2167_v34  ;;  %v1561_v58 = vadd.f32 %v4884_v5, %v3695_v48  ;;  %v1893_v35 = vadd.f32 %v1861_v29, %v1828_v53  ;;  %v1926_v50 = vmul.f32 %v3582_v43, %v1434_v15  ;;  %v1407_v48 = vld [vmem:[#allocation2 + $0x167] sm:$0xff] }
 0x1e9   : > { %4883 = vst [vmem:[#allocation39_spill] sm:$0xff] %v4103_v22  ;;  %v2094_v37 = vadd.f32 %v3911_v26, %v2058_v12  ;;  %v1598_v42 = vmul.f32 %v3540_v54, %v1463_v62  ;;  %v1301_v46 = vmin.f32 %v1269_v32, 6.0  ;;  %v1148_v13 = vadd.f32 %v1116_v63, %v4885_v30  ;;  %v1443_v12 = vld [vmem:[#allocation2 + $0x168] sm:$0xff]  ;;  %v4886_v29 = vld [vmem:[#allocation11_spill] sm:$0xff] }
 0x1ea   : > { %v1991_v34 = vmul.f32 %v3789_v59, %v1470_v61  ;;  %v1626_v19 = vadd.f32 %v3915_v0, %v1561_v58  ;;  %v1958_v39 = vadd.f32 %v1926_v50, %v1893_v35  ;;  %v1565_v22 = vadd.f32 %v1533_v9, %v1500_v4 }
 0x1eb   : > { %v2126_v40 = vmax.f32 %v2094_v37, 0.0  ;;  %v4118_v38 = vmul.f32 %v3559_v44, %v1391_v47  ;;  %1380 = vst.msk [vmem:[#allocation2 + $0x1f0] sm:$0xff] %vm1304_vm0, %v1301_v46  ;;  %v1184_v15 = vmul.f32 %v3963_v60, %v1148_v13  ;;  %v4124_v32 = vmul.f32 %v3564_v36, %v1427_v3  ;;  %v1479_v5 = vld [vmem:[#allocation2 + $0x169] sm:$0xff]  ;;  %v4888_v37 = vld [vmem:[#allocation3_spill] sm:$0xff] }
 0x1ec   : > { %v1691_v53 = vadd.f32 %v4886_v29, %v1626_v19  ;;  %v4127_v61 = vmul.f32 %v3587_v17, %v1463_v62  ;;  %v2023_v63 = vadd.f32 %v1991_v34, %v1958_v39  ;;  %v4129_v4 = vadd.f32 %v1598_v42, %v1565_v22  ;;  %v4889_v22 = vld [vmem:[#allocation14_spill] sm:$0xff]  ;;  %v4890_v42 = vld [vmem:[#allocation16_spill] sm:$0xff] }
 0x1ed   : > { %v2158_v0 = vmin.f32 %v2126_v40, 6.0  ;;  %v1854_v9 = vmul.f32 %v3567_v18, %v1391_v47  ;;  %v1220_v58 = vadd.f32 %v3976_v33, %v1184_v15  ;;  %v1516_v13 = vmul.f32 %v3532_v14, %v1407_v48  ;;  %v904_v19 = vpop.permute.xlu1 %903 }
 0x1ee   : > { %4887 = vst [vmem:[#allocation5_spill] sm:$0xff] %v4129_v4  ;;  %v1756_v35 = vadd.f32 %v4888_v37, %v1691_v53  ;;  %v1549_v50 = vmul.f32 %v3535_v6, %v1443_v12  ;;  %v2059_v46 = vmul.f32 %v3894_v28, %v2023_v63  ;;  %v1919_v30 = vmul.f32 %v3582_v43, %v1427_v3  ;;  %v4891_v3 = vld [vmem:[#allocation15_spill] sm:$0xff] }
 0x1ef   : > { %2635 = vmatmul.msk.f32.vlgmr.msra.gmra.mxu1 %vm1304_vm0, %v2158_v0  ;;  %v1984_v39 = vmul.f32 %v3789_v59, %v1463_v62  ;;  %v1642_v47 = vadd.f32 %v4890_v42, %v4889_v22  ;;  %v1252_v34 = vmax.f32 %v1220_v58, 0.0  ;;  %v1614_v15 = vmul.f32 %v3540_v54, %v1479_v5  ;;  %v1392_v62 = vld [vmem:[#allocation2 + $0x6f] sm:$0xff] }
 0x1f0   : > { %v1821_v40 = vadd.f32 %v3906_v52, %v1756_v35  ;;  %v4145_v29 = vmul.f32 %v3559_v44, %v1407_v48  ;;  %v2095_v53 = vadd.f32 %v3911_v26, %v2059_v46  ;;  %v941_v0 = vmul.f32 %v3234_v27, %v904_v19  ;;  %v4892_v42 = vld [vmem:[#allocation13_spill] sm:$0xff] }
 0x1f1   : > { %v1581_v63 = vadd.f32 %v1549_v50, %v1516_v13  ;;  %v1707_v37 = vadd.f32 %v4891_v3, %v1642_v47  ;;  %v1284_v4 = vmin.f32 %v1252_v34, 6.0  ;;  %v4151_v58 = vmul.f32 %v3564_v36, %v1443_v12  ;;  %v1464_v13 = vld [vmem:[#allocation2 + $0x71] sm:$0xff] }
 0x1f2   : > { %v1886_v22 = vadd.f32 %v1854_v9, %v1821_v40  ;;  %v4154_v52 = vmul.f32 %v3587_v17, %v1479_v5  ;;  %v2127_v35 = vmax.f32 %v2095_v53, 0.0  ;;  %v973_v45 = vadd.f32 %v941_v0, %v4892_v42 }
 0x1f3   : > { %v1772_v46 = vadd.f32 %v4893_v11, %v1707_v37  ;;  %v1870_v27 = vmul.f32 %v3567_v18, %v1407_v48  ;;  %1363 = vst.msk [vmem:[#allocation2 + $0xe8] sm:$0xff] %vm1304_vm0, %v1284_v4  ;;  %v4160_v47 = vadd.f32 %v1614_v15, %v1581_v63  ;;  %v1501_v9 = vmul.f32 %v3532_v14, %v1392_v62 }
 0x1f4   : > { %v1951_v50 = vadd.f32 %v1919_v30, %v1886_v22  ;;  %v1534_v34 = vmul.f32 %v3535_v6, %v1428_v55  ;;  %v2159_v19 = vmin.f32 %v2127_v35, 6.0  ;;  %v1166_v40 = vadd.f32 %v4055_v56, %v973_v45 }
 0x1f5   : > { %v1837_v53 = vadd.f32 %v3984_v51, %v1772_v46  ;;  %v1562_v11 = vadd.f32 %v3948_v23, %v3937_v31  ;;  %v1935_v48 = vmul.f32 %v3582_v43, %v1443_v12  ;;  %v1599_v4 = vmul.f32 %v3540_v54, %v1464_v13  ;;  %v1415_v12 = vld [vmem:[#allocation2 + $0x1e7] sm:$0xff] }
 0x1f6   : > { %v2016_v0 = vadd.f32 %v1984_v39, %v1951_v50  ;;  %v1566_v3 = vadd.f32 %v1534_v34, %v1501_v9  ;;  %v1202_v30 = vmul.f32 %v3963_v60, %v1166_v40  ;;  %v2000_v63 = vmul.f32 %v3789_v59, %v1479_v5  ;;  %v1101_v37 = vpop.permute.xlu1 %1100  ;;  %v1487_v50 = vld [vmem:[#allocation2 + $0x1e9] sm:$0xff] }
 0x1f7   : > { %2636 = vmatmul.msk.f32.gmra.mxu1 %vm1304_vm0, %v2159_v19  ;;  %v1902_v15 = vadd.f32 %v1870_v27, %v1837_v53  ;;  %v1627_v56 = vadd.f32 %v3952_v21, %v1562_v11  ;;  %v4178_v31 = vmul.f32 %v3559_v44, %v1392_v62  ;;  %v4181_v23 = vmul.f32 %v3564_v36, %v1428_v55  ;;  %v1451_v21 = vld [vmem:[#allocation2 + $0x1e8] sm:$0xff] }
 0x1f8   : > { %v2052_v51 = vmul.f32 %v3894_v28, %v2016_v0  ;;  %v4175_v45 = vadd.f32 %v1599_v4, %v1566_v3  ;;  %v1238_v39 = vadd.f32 %v3976_v33, %v1202_v30  ;;  %v4186_v5 = vmul.f32 %v3587_v17, %v1464_v13  ;;  %v4191_v9 = vld [vmem:[#allocation2 + $0x1a7] sm:$0xff] }
 0x1f9   : > { %v1967_v22 = vadd.f32 %v1935_v48, %v1902_v15  ;;  %v1692_v35 = vadd.f32 %v3971_v7, %v1627_v56  ;;  %v1135_v46 = vmul.f32 %v3375_v24, %v1101_v37  ;;  %v1855_v27 = vmul.f32 %v3567_v18, %v1392_v62  ;;  %v4894_v0 = vld [vmem:[#allocation4_spill] sm:$0xff]  ;;  %v4895_v24 = vld [vmem:[#allocation17_spill] sm:$0xff] }
 0x1fa   : > { %v2088_v42 = vadd.f32 %v3911_v26, %v2052_v51  ;;  %v1520_v34 = vmul.f32 %v4191_v9, %v3532_v14  ;;  %v1270_v19 = vmax.f32 %v1238_v39, 0.0  ;;  %v1524_v53 = vmul.f32 %v3532_v14, %v1415_v12  ;;  %v4896_v39 = vld [vmem:[#allocation6_spill] sm:$0xff] }
 0x1fb   : > { %v2032_v40 = vadd.f32 %v2000_v63, %v1967_v22  ;;  %v1757_v7 = vadd.f32 %v4008_v10, %v1692_v35  ;;  %v1167_v48 = vadd.f32 %v1135_v46, %v4894_v0  ;;  %v1557_v3 = vmul.f32 %v3535_v6, %v1451_v21 }
 0x1fc   : > { %v2120_v11 = vmax.f32 %v2088_v42, 0.0  ;;  %v1585_v4 = vadd.f32 %v4895_v24, %v1520_v34  ;;  %v1302_v62 = vmin.f32 %v1270_v19, 6.0  ;;  %v1622_v56 = vmul.f32 %v3540_v54, %v1487_v50  ;;  %v1480_v24 = vld [vmem:[#allocation2 + $0x171] sm:$0xff] }
 0x1fd   : > { %v2068_v30 = vmul.f32 %v3894_v28, %v2032_v40  ;;  %v1822_v15 = vadd.f32 %v4018_v20, %v1757_v7  ;;  %v1203_v63 = vmul.f32 %v3963_v60, %v1167_v48  ;;  %v1920_v10 = vmul.f32 %v3582_v43, %v1428_v55  ;;  %v4897_v60 = vld [vmem:[#allocation29_spill] sm:$0xff]  ;;  %v4899_v48 = vld [vmem:[#allocation30_spill] sm:$0xff] }
 0x1fe   : > { %v2152_v51 = vmin.f32 %v2120_v11, 6.0  ;;  %v1650_v37 = vadd.f32 %v4896_v39, %v1585_v4  ;;  %1381 = vst.msk [vmem:[#allocation2 + $0x208] sm:$0xff] %vm1304_vm0, %v1302_v62  ;;  %v1985_v42 = vmul.f32 %v3789_v59, %v1464_v13  ;;  %v1589_v46 = vadd.f32 %v1557_v3, %v1524_v53  ;;  %v1408_v40 = vld [vmem:[#allocation2 + $0x16f] sm:$0xff]  ;;  %v4900_v4 = vld [vmem:[#allocation10_spill] sm:$0xff] }
 0x1ff   : > { %v2104_v22 = vadd.f32 %v3911_v26, %v2068_v30  ;;  %v1887_v35 = vadd.f32 %v1855_v27, %v1822_v15  ;;  %v1239_v20 = vadd.f32 %v3976_v33, %v1203_v63  ;;  %v4212_v34 = vmul.f32 %v3559_v44, %v1415_v12  ;;  %v1444_v7 = vld [vmem:[#allocation2 + $0x170] sm:$0xff] }
 0x200   : > { %2629 = vmatmul.msk.f32.gmra.mxu0 %vm1304_vm0, %v2152_v51  ;;  %v1715_v19 = vadd.f32 %v4897_v60, %v1650_v37  ;;  %v4216_v55 = vmul.f32 %v3564_v36, %v1451_v21  ;;  %v4218_v27 = vadd.f32 %v1622_v56, %v1589_v46  ;;  %v4221_v13 = vmul.f32 %v3587_v17, %v1487_v50 }
 0x201   : > { %v2136_v11 = vmax.f32 %v2104_v22, 0.0  ;;  %v1952_v0 = vadd.f32 %v1920_v10, %v1887_v35  ;;  %v1271_v53 = vmax.f32 %v1239_v20, 0.0  ;;  %v1878_v3 = vmul.f32 %v3567_v18, %v1415_v12  ;;  %v4901_v10 = vld [vmem:[#allocation31_spill] sm:$0xff]  ;;  %v4902_v22 = vld [vmem:[#allocation20_spill] sm:$0xff] }
 0x202   : > { %4898 = vst [vmem:[#allocation12_spill] sm:$0xff] %v4218_v27  ;;  %v1780_v33 = vadd.f32 %v4899_v48, %v1715_v19  ;;  %v1513_v62 = vmul.f32 %v3532_v14, %v4900_v4  ;;  %v1517_v51 = vmul.f32 %v3532_v14, %v1408_v40  ;;  %v1550_v63 = vmul.f32 %v3535_v6, %v1444_v7  ;;  %v4903_v19 = vld [vmem:[#allocation21_spill] sm:$0xff] }
 0x203   : > { %v2168_v30 = vmin.f32 %v2136_v11, 6.0  ;;  %v2017_v15 = vadd.f32 %v1985_v42, %v1952_v0  ;;  %v1303_v56 = vmin.f32 %v1271_v53, 6.0  ;;  %v1943_v37 = vmul.f32 %v3582_v43, %v1451_v21  ;;  %v1416_v4 = vld [vmem:[#allocation2 + $0x1ef] sm:$0xff] }
 0x204   : > { %v1845_v39 = vadd.f32 %v4901_v10, %v1780_v33  ;;  %v1578_v35 = vadd.f32 %v4902_v22, %v1513_v62  ;;  %v2008_v46 = vmul.f32 %v3789_v59, %v1487_v50  ;;  %v1582_v20 = vadd.f32 %v1550_v63, %v1517_v51  ;;  %v1452_v51 = vld [vmem:[#allocation2 + $0x1f0] sm:$0xff]  ;;  %v4256_v10 = vld [vmem:[#allocation2 + $0x87] sm:$0xff] }
 0x205   : > { %2645 = vmatmul.msk.f32.gmra.mxu2 %vm1304_vm0, %v2168_v30  ;;  %v2053_v12 = vmul.f32 %v3894_v28, %v2017_v15  ;;  %v1615_v42 = vmul.f32 %v3540_v54, %v1480_v24  ;;  %1382 = vst.msk [vmem:[#allocation2 + $0x210] sm:$0xff] %vm1304_vm0, %v1303_v56  ;;  %v4239_v0 = vmul.f32 %v3559_v44, %v1408_v40  ;;  %v4260_v22 = vld [vmem:[#allocation2 + $0x1af] sm:$0xff] }
 0x206   : > { %v1910_v60 = vadd.f32 %v1878_v3, %v1845_v39  ;;  %v1643_v11 = vadd.f32 %v4903_v19, %v1578_v35  ;;  %v4242_v21 = vmul.f32 %v3564_v36, %v1444_v7  ;;  %v4248_v50 = vmul.f32 %v3587_v17, %v1480_v24 }
 0x207   : > { %v2089_v53 = vadd.f32 %v3911_v26, %v2053_v12  ;;  %v4245_v48 = vadd.f32 %v1615_v42, %v1582_v20  ;;  %v1871_v33 = vmul.f32 %v3567_v18, %v1408_v40  ;;  %v1936_v30 = vmul.f32 %v3582_v43, %v1444_v7  ;;  %v4904_v42 = vld [vmem:[#allocation9_spill] sm:$0xff] }
 0x208   : > { %v1975_v62 = vadd.f32 %v1943_v37, %v1910_v60  ;;  %v1708_v3 = vadd.f32 %v4030_v49, %v1643_v11  ;;  %v1693_v15 = vadd.f32 %v4118_v38, %v3928_v1  ;;  %v2001_v56 = vmul.f32 %v3789_v59, %v1480_v24  ;;  %v1488_v1 = vld [vmem:[#allocation2 + $0x1f1] sm:$0xff]  ;;  %v4267_v24 = vld [vmem:[#allocation2 + $0x88] sm:$0xff] }
 0x209   : > { %v2121_v63 = vmax.f32 %v2089_v53, 0.0  ;;  %v1856_v39 = vmul.f32 %v4256_v10, %v3567_v18  ;;  %v1521_v40 = vmul.f32 %v4260_v22, %v3532_v14  ;;  %v1525_v38 = vmul.f32 %v3532_v14, %v1416_v4 }
 0x20a   : > { %v2040_v49 = vadd.f32 %v2008_v46, %v1975_v62  ;;  %v1773_v7 = vadd.f32 %v4038_v16, %v1708_v3  ;;  %v1758_v37 = vadd.f32 %v4124_v32, %v1693_v15  ;;  %v1921_v12 = vmul.f32 %v4267_v24, %v3582_v43  ;;  %v4276_v32 = vld [vmem:[#allocation2 + $0x89] sm:$0xff] }
 0x20b   : > { %v2153_v35 = vmin.f32 %v2121_v63, 6.0  ;;  %v1558_v20 = vmul.f32 %v3535_v6, %v1452_v51  ;;  %v1586_v60 = vadd.f32 %v4904_v42, %v1521_v40  ;;  %v1986_v11 = vmul.f32 %v4276_v32, %v3789_v59  ;;  %v4905_v3 = vld [vmem:[#allocation8_spill] sm:$0xff] }
 0x20c   : > { %v2076_v19 = vmul.f32 %v3894_v28, %v2040_v49  ;;  %v1838_v46 = vadd.f32 %v4041_v41, %v1773_v7  ;;  %v1823_v16 = vadd.f32 %v4127_v61, %v1758_v37  ;;  %v1623_v62 = vmul.f32 %v3540_v54, %v1488_v1  ;;  %v4909_v37 = vld [vmem:[#allocation34_spill] sm:$0xff] }
 0x20d   : > { %2630 = vmatmul.msk.f32.gmra.mxu0 %vm1304_vm0, %v2153_v35  ;;  %v1590_v53 = vadd.f32 %v1558_v20, %v1525_v38  ;;  %v1651_v15 = vadd.f32 %v4905_v3, %v1586_v60  ;;  %v4284_v63 = vmul.f32 %v3559_v44, %v1416_v4  ;;  %v4288_v61 = vmul.f32 %v3564_v36, %v1452_v51 }
 0x20e   : > { %v2112_v40 = vadd.f32 %v3911_v26, %v2076_v19  ;;  %v1903_v41 = vadd.f32 %v1871_v33, %v1838_v46  ;;  %v1888_v49 = vadd.f32 %v1856_v39, %v1823_v16  ;;  %v4294_v38 = vmul.f32 %v3587_v17, %v1488_v1  ;;  %v4911_v33 = vld [vmem:[#allocation23_spill] sm:$0xff] }
 0x20f   : > { %4906 = vst [vmem:[#allocation11_spill] sm:$0xff] %v4284_v63  ;;  %v4290_v7 = vadd.f32 %v1623_v62, %v1590_v53  ;;  %v1716_v42 = vadd.f32 %v4909_v37, %v1651_v15  ;;  %v1879_v35 = vmul.f32 %v3567_v18, %v1416_v4  ;;  %v1709_v19 = vadd.f32 %v4145_v29, %v3981_v25  ;;  %v4302_v53 = vld [vmem:[#allocation2 + $0x187] sm:$0xff] }
 0x210   : > { %4907 = vst [vmem:[#allocation3_spill] sm:$0xff] %v4288_v61  ;;  %v2144_v20 = vmax.f32 %v2112_v40, 0.0  ;;  %v1968_v60 = vadd.f32 %v1936_v30, %v1903_v41  ;;  %v1953_v3 = vadd.f32 %v1921_v12, %v1888_v49  ;;  %v1944_v46 = vmul.f32 %v3582_v43, %v1452_v51  ;;  %v1399_v12 = vld [vmem:[#allocation2 + $0xe7] sm:$0xff] }
 0x211   : > { %4908 = vst [vmem:[#allocation14_spill] sm:$0xff] %v4290_v7  ;;  %v1781_v39 = vadd.f32 %v4911_v33, %v1716_v42  ;;  %v2009_v16 = vmul.f32 %v3789_v59, %v1488_v1  ;;  %v1872_v62 = vmul.f32 %v4302_v53, %v3567_v18  ;;  %v1774_v30 = vadd.f32 %v4151_v58, %v1709_v19  ;;  %v4912_v40 = vld [vmem:[#allocation24_spill] sm:$0xff]  ;;  %v4913_v33 = vld [vmem:[#allocation22_spill] sm:$0xff] }
 0x212   : > { %4910 = vst [vmem:[#allocation16_spill] sm:$0xff] %v4294_v38  ;;  %v2176_v15 = vmin.f32 %v2144_v20, 6.0  ;;  %v2033_v37 = vadd.f32 %v2001_v56, %v1968_v60  ;;  %v2018_v4 = vadd.f32 %v1986_v11, %v1953_v3  ;;  %v4308_v25 = vld [vmem:[#allocation2 + $0x188] sm:$0xff]  ;;  %v1694_v49 = vadd.f32 %v4178_v31, %v3995_v8 }
 0x213   : > { %v1846_v41 = vadd.f32 %v4912_v40, %v1781_v39  ;;  %v1937_v29 = vmul.f32 %v4308_v25, %v3582_v43  ;;  %v4312_v51 = vld [vmem:[#allocation2 + $0x189] sm:$0xff]  ;;  %v1839_v42 = vadd.f32 %v4154_v52, %v1774_v30  ;;  %v1504_v8 = vmul.f32 %v3532_v14, %v4913_v33 }
 0x214   : > { %v2002_v1 = vmul.f32 %v4312_v51, %v3789_v59  ;;  %v1435_v56 = vld [vmem:[#allocation2 + $0xe8] sm:$0xff]  ;;  %2653 = vmatmul.msk.f32.gmra.mxu3 %vm1304_vm0, %v2176_v15  ;;  %v2069_v58 = vmul.f32 %v3894_v28, %v2033_v37  ;;  %v2054_v11 = vmul.f32 %v3894_v28, %v2018_v4  ;;  %v1759_v19 = vadd.f32 %v4181_v23, %v1694_v49  ;;  %v4334_v40 = vld [vmem:[#allocation2 + $0x90] sm:$0xff] }
 0x215   : > { %v4322_v20 = vld [vmem:[#allocation2 + $0x8f] sm:$0xff]  ;;  %v1911_v3 = vadd.f32 %v1879_v35, %v1846_v41  ;;  %v1508_v31 = vmul.f32 %v3532_v14, %v1399_v12  ;;  %v1904_v37 = vadd.f32 %v1872_v62, %v1839_v42  ;;  %v1541_v52 = vmul.f32 %v3535_v6, %v1435_v56 }
 0x216   : > { %v1857_v60 = vmul.f32 %v4322_v20, %v3567_v18  ;;  %v2105_v39 = vadd.f32 %v3911_v26, %v2069_v58  ;;  %v2090_v15 = vadd.f32 %v3911_v26, %v2054_v11  ;;  %v1824_v30 = vadd.f32 %v4186_v5, %v1759_v19  ;;  %v1471_v35 = vld [vmem:[#allocation2 + $0xe9] sm:$0xff]  ;;  %v4339_v62 = vld [vmem:[#allocation2 + $0x91] sm:$0xff] }
 0x217   : > { %v1976_v4 = vadd.f32 %v1944_v46, %v1911_v3  ;;  %v1922_v23 = vmul.f32 %v4334_v40, %v3582_v43  ;;  %v4914_v41 = vld [vmem:[#allocation25_spill] sm:$0xff]  ;;  %v1969_v27 = vadd.f32 %v1937_v29, %v1904_v37  ;;  %v1573_v58 = vadd.f32 %v1541_v52, %v1508_v31  ;;  %v4915_v5 = vld [vmem:[#allocation26_spill] sm:$0xff] }
 0x218   : > { %v1569_v49 = vadd.f32 %v4914_v41, %v1504_v8  ;;  %v2137_v33 = vmax.f32 %v2105_v39, 0.0  ;;  %v2122_v7 = vmax.f32 %v2090_v15, 0.0  ;;  %v1889_v11 = vadd.f32 %v1857_v60, %v1824_v30  ;;  %v4917_v30 = vld [vmem:[#allocation35_spill] sm:$0xff] }
 0x219   : > { %v2041_v38 = vadd.f32 %v2009_v16, %v1976_v4  ;;  %v1987_v46 = vmul.f32 %v4339_v62, %v3789_v59  ;;  %v2034_v61 = vadd.f32 %v2002_v1, %v1969_v27  ;;  %v1606_v63 = vmul.f32 %v3540_v54, %v1471_v35 }
 0x21a   : > { %v1634_v42 = vadd.f32 %v4915_v5, %v1569_v49  ;;  %v2169_v3 = vmin.f32 %v2137_v33, 6.0  ;;  %v2154_v19 = vmin.f32 %v2122_v7, 6.0  ;;  %v1954_v39 = vadd.f32 %v1922_v23, %v1889_v11  ;;  %v4377_v33 = vld [vmem:[#allocation2 + $0x18f] sm:$0xff] }
 0x21b   : > { %v2077_v8 = vmul.f32 %v3894_v28, %v2041_v38  ;;  %v4347_v29 = vmul.f32 %v3559_v44, %v1399_v12  ;;  %v2070_v59 = vmul.f32 %v3894_v28, %v2034_v61  ;;  %v4353_v60 = vadd.f32 %v1606_v63, %v1573_v58  ;;  %v4916_v61 = vld [vmem:[#allocation19_spill] sm:$0xff]  ;;  %v4384_v5 = vld [vmem:[#allocation2 + $0x190] sm:$0xff] }
 0x21c   : > { %v1699_v16 = vadd.f32 %v4061_v2, %v1634_v42  ;;  %2646 = vmatmul.msk.f32.gmra.mxu2 %vm1304_vm0, %v2169_v3  ;;  %2631 = vmatmul.msk.f32.gmra.mxu0 %vm1304_vm0, %v2154_v19  ;;  %v4356_v27 = vmul.f32 %v3564_v36, %v1435_v56  ;;  %v2019_v38 = vadd.f32 %v1987_v46, %v1954_v39  ;;  %v4918_v3 = vld [vmem:[#allocation5_spill] sm:$0xff] }
 0x21d   : > { %v2113_v7 = vadd.f32 %v3911_v26, %v2077_v8  ;;  %v1862_v31 = vmul.f32 %v3567_v18, %v1399_v12  ;;  %v2106_v2 = vadd.f32 %v3911_v26, %v2070_v59  ;;  %v4363_v15 = vmul.f32 %v3587_v17, %v1471_v35  ;;  %v1400_v39 = vld [vmem:[#allocation2 + $0xef] sm:$0xff] }
 0x21e   : > { %v1764_v1 = vadd.f32 %v4078_v57, %v1699_v16  ;;  %v1927_v37 = vmul.f32 %v3582_v43, %v1435_v56  ;;  %v1710_v63 = vadd.f32 %v4239_v0, %v4916_v61  ;;  %v2055_v4 = vmul.f32 %v3894_v28, %v2019_v38  ;;  %v4373_v57 = vld [vmem:[%s4781_s4 + $0x8] ss:$0 sm:$0xff]  ;;  %v1436_v16 = vld [vmem:[#allocation2 + $0xf0] sm:$0xff] }
 0x21f   : > { %v2145_v52 = vmax.f32 %v2113_v7, 0.0  ;;  %v1992_v12 = vmul.f32 %v4373_v57, %v1471_v35  ;;  %v2138_v41 = vmax.f32 %v2106_v2, 0.0  ;;  %v1873_v0 = vmul.f32 %v4377_v33, %v3567_v18  ;;  %v4393_v7 = vld [vmem:[#allocation2 + $0x191] sm:$0xff]  ;;  %v2730_v2 = vld [vmem:[#allocation2 + $0xa7] sm:$0xff] }
 0x220   : > { %v1829_v23 = vadd.f32 %v4917_v30, %v1764_v1  ;;  %v1775_v49 = vadd.f32 %v4242_v21, %v1710_v63  ;;  %v1663_v56 = vmul.f32 %v4256_v10, %v3559_v44  ;;  %v2091_v11 = vadd.f32 %v3911_v26, %v2055_v4  ;;  %v1472_v61 = vld [vmem:[#allocation2 + $0xf1] sm:$0xff] }
 0x221   : > { %v2177_v58 = vmin.f32 %v2145_v52, 6.0  ;;  %v1938_v35 = vmul.f32 %v4384_v5, %v3582_v43  ;;  %v2170_v42 = vmin.f32 %v2138_v41, 6.0  ;;  %v1728_v8 = vmul.f32 %v4267_v24, %v3564_v36  ;;  %v2731_v63 = vld [vmem:[#allocation2 + $0xaf] sm:$0xff] }
 0x222   : > { %v1894_v46 = vadd.f32 %v1862_v31, %v1829_v23  ;;  %v1840_v21 = vadd.f32 %v4248_v50, %v1775_v49  ;;  %v1695_v19 = vadd.f32 %v1663_v56, %v4918_v3  ;;  %v2123_v10 = vmax.f32 %v2091_v11, 0.0 }
 0x223   : > { %2654 = vmatmul.msk.f32.gmra.mxu3 %vm1304_vm0, %v2177_v58  ;;  %v2003_v38 = vmul.f32 %v4393_v7, %v4373_v57  ;;  %v1793_v1 = vmul.f32 %v4276_v32, %v3587_v17  ;;  %v1858_v24 = vmul.f32 %v2730_v2, %v3567_v18  ;;  %v1505_v52 = vmul.f32 %v2731_v63, %v3532_v14  ;;  %v2732_v32 = vld [vmem:[#allocation2 + $0xa8] sm:$0xff] }
 0x224   : > { %v1959_v59 = vadd.f32 %v1927_v37, %v1894_v46  ;;  %2647 = vmatmul.msk.f32.gmra.mxu2 %vm1304_vm0, %v2170_v42  ;;  %v1905_v50 = vadd.f32 %v1873_v0, %v1840_v21  ;;  %v1760_v31 = vadd.f32 %v1728_v8, %v1695_v19  ;;  %v2155_v37 = vmin.f32 %v2123_v10, 6.0  ;;  %v4919_v0 = vld [vmem:[#allocation27_spill] sm:$0xff]  ;;  %v2733_v46 = vld [vmem:[#allocation2 + $0xa9] sm:$0xff] }
 0x225   : > { %v1509_v30 = vmul.f32 %v3532_v14, %v1400_v39  ;;  %v1542_v23 = vmul.f32 %v3535_v6, %v1436_v16  ;;  %v1923_v56 = vmul.f32 %v2732_v32, %v3582_v43  ;;  %v1570_v58 = vadd.f32 %v4919_v0, %v1505_v52  ;;  %v4920_v6 = vld [vmem:[#allocation28_spill] sm:$0xff]  ;;  %v4923_v0 = vld [vmem:[#allocation39_spill] sm:$0xff] }
 0x226   : > { %v2024_v4 = vadd.f32 %v1992_v12, %v1959_v59  ;;  %v1970_v41 = vadd.f32 %v1938_v35, %v1905_v50  ;;  %v1825_v49 = vadd.f32 %v1793_v1, %v1760_v31  ;;  %2632 = vmatmul.msk.f32.gmra.mxu0 %vm1304_vm0, %v2155_v37  ;;  %v1988_v42 = vmul.f32 %v2733_v46, %v4373_v57 }
 0x227   : > { %v1574_v21 = vadd.f32 %v1542_v23, %v1509_v30  ;;  %v1607_v12 = vmul.f32 %v3540_v54, %v1472_v61  ;;  %v1635_v35 = vadd.f32 %v4920_v6, %v1570_v58  ;;  %v4412_v19 = vmul.f32 %v3559_v44, %v1400_v39  ;;  %v1417_v6 = vld [vmem:[#allocation2 + $0x207] sm:$0xff] }
 0x228   : > { %v2060_v11 = vmul.f32 %v3894_v28, %v2024_v4  ;;  %v2035_v14 = vadd.f32 %v2003_v38, %v1970_v41  ;;  %v1890_v3 = vadd.f32 %v1858_v24, %v1825_v49  ;;  %v4418_v59 = vmul.f32 %v3564_v36, %v1436_v16  ;;  %v4921_v38 = vld [vmem:[#allocation36_spill] sm:$0xff]  ;;  %v4922_v41 = vld [vmem:[#allocation38_spill] sm:$0xff] }
 0x229   : > { %v4415_v10 = vadd.f32 %v1607_v12, %v1574_v21  ;;  %v4421_v1 = vmul.f32 %v3587_v17, %v1472_v61  ;;  %v1700_v31 = vadd.f32 %v4921_v38, %v1635_v35  ;;  %v1863_v2 = vmul.f32 %v3567_v18, %v1400_v39  ;;  %v4456_v12 = vld [vmem:[%s4783_s6] ss:$0 sm:$0xff] }
 0x22a   : > { %v2096_v8 = vadd.f32 %v3911_v26, %v2060_v11  ;;  %v2071_v50 = vmul.f32 %v3894_v28, %v2035_v14  ;;  %v1955_v54 = vadd.f32 %v1923_v56, %v1890_v3  ;;  %v1928_v52 = vmul.f32 %v3582_v43, %v1436_v16 }
 0x22b   : > { %v1993_v37 = vmul.f32 %v4373_v57, %v1472_v61  ;;  %v1679_v4 = vmul.f32 %v4302_v53, %v3559_v44  ;;  %v1765_v49 = vadd.f32 %v4922_v41, %v1700_v31  ;;  %v1744_v28 = vmul.f32 %v4308_v25, %v3564_v36  ;;  %v2739_v41 = vld [vmem:[#allocation2 + $0xb1] sm:$0xff] }
 0x22c   : > { %v2128_v24 = vmax.f32 %v2096_v8, 0.0  ;;  %v2107_v30 = vadd.f32 %v3911_v26, %v2071_v50  ;;  %v2020_v23 = vadd.f32 %v1988_v42, %v1955_v54  ;;  %v1809_v39 = vmul.f32 %v4312_v51, %v3587_v17  ;;  %v4442_v26 = vld [vmem:[%s4782_s5] ss:$0 sm:$0xff]  ;;  %v2735_v51 = vld [vmem:[#allocation2 + $0x1a8] sm:$0xff]  ;;  %v2738_v54 = vld [vmem:[#allocation2 + $0xb0] sm:$0xff] }
 0x22d   : > { %v1711_v56 = vadd.f32 %v1679_v4, %v4160_v47  ;;  %v1874_v16 = vmul.f32 %v4191_v9, %v3567_v18  ;;  %v1830_v58 = vadd.f32 %v4923_v0, %v1765_v49  ;;  %v1664_v25 = vmul.f32 %v4322_v20, %v3559_v44  ;;  %v2736_v9 = vld [vmem:[#allocation2 + $0x1a9] sm:$0xff] }
 0x22e   : > { %v2160_v32 = vmin.f32 %v2128_v24, 6.0  ;;  %v2139_v61 = vmax.f32 %v2107_v30, 0.0  ;;  %v2056_v53 = vmul.f32 %v4442_v26, %v2020_v23  ;;  %v1939_v11 = vmul.f32 %v2735_v51, %v3582_v43  ;;  %v1453_v4 = vld [vmem:[#allocation2 + $0x208] sm:$0xff] }
 0x22f   : > { %v1776_v47 = vadd.f32 %v1744_v28, %v1711_v56  ;;  %v2004_v46 = vmul.f32 %v2736_v9, %v4373_v57  ;;  %v1729_v42 = vmul.f32 %v4334_v40, %v3564_v36  ;;  %v1895_v14 = vadd.f32 %v1863_v2, %v1830_v58  ;;  %v1489_v30 = vld [vmem:[#allocation2 + $0x209] sm:$0xff] }
 0x230   : > { %2637 = vmatmul.msk.f32.gmra.mxu1 %vm1304_vm0, %v2160_v32  ;;  %v2171_v21 = vmin.f32 %v2139_v61, 6.0  ;;  %v2092_v20 = vadd.f32 %v4456_v12, %v2056_v53  ;;  %v1696_v3 = vadd.f32 %v1664_v25, %v4175_v45  ;;  %v1794_v8 = vmul.f32 %v4339_v62, %v3587_v17  ;;  %v4924_v2 = vld [vmem:[#allocation32_spill] sm:$0xff] }
 0x231   : > { %v1841_v35 = vadd.f32 %v1809_v39, %v1776_v47  ;;  %v1859_v50 = vmul.f32 %v2731_v63, %v3567_v18  ;;  %v1924_v40 = vmul.f32 %v2738_v54, %v3582_v43  ;;  %v1960_v31 = vadd.f32 %v1928_v52, %v1895_v14  ;;  %v4496_v14 = vld [vmem:[#allocation2 + $0x108] sm:$0xff] }
 0x232   : > { %2648 = vmatmul.msk.f32.gmra.mxu2 %vm1304_vm0, %v2171_v21  ;;  %v2124_v38 = vmax.f32 %v2092_v20, 0.0  ;;  %v1761_v24 = vadd.f32 %v1729_v42, %v1696_v3  ;;  %v1717_v45 = vadd.f32 %v4212_v34, %v4924_v2  ;;  %v1989_v49 = vmul.f32 %v2739_v41, %v4373_v57 }
 0x233   : > { %v1906_v23 = vadd.f32 %v1874_v16, %v1841_v35  ;;  %v4469_v62 = vmul.f32 %v3559_v44, %v1417_v6  ;;  %v1880_v63 = vmul.f32 %v3567_v18, %v1417_v6  ;;  %v2025_v32 = vadd.f32 %v1993_v37, %v1960_v31  ;;  %v4925_v16 = vld [vmem:[#allocation18_spill] sm:$0xff] }
 0x234   : > { %v2156_v28 = vmin.f32 %v2124_v38, 6.0  ;;  %v1826_v56 = vadd.f32 %v1794_v8, %v1761_v24  ;;  %v1782_v52 = vadd.f32 %v4216_v55, %v1717_v45  ;;  %v4474_v61 = vmul.f32 %v3564_v36, %v1453_v4 }
 0x235   : > { %v1971_v39 = vadd.f32 %v1939_v11, %v1906_v23  ;;  %v4477_v34 = vmul.f32 %v3587_v17, %v1489_v30  ;;  %v1701_v53 = vadd.f32 %v4347_v29, %v4925_v16  ;;  %v2061_v0 = vmul.f32 %v4442_v26, %v2025_v32  ;;  %v4487_v11 = vld [vmem:[#allocation2 + $0x107] sm:$0xff]  ;;  %v2743_v23 = vld [vmem:[#allocation2 + $0x1b0] sm:$0xff] }
 0x236   : > { %2633 = vmatmul.msk.f32.gmra.mxu0 %vm1304_vm0, %v2156_v28  ;;  %v1891_v58 = vadd.f32 %v1859_v50, %v1826_v56  ;;  %v1847_v37 = vadd.f32 %v4221_v13, %v1782_v52  ;;  %v1945_v25 = vmul.f32 %v3582_v43, %v1453_v4  ;;  %v2010_v47 = vmul.f32 %v4373_v57, %v1489_v30  ;;  %v1418_v30 = vld [vmem:[#allocation2 + $0x20f] sm:$0xff]  ;;  %v4927_v52 = vld [vmem:[#allocation11_spill] sm:$0xff] }
 0x237   : > { %v2036_v55 = vadd.f32 %v2004_v46, %v1971_v39  ;;  %v1766_v51 = vadd.f32 %v4356_v27, %v1701_v53  ;;  %v1864_v9 = vmul.f32 %v4487_v11, %v3567_v18  ;;  %v2097_v29 = vadd.f32 %v4456_v12, %v2061_v0  ;;  %v1454_v28 = vld [vmem:[#allocation2 + $0x210] sm:$0xff] }
 0x238   : > { %v1956_v42 = vadd.f32 %v1924_v40, %v1891_v58  ;;  %v1912_v21 = vadd.f32 %v1880_v63, %v1847_v37  ;;  %v1680_v20 = vmul.f32 %v4377_v33, %v3559_v44  ;;  %v1929_v27 = vmul.f32 %v4496_v14, %v3582_v43  ;;  %v4504_v40 = vld [vmem:[#allocation2 + $0x109] sm:$0xff]  ;;  %v1490_v32 = vld [vmem:[#allocation2 + $0x211] sm:$0xff] }
 0x239   : > { %v2072_v13 = vmul.f32 %v4442_v26, %v2036_v55  ;;  %v1831_v46 = vadd.f32 %v4363_v15, %v1766_v51  ;;  %v1745_v3 = vmul.f32 %v4384_v5, %v3564_v36  ;;  %v2129_v6 = vmax.f32 %v2097_v29, 0.0  ;;  %v4926_v56 = vld [vmem:[#allocation33_spill] sm:$0xff] }
 0x23a   : > { %v2021_v35 = vadd.f32 %v1989_v49, %v1956_v42  ;;  %v1977_v8 = vadd.f32 %v1945_v25, %v1912_v21  ;;  %v1712_v50 = vadd.f32 %v1680_v20, %v4245_v48  ;;  %v1994_v15 = vmul.f32 %v4504_v40, %v4373_v57  ;;  %v2744_v0 = vld [vmem:[#allocation2 + $0x1b1] sm:$0xff] }
 0x23b   : > { %v2108_v54 = vadd.f32 %v4456_v12, %v2072_v13  ;;  %v1896_v33 = vadd.f32 %v1864_v9, %v1831_v46  ;;  %v1810_v38 = vmul.f32 %v4393_v7, %v3587_v17  ;;  %v2161_v31 = vmin.f32 %v2129_v6, 6.0 }
 0x23c   : > { %v2057_v24 = vmul.f32 %v4442_v26, %v2021_v35  ;;  %v2042_v5 = vadd.f32 %v2010_v47, %v1977_v8  ;;  %v1777_v4 = vadd.f32 %v1745_v3, %v1712_v50  ;;  %v1875_v48 = vmul.f32 %v4260_v22, %v3567_v18  ;;  %v4928_v47 = vld [vmem:[#allocation3_spill] sm:$0xff]  ;;  %v4930_v50 = vld [vmem:[#allocation37_spill] sm:$0xff] }
 0x23d   : > { %v2140_v2 = vmax.f32 %v2108_v54, 0.0  ;;  %v1961_v45 = vadd.f32 %v1929_v27, %v1896_v33  ;;  %v1940_v41 = vmul.f32 %v2743_v23, %v3582_v43  ;;  %2638 = vmatmul.msk.f32.gmra.mxu1 %vm1304_vm0, %v2161_v31  ;;  %v1718_v39 = vadd.f32 %v4927_v52, %v4926_v56  ;;  %v4929_v27 = vld [vmem:[#allocation16_spill] sm:$0xff] }
 0x23e   : > { %v2093_v49 = vadd.f32 %v4456_v12, %v2057_v24  ;;  %v2078_v7 = vmul.f32 %v4442_v26, %v2042_v5  ;;  %v1842_v63 = vadd.f32 %v1810_v38, %v1777_v4  ;;  %v2005_v22 = vmul.f32 %v2744_v0, %v4373_v57  ;;  %v1419_v33 = vld [vmem:[#allocation2 + $0x227] sm:$0xff]  ;;  %v2745_v24 = vld [vmem:[#allocation2 + $0x10f] sm:$0xff] }
 0x23f   : > { %v2172_v16 = vmin.f32 %v2140_v2, 6.0  ;;  %v2026_v53 = vadd.f32 %v1994_v15, %v1961_v45  ;;  %v1688_v58 = vmul.f32 %v3559_v44, %v1418_v30  ;;  %v1783_v51 = vadd.f32 %v4928_v47, %v1718_v39  ;;  %v2746_v2 = vld [vmem:[#allocation2 + $0x110] sm:$0xff] }
 0x240   : > { %v2125_v37 = vmax.f32 %v2093_v49, 0.0  ;;  %v2114_v25 = vadd.f32 %v4456_v12, %v2078_v7  ;;  %v1907_v55 = vadd.f32 %v1875_v48, %v1842_v63  ;;  %v4526_v29 = vmul.f32 %v3564_v36, %v1454_v28  ;;  %v1455_v48 = vld [vmem:[#allocation2 + $0x228] sm:$0xff]  ;;  %v2747_v63 = vld [vmem:[#allocation2 + $0x111] sm:$0xff] }
 0x241   : > { %2649 = vmatmul.msk.f32.gmra.mxu2 %vm1304_vm0, %v2172_v16  ;;  %v2062_v9 = vmul.f32 %v4442_v26, %v2026_v53  ;;  %v4529_v42 = vmul.f32 %v3587_v17, %v1490_v32  ;;  %v1881_v21 = vmul.f32 %v3567_v18, %v1418_v30  ;;  %v1848_v3 = vadd.f32 %v4929_v27, %v1783_v51  ;;  %v1491_v23 = vld [vmem:[#allocation2 + $0x229] sm:$0xff] }
 0x242   : > { %v2157_v20 = vmin.f32 %v2125_v37, 6.0  ;;  %v2146_v13 = vmax.f32 %v2114_v25, 0.0  ;;  %v1972_v46 = vadd.f32 %v1940_v41, %v1907_v55  ;;  %v1946_v35 = vmul.f32 %v3582_v43, %v1454_v28  ;;  %v4931_v41 = vld [vmem:[#allocation12_spill] sm:$0xff] }
 0x243   : > { %v2098_v6 = vadd.f32 %v4456_v12, %v2062_v9  ;;  %v2011_v8 = vmul.f32 %v4373_v57, %v1490_v32  ;;  %v1702_v54 = vadd.f32 %v4412_v19, %v4930_v50  ;;  %v1913_v31 = vadd.f32 %v1881_v21, %v1848_v3  ;;  %v2748_v51 = vld [vmem:[#allocation2 + $0x127] sm:$0xff] }
 0x244   : > { %2634 = vmatmul.msk.f32.gmra.mxu0 %vm1304_vm0, %v2157_v20  ;;  %v2178_v15 = vmin.f32 %v2146_v13, 6.0  ;;  %v2037_v38 = vadd.f32 %v2005_v22, %v1972_v46  ;;  %v1865_v5 = vmul.f32 %v2745_v24, %v3567_v18  ;;  %v1930_v45 = vmul.f32 %v2746_v2, %v3582_v43  ;;  %v1456_v46 = vld [vmem:[#allocation2 + $0x230] sm:$0xff] }
 0x245   : > { %v2130_v4 = vmax.f32 %v2098_v6, 0.0  ;;  %v1767_v30 = vadd.f32 %v4418_v59, %v1702_v54  ;;  %v1719_v19 = vadd.f32 %v4469_v62, %v4931_v41  ;;  %v1978_v7 = vadd.f32 %v1946_v35, %v1913_v31  ;;  %v1492_v54 = vld [vmem:[#allocation2 + $0x231] sm:$0xff] }
 0x246   : > { %2655 = vmatmul.msk.f32.gmra.mxu3 %vm1304_vm0, %v2178_v15  ;;  %v2073_v49 = vmul.f32 %v4442_v26, %v2037_v38  ;;  %v1995_v28 = vmul.f32 %v2747_v63, %v4373_v57  ;;  %v1882_v32 = vmul.f32 %v3567_v18, %v1419_v33  ;;  %v1671_v39 = vmul.f32 %v4487_v11, %v3559_v44  ;;  %v2750_v38 = vld [vmem:[#allocation2 + $0x129] sm:$0xff] }
 0x247   : > { %v2162_v56 = vmin.f32 %v2130_v4, 6.0  ;;  %v1832_v59 = vadd.f32 %v4421_v1, %v1767_v30  ;;  %v1784_v52 = vadd.f32 %v4474_v61, %v1719_v19  ;;  %v2043_v16 = vadd.f32 %v2011_v8, %v1978_v7  ;;  %v1420_v61 = vld [vmem:[#allocation2 + $0x22f] sm:$0xff]  ;;  %v4576_v4 = vld [vmem:[%s4785_s8] ss:$0 sm:$0xff] }
 0x248   : > { %v2109_v62 = vadd.f32 %v4456_v12, %v2073_v49  ;;  %v1947_v53 = vmul.f32 %v3582_v43, %v1455_v48  ;;  %v2012_v0 = vmul.f32 %v4373_v57, %v1491_v23  ;;  %v1703_v25 = vadd.f32 %v1671_v39, %v4353_v60 }
 0x249   : > { %2639 = vmatmul.msk.f32.gmra.mxu1 %vm1304_vm0, %v2162_v56  ;;  %v1897_v22 = vadd.f32 %v1865_v5, %v1832_v59  ;;  %v1849_v37 = vadd.f32 %v4477_v34, %v1784_v52  ;;  %v1736_v1 = vmul.f32 %v4496_v14, %v3564_v36  ;;  %v2079_v11 = vmul.f32 %v4442_v26, %v2043_v16  ;;  %v4932_v34 = vld [vmem:[#allocation14_spill] sm:$0xff]  ;;  %v2749_v14 = vld [vmem:[#allocation2 + $0x128] sm:$0xff] }
 0x24a   : > { %v2141_v55 = vmax.f32 %v2109_v62, 0.0  ;;  %v1801_v47 = vmul.f32 %v4504_v40, %v3587_v17  ;;  %v1866_v9 = vmul.f32 %v2748_v51, %v3567_v18  ;;  %v1720_v27 = vadd.f32 %v1688_v58, %v4932_v34  ;;  %v2751_v59 = vld [vmem:[#allocation2 + $0x12f] sm:$0xff] }
 0x24b   : > { %v1962_v21 = vadd.f32 %v1930_v45, %v1897_v22  ;;  %v1914_v20 = vadd.f32 %v1882_v32, %v1849_v37  ;;  %v1768_v13 = vadd.f32 %v1736_v1, %v1703_v25  ;;  %v2115_v3 = vadd.f32 %v4456_v12, %v2079_v11  ;;  %v2752_v11 = vld [vmem:[#allocation2 + $0x130] sm:$0xff] }
 0x24c   : > { %v2173_v60 = vmin.f32 %v2141_v55, 6.0  ;;  %v1931_v6 = vmul.f32 %v2749_v14, %v3582_v43  ;;  %v1883_v35 = vmul.f32 %v3567_v18, %v1420_v61  ;;  %v1785_v33 = vadd.f32 %v4526_v29, %v1720_v27  ;;  %v2465_v61 = vld [vmem:[%s2838_s19] sm:$0xff]  ;;  %v2753_v34 = vld [vmem:[#allocation2 + $0x131] sm:$0xff] }
 0x24d   : > { %v2027_v8 = vadd.f32 %v1995_v28, %v1962_v21  ;;  %v1979_v50 = vadd.f32 %v1947_v53, %v1914_v20  ;;  %v1833_v40 = vadd.f32 %v1801_v47, %v1768_v13  ;;  %v2147_v15 = vmax.f32 %v2115_v3, 0.0 }
 0x24e   : > { %2650 = vmatmul.msk.f32.gmra.mxu2 %vm1304_vm0, %v2173_v60  ;;  %v1996_v58 = vmul.f32 %v2750_v38, %v4373_v57  ;;  %v1948_v31 = vmul.f32 %v3582_v43, %v1456_v46  ;;  %v1672_v5 = vmul.f32 %v2745_v24, %v3559_v44  ;;  %v1850_v29 = vadd.f32 %v4529_v42, %v1785_v33  ;;  %v4586_v44 = vld [vmem:[%s4786_s9] ss:$0 sm:$0xff] }
 0x24f   : > { %v2063_v30 = vmul.f32 %v4442_v26, %v2027_v8  ;;  %v2044_v45 = vadd.f32 %v2012_v0, %v1979_v50  ;;  %v1898_v48 = vadd.f32 %v1866_v9, %v1833_v40  ;;  %v2179_v23 = vmin.f32 %v2147_v15, 6.0  ;;  %v2369_v7 = vpop.f32.mrf.mxu3  ;;  %v2489_v0 = vld [vmem:[%s2838_s19 + $0xc0] sm:$0xff]  ;;  %v2490_v8 = vld [vmem:[%s2838_s19 + $0xc8] sm:$0xff] }
 0x250   : > { %v2013_v41 = vmul.f32 %v4373_v57, %v1492_v54  ;;  %v1704_v19 = vadd.f32 %v1672_v5, %v4415_v10  ;;  %v1737_v49 = vmul.f32 %v2746_v2, %v3564_v36  ;;  %v1915_v42 = vadd.f32 %v1883_v35, %v1850_v29  ;;  %v2481_v15 = vld [vmem:[%s2838_s19 + $0x80] sm:$0xff] }
 0x251   : > { %v2099_v24 = vadd.f32 %v4456_v12, %v2063_v30  ;;  %v2080_v28 = vmul.f32 %v4442_v26, %v2044_v45  ;;  %v1963_v32 = vadd.f32 %v1931_v6, %v1898_v48  ;;  %2656 = vmatmul.msk.f32.gmra.mxu3 %vm1304_vm0, %v2179_v23  ;;  %v1802_v10 = vmul.f32 %v2747_v63, %v3587_v17  ;;  %v2466_v23 = vld [vmem:[%s2838_s19 + $0x8] sm:$0xff] }
 0x252   : > { %v1769_v56 = vadd.f32 %v1737_v49, %v1704_v19  ;;  %v1867_v36 = vmul.f32 %v2751_v59, %v3567_v18  ;;  %v2421_v2 = vmul.f32 %v4576_v4, %v2369_v7  ;;  %v1980_v53 = vadd.f32 %v1948_v31, %v1915_v42 }
 0x253   : > { %v2297_v52 = vpop.f32.mrf.mxu0  ;;  %v2131_v39 = vmax.f32 %v2099_v24, 0.0  ;;  %v2116_v62 = vadd.f32 %v4456_v12, %v2080_v28  ;;  %v2028_v16 = vadd.f32 %v1996_v58, %v1963_v32  ;;  %v1932_v47 = vmul.f32 %v2752_v11, %v3582_v43  ;;  %v2482_v28 = vld [vmem:[%s2838_s19 + $0x88] sm:$0xff]  ;;  %v2468_v11 = vld [vmem:[%s2838_s19 + $0x18] sm:$0xff] }
 0x254   : > { %v1834_v22 = vadd.f32 %v1802_v10, %v1769_v56  ;;  %v2457_v37 = vadd.f32 %v4586_v44, %v2421_v2  ;;  %v2397_v17 = vmul.f32 %v4576_v4, %v2297_v52  ;;  %v2045_v1 = vadd.f32 %v2013_v41, %v1980_v53  ;;  %v2473_v56 = vld [vmem:[%s2838_s19 + $0x40] sm:$0xff] }
 0x255   : > { %v2163_v63 = vmin.f32 %v2131_v39, 6.0  ;;  %v2148_v25 = vmax.f32 %v2116_v62, 0.0  ;;  %v2064_v18 = vmul.f32 %v4442_v26, %v2028_v16  ;;  %v1997_v27 = vmul.f32 %v2753_v34, %v4373_v57  ;;  %v2474_v39 = vld [vmem:[%s2838_s19 + $0x48] sm:$0xff] }
 0x256   : > { %v1899_v55 = vadd.f32 %v1867_v36, %v1834_v22  ;;  %v2521_v51 = vadd.f32 %v2489_v0, %v2457_v37  ;;  %v2433_v9 = vadd.f32 %v4586_v44, %v2397_v17  ;;  %v2081_v20 = vmul.f32 %v4442_v26, %v2045_v1  ;;  %v2467_v22 = vld [vmem:[%s2838_s19 + $0x10] sm:$0xff] }
 0x257   : > { %2640 = vmatmul.msk.f32.gmra.mxu1 %vm1304_vm0, %v2163_v63  ;;  %v2100_v21 = vadd.f32 %v4456_v12, %v2064_v18  ;;  %v2180_v13 = vmin.f32 %v2148_v25, 6.0  ;;  %v2372_v60 = vpop.f32.mrf.mxu3  ;;  %v2483_v1 = vld [vmem:[%s2838_s19 + $0x90] sm:$0xff] }
 0x258   : > { %v1964_v46 = vadd.f32 %v1932_v47, %v1899_v55  ;;  %2554 = vst.msk [vmem:[%s4604_s22 + $0xc0] sm:$0xff] %vm2529_vm1, %v2521_v51  ;;  %v2497_v43 = vadd.f32 %v2465_v61, %v2433_v9  ;;  %v2117_v14 = vadd.f32 %v4456_v12, %v2081_v20  ;;  %v2422_v6 = vmul.f32 %v4576_v4, %v2372_v60 }
 0x259   : > { %v2132_v3 = vmax.f32 %v2100_v21, 0.0  ;;  %2657 = vmatmul.msk.f32.gmra.mxu3 %vm1304_vm0, %v2180_v13  ;;  %v2345_v50 = vpop.f32.mrf.mxu2 }
 0x25a   : > { %v2029_v35 = vadd.f32 %v1997_v27, %v1964_v46  ;;  %2530 = vst.msk [vmem:[%s4604_s22] sm:$0xff] %vm2529_vm1, %v2497_v43  ;;  %v2458_v57 = vadd.f32 %v4586_v44, %v2422_v6  ;;  %v2413_v40 = vmul.f32 %v4576_v4, %v2345_v50  ;;  %v2149_v54 = vmax.f32 %v2117_v14, 0.0  ;;  %v2491_v46 = vld [vmem:[%s2838_s19 + $0xd0] sm:$0xff]  ;;  %v2469_v43 = vld [vmem:[%s2838_s19 + $0x20] sm:$0xff] }
 0x25b   : > { %v2164_v38 = vmin.f32 %v2132_v3, 6.0 }
 0x25c   : > { %v2065_v33 = vmul.f32 %v4442_v26, %v2029_v35  ;;  %v2522_v58 = vadd.f32 %v2490_v8, %v2458_v57  ;;  %v2449_v31 = vadd.f32 %v4586_v44, %v2413_v40  ;;  %v2181_v48 = vmin.f32 %v2149_v54, 6.0  ;;  %v2484_v8 = vld [vmem:[%s2838_s19 + $0x98] sm:$0xff] }
 0x25e   : > { %v2101_v5 = vadd.f32 %v4456_v12, %v2065_v33  ;;  %2555 = vst.msk [vmem:[%s4604_s22 + $0xc8] sm:$0xff] %vm2529_vm1, %v2522_v58  ;;  %v2300_v30 = vpop.f32.mrf.mxu0  ;;  %v2513_v45 = vadd.f32 %v2481_v15, %v2449_v31  ;;  %v2470_v33 = vld [vmem:[%s2838_s19 + $0x28] sm:$0xff] }
 0x25f   : > { %2641 = vmatmul.msk.f32.gmra.mxu1 %vm1304_vm0, %v2164_v38  ;;  %v2398_v29 = vmul.f32 %v4576_v4, %v2300_v30 }
 0x260   : > { %v2133_v26 = vmax.f32 %v2101_v5, 0.0  ;;  %2546 = vst.msk [vmem:[%s4604_s22 + $0x80] sm:$0xff] %vm2529_vm1, %v2513_v45  ;;  %v2492_v5 = vld [vmem:[%s2838_s19 + $0xd8] sm:$0xff] }
 0x261   : > { %2658 = vmatmul.msk.f32.gmra.mxu3 %vm1304_vm0, %v2181_v48  ;;  %v2434_v12 = vadd.f32 %v4586_v44, %v2398_v29  ;;  %v2485_v29 = vld [vmem:[%s2838_s19 + $0xa0] sm:$0xff] }
 0x262   : > { %v2165_v19 = vmin.f32 %v2133_v26, 6.0 }
 0x263   : > { %v2498_v41 = vadd.f32 %v2466_v23, %v2434_v12 }
 0x265   : > { %2531 = vst.msk [vmem:[%s4604_s22 + $0x8] sm:$0xff] %vm2529_vm1, %v2498_v41 }
 0x267   : > { %2642 = vmatmul.msk.f32.gmra.mxu1 %vm1304_vm0, %v2165_v19 }
 0x26b   : > { %v2348_v49 = vpop.f32.mrf.mxu2 }
 0x26c   : > { %v2414_v7 = vmul.f32 %v4576_v4, %v2348_v49  ;;  %v2321_v24 = vpop.f32.mrf.mxu1  ;;  %v2475_v49 = vld [vmem:[%s2838_s19 + $0x50] sm:$0xff] }
 0x26d   : > { %v2405_v32 = vmul.f32 %v4576_v4, %v2321_v24 }
 0x26e   : > { %v2450_v42 = vadd.f32 %v4586_v44, %v2414_v7 }
 0x26f   : > { %v2441_v10 = vadd.f32 %v4586_v44, %v2405_v32 }
 0x270   : > { %v2514_v59 = vadd.f32 %v2482_v28, %v2450_v42  ;;  %v2471_v42 = vld [vmem:[%s2838_s19 + $0x30] sm:$0xff] }
 0x271   : > { %v2505_v36 = vadd.f32 %v2473_v56, %v2441_v10 }
 0x272   : > { %2547 = vst.msk [vmem:[%s4604_s22 + $0x88] sm:$0xff] %vm2529_vm1, %v2514_v59 }
 0x273   : > { %2538 = vst.msk [vmem:[%s4604_s22 + $0x40] sm:$0xff] %vm2529_vm1, %v2505_v36  ;;  %v2486_v36 = vld [vmem:[%s2838_s19 + $0xa8] sm:$0xff] }
 0x274   : > { %v2324_v2 = vpop.f32.mrf.mxu1 }
 0x275   : > { %v2406_v52 = vmul.f32 %v4576_v4, %v2324_v2 }
 0x277   : > { %v2442_v62 = vadd.f32 %v4586_v44, %v2406_v52 }
 0x279   : > { %v2506_v16 = vadd.f32 %v2474_v39, %v2442_v62 }
 0x27b   : > { %2539 = vst.msk [vmem:[%s4604_s22 + $0x48] sm:$0xff] %vm2529_vm1, %v2506_v16 }
 0x27d   : > { %v2303_v53 = vpop.f32.mrf.mxu0 }
 0x27e   : > { %v2399_v0 = vmul.f32 %v4576_v4, %v2303_v53  ;;  %v2476_v53 = vld [vmem:[%s2838_s19 + $0x58] sm:$0xff] }
 0x280   : > { %v2435_v37 = vadd.f32 %v4586_v44, %v2399_v0 }
 0x282   : > { %v2499_v17 = vadd.f32 %v2467_v22, %v2435_v37 }
 0x284   : > { %2532 = vst.msk [vmem:[%s4604_s22 + $0x10] sm:$0xff] %vm2529_vm1, %v2499_v17 }
 0x288   : > { %v2351_v63 = vpop.f32.mrf.mxu2 }
 0x289   : > { %v2415_v25 = vmul.f32 %v4576_v4, %v2351_v63  ;;  %v2472_v63 = vld [vmem:[%s2838_s19 + $0x38] sm:$0xff] }
 0x28a   : > { %v2306_v18 = vpop.f32.mrf.mxu0 }
 0x28b   : > { %v2400_v61 = vmul.f32 %v4576_v4, %v2306_v18  ;;  %v2451_v55 = vadd.f32 %v4586_v44, %v2415_v25 }
 0x28d   : > { %v2436_v47 = vadd.f32 %v4586_v44, %v2400_v61  ;;  %v2515_v51 = vadd.f32 %v2483_v1, %v2451_v55 }
 0x28f   : > { %v2500_v9 = vadd.f32 %v2468_v11, %v2436_v47  ;;  %2548 = vst.msk [vmem:[%s4604_s22 + $0x90] sm:$0xff] %vm2529_vm1, %v2515_v51  ;;  %v2487_v11 = vld [vmem:[%s2838_s19 + $0xb0] sm:$0xff] }
 0x291   : > { %2533 = vst.msk [vmem:[%s4604_s22 + $0x18] sm:$0xff] %vm2529_vm1, %v2500_v9  ;;  %v2477_v9 = vld [vmem:[%s2838_s19 + $0x60] sm:$0xff] }
 0x297   : > { %v2375_v21 = vpop.f32.mrf.mxu3 }
 0x298   : > { %v2423_v20 = vmul.f32 %v4576_v4, %v2375_v21 }
 0x299   : > { %v2309_v13 = vpop.f32.mrf.mxu0 }
 0x29a   : > { %v2401_v34 = vmul.f32 %v4576_v4, %v2309_v13  ;;  %v2459_v27 = vadd.f32 %v4586_v44, %v2423_v20 }
 0x29c   : > { %v2437_v60 = vadd.f32 %v4586_v44, %v2401_v34  ;;  %v2523_v3 = vadd.f32 %v2491_v46, %v2459_v27  ;;  %v2493_v27 = vld [vmem:[%s2838_s19 + $0xe0] sm:$0xff] }
 0x29e   : > { %v2501_v14 = vadd.f32 %v2469_v43, %v2437_v60  ;;  %2556 = vst.msk [vmem:[%s4604_s22 + $0xd0] sm:$0xff] %vm2529_vm1, %v2523_v3 }
 0x29f   : > { %v2354_v6 = vpop.f32.mrf.mxu2 }
 0x2a0   : > { %2534 = vst.msk [vmem:[%s4604_s22 + $0x20] sm:$0xff] %vm2529_vm1, %v2501_v14  ;;  %v2416_v35 = vmul.f32 %v4576_v4, %v2354_v6  ;;  %v2488_v6 = vld [vmem:[%s2838_s19 + $0xb8] sm:$0xff] }
 0x2a2   : > { %v2452_v50 = vadd.f32 %v4586_v44, %v2416_v35 }
 0x2a3   : > { %v2312_v40 = vpop.f32.mrf.mxu0 }
 0x2a4   : > { %v2516_v57 = vadd.f32 %v2484_v8, %v2452_v50  ;;  %v2402_v54 = vmul.f32 %v4576_v4, %v2312_v40  ;;  %v2478_v40 = vld [vmem:[%s2838_s19 + $0x68] sm:$0xff] }
 0x2a6   : > { %2549 = vst.msk [vmem:[%s4604_s22 + $0x98] sm:$0xff] %vm2529_vm1, %v2516_v57  ;;  %v2378_v15 = vpop.f32.mrf.mxu3  ;;  %v2438_v38 = vadd.f32 %v4586_v44, %v2402_v54 }
 0x2a7   : > { %v2424_v58 = vmul.f32 %v4576_v4, %v2378_v15  ;;  %v2357_v31 = vpop.f32.mrf.mxu2 }
 0x2a8   : > { %v2417_v30 = vmul.f32 %v4576_v4, %v2357_v31  ;;  %v2502_v45 = vadd.f32 %v2470_v33, %v2438_v38  ;;  %v2494_v38 = vld [vmem:[%s2838_s19 + $0xe8] sm:$0xff] }
 0x2a9   : > { %v2460_v48 = vadd.f32 %v4586_v44, %v2424_v58 }
 0x2aa   : > { %v2453_v26 = vadd.f32 %v4586_v44, %v2417_v30  ;;  %2535 = vst.msk [vmem:[%s4604_s22 + $0x28] sm:$0xff] %vm2529_vm1, %v2502_v45 }
 0x2ab   : > { %v2524_v23 = vadd.f32 %v2492_v5, %v2460_v48 }
 0x2ac   : > { %v2517_v41 = vadd.f32 %v2485_v29, %v2453_v26  ;;  %v2479_v29 = vld [vmem:[%s2838_s19 + $0x70] sm:$0xff] }
 0x2ad   : > { %v2327_v12 = vpop.f32.mrf.mxu1  ;;  %2557 = vst.msk [vmem:[%s4604_s22 + $0xd8] sm:$0xff] %vm2529_vm1, %v2524_v23 }
 0x2ae   : > { %v2407_v19 = vmul.f32 %v4576_v4, %v2327_v12  ;;  %2550 = vst.msk [vmem:[%s4604_s22 + $0xa0] sm:$0xff] %vm2529_vm1, %v2517_v41  ;;  %v2495_v12 = vld [vmem:[%s2838_s19 + $0xf0] sm:$0xff] }
 0x2b0   : > { %v2443_v7 = vadd.f32 %v4586_v44, %v2407_v19 }
 0x2b2   : > { %v2507_v24 = vadd.f32 %v2475_v49, %v2443_v7 }
 0x2b3   : > { %v2315_v28 = vpop.f32.mrf.mxu0 }
 0x2b4   : > { %2540 = vst.msk [vmem:[%s4604_s22 + $0x50] sm:$0xff] %vm2529_vm1, %v2507_v24  ;;  %v2403_v32 = vmul.f32 %v4576_v4, %v2315_v28 }
 0x2b5   : > { %v2360_v56 = vpop.f32.mrf.mxu2 }
 0x2b6   : > { %v2439_v10 = vadd.f32 %v4586_v44, %v2403_v32  ;;  %v2418_v59 = vmul.f32 %v4576_v4, %v2360_v56  ;;  %v2480_v32 = vld [vmem:[%s2838_s19 + $0x78] sm:$0xff] }
 0x2b8   : > { %v2503_v2 = vadd.f32 %v2471_v42, %v2439_v10  ;;  %v2454_v52 = vadd.f32 %v4586_v44, %v2418_v59  ;;  %v2496_v10 = vld [vmem:[%s2838_s19 + $0xf8] sm:$0xff] }
 0x2ba   : > { %2536 = vst.msk [vmem:[%s4604_s22 + $0x30] sm:$0xff] %vm2529_vm1, %v2503_v2  ;;  %v2518_v39 = vadd.f32 %v2486_v36, %v2454_v52  ;;  %v2330_v62 = vpop.f32.mrf.mxu1 }
 0x2bb   : > { %v2408_v16 = vmul.f32 %v4576_v4, %v2330_v62 }
 0x2bc   : > { %2551 = vst.msk [vmem:[%s4604_s22 + $0xa8] sm:$0xff] %vm2529_vm1, %v2518_v39 }
 0x2bd   : > { %v2444_v0 = vadd.f32 %v4586_v44, %v2408_v16 }
 0x2bf   : > { %v2508_v22 = vadd.f32 %v2476_v53, %v2444_v0 }
 0x2c1   : > { %v2318_v37 = vpop.f32.mrf.mxu0  ;;  %2541 = vst.msk [vmem:[%s4604_s22 + $0x58] sm:$0xff] %vm2529_vm1, %v2508_v22 }
 0x2c2   : > { %v2404_v17 = vmul.f32 %v4576_v4, %v2318_v37 }
 0x2c4   : > { %v2440_v25 = vadd.f32 %v4586_v44, %v2404_v17  ;;  %v2363_v18 = vpop.f32.mrf.mxu2 }
 0x2c5   : > { %v2419_v1 = vmul.f32 %v4576_v4, %v2363_v18 }
 0x2c6   : > { %v2504_v61 = vadd.f32 %v2472_v63, %v2440_v25  ;;  %v2333_v55 = vpop.f32.mrf.mxu1 }
 0x2c7   : > { %v2409_v47 = vmul.f32 %v4576_v4, %v2333_v55  ;;  %v2455_v51 = vadd.f32 %v4586_v44, %v2419_v1 }
 0x2c8   : > { %2537 = vst.msk [vmem:[%s4604_s22 + $0x38] sm:$0xff] %vm2529_vm1, %v2504_v61 }
 0x2c9   : > { %v2445_v21 = vadd.f32 %v4586_v44, %v2409_v47  ;;  %v2519_v20 = vadd.f32 %v2487_v11, %v2455_v51  ;;  %v2381_v13 = vpop.f32.mrf.mxu3 }
 0x2ca   : > { %v2425_v46 = vmul.f32 %v4576_v4, %v2381_v13 }
 0x2cb   : > { %v2509_v34 = vadd.f32 %v2477_v9, %v2445_v21  ;;  %2552 = vst.msk [vmem:[%s4604_s22 + $0xb0] sm:$0xff] %vm2529_vm1, %v2519_v20 }
 0x2cc   : > { %v2461_v43 = vadd.f32 %v4586_v44, %v2425_v46 }
 0x2cd   : > { %2542 = vst.msk [vmem:[%s4604_s22 + $0x60] sm:$0xff] %vm2529_vm1, %v2509_v34 }
 0x2ce   : > { %v2525_v60 = vadd.f32 %v2493_v27, %v2461_v43 }
 0x2d0   : > { %2558 = vst.msk [vmem:[%s4604_s22 + $0xe0] sm:$0xff] %vm2529_vm1, %v2525_v60 }
 0x2d1   : > { %v2366_v3 = vpop.f32.mrf.mxu2 }
 0x2d2   : > { %v2420_v14 = vmul.f32 %v4576_v4, %v2366_v3 }
 0x2d4   : > { %v2336_v35 = vpop.f32.mrf.mxu1  ;;  %v2456_v8 = vadd.f32 %v4586_v44, %v2420_v14  ;;  %v2384_v57 = vpop.f32.mrf.mxu3 }
 0x2d5   : > { %v2410_v50 = vmul.f32 %v4576_v4, %v2336_v35  ;;  %v2426_v33 = vmul.f32 %v4576_v4, %v2384_v57 }
 0x2d6   : > { %v2520_v54 = vadd.f32 %v2488_v6, %v2456_v8 }
 0x2d7   : > { %v2446_v15 = vadd.f32 %v4586_v44, %v2410_v50  ;;  %v2462_v58 = vadd.f32 %v4586_v44, %v2426_v33 }
 0x2d8   : > { %2553 = vst.msk [vmem:[%s4604_s22 + $0xb8] sm:$0xff] %vm2529_vm1, %v2520_v54 }
 0x2d9   : > { %v2510_v31 = vadd.f32 %v2478_v40, %v2446_v15  ;;  %v2526_v5 = vadd.f32 %v2494_v38, %v2462_v58 }
 0x2db   : > { %2543 = vst.msk [vmem:[%s4604_s22 + $0x68] sm:$0xff] %vm2529_vm1, %v2510_v31 }
 0x2dc   : > { %2559 = vst.msk [vmem:[%s4604_s22 + $0xe8] sm:$0xff] %vm2529_vm1, %v2526_v5  ;;  %v2339_v30 = vpop.f32.mrf.mxu1  ;;  %v2387_v48 = vpop.f32.mrf.mxu3 }
 0x2dd   : > { %v2411_v45 = vmul.f32 %v4576_v4, %v2339_v30  ;;  %v2427_v26 = vmul.f32 %v4576_v4, %v2387_v48 }
 0x2df   : > { %v2447_v23 = vadd.f32 %v4586_v44, %v2411_v45  ;;  %v2463_v41 = vadd.f32 %v4586_v44, %v2427_v26 }
 0x2e1   : > { %v2511_v19 = vadd.f32 %v2479_v29, %v2447_v23  ;;  %v2527_v49 = vadd.f32 %v2495_v12, %v2463_v41 }
 0x2e3   : > { %2544 = vst.msk [vmem:[%s4604_s22 + $0x70] sm:$0xff] %vm2529_vm1, %v2511_v19 }
 0x2e4   : > { %2560 = vst.msk [vmem:[%s4604_s22 + $0xf0] sm:$0xff] %vm2529_vm1, %v2527_v49  ;;  %v2342_v7 = vpop.f32.mrf.mxu1  ;;  %v2390_v28 = vpop.f32.mrf.mxu3 }
 0x2e5   : > { %v2412_v24 = vmul.f32 %v4576_v4, %v2342_v7  ;;  %v2428_v42 = vmul.f32 %v4576_v4, %v2390_v28 }
 0x2e7   : > { %v2448_v56 = vadd.f32 %v4586_v44, %v2412_v24  ;;  %v2464_v59 = vadd.f32 %v4586_v44, %v2428_v42 }
 0x2e9   : > { %v2512_v36 = vadd.f32 %v2480_v32, %v2448_v56  ;;  %v2528_v2 = vadd.f32 %v2496_v10, %v2464_v59 }
 0x2eb   : > { %2545 = vst.msk [vmem:[%s4604_s22 + $0x78] sm:$0xff] %vm2529_vm1, %v2512_v36 }
 0x2ec   : > { %2561 = vst.msk [vmem:[%s4604_s22 + $0xf8] sm:$0xff] %vm2529_vm1, %v2528_v2 }
 0x2ed PF: > { %s20_s13 = sadd.s32 1, %s2760_s13  }
 0x2ee   : > { %p17_p4 = scmp.ge.s32.totalorder %s20_s13, 4  }
 0x2f0   :  { %19 = sbr.rel (!%p17_p4) target bundleno = 1 (0x1), region = 92 }

</bundles_post_ra>
